<compile_context>
chip_gen: v5e
topology: v5e:2x2
jax: 0.10.0
libtpu: 0.0.40
codegen_flags: <defaults>
</compile_context>

<pallas_src>
import jax
import jax.numpy as jnp
from jax.experimental import pallas as pl
from jax.experimental.pallas import tpu as pltpu

NEG_SLOPE = 0.01  # nn.LeakyReLU default


def _reflect_pad1_hw(x):
    """Reflection-pad 1 pixel on the H and W axes of an (H, W, C) value."""
    # H axis (outer dim of the (W, C) vreg tile): cheap tile stacking.
    x = jnp.concatenate([x[1:2], x, x[-2:-1]], axis=0)
    # W axis (sublane dim).
    x = jnp.concatenate([x[:, 1:2, :], x, x[:, -2:-1, :]], axis=1)
    return x


def _im2col_3x3(xp, H, W):
    """(H+2, W+2, C) padded activation -> (H*W, 9*C) im2col slab.

    Column ordering is tap-major / channel-minor, i.e. column block
    t = dy*3 + dx holds the C channels of tap (dy, dx).  This matches
    w_hwio.reshape(9*C, Cout).
    """
    C = xp.shape[-1]
    cols = []
    for dy in range(3):
        for dx in range(3):
            cols.append(xp[dy:dy + H, dx:dx + W, :].reshape(H * W, C))
    return jnp.concatenate(cols, axis=-1)


def _local_net_kernel(x_ref, w1_ref, b1_ref, w2_ref, b2_ref, o_ref):
    """One batch element: refpad->conv1->lrelu->refpad->conv2->lrelu, fused.

    x_ref : (1, H, W, Cin)      unpadded NHWC input tile
    w1_ref: (9*Cin, Cmid)       conv1 weights, im2col layout
    b1_ref: (1, Cmid)           conv1 bias
    w2_ref: (9*Cmid, Cout)      conv2 weights, im2col layout
    b2_ref: (1, Cout)           conv2 bias
    o_ref : (1, H*W, Cout)      flat output tile (reshaped/transposed outside)
    """
    H, W = x_ref.shape[1], x_ref.shape[2]
    x = x_ref[0]  # (H, W, Cin)

    # ---- conv1: one K = 9*Cin matmul + bias + LeakyReLU ----
    slab1 = _im2col_3x3(_reflect_pad1_hw(x), H, W)                # (H*W, 9*Cin)
    mid = jnp.dot(slab1, w1_ref[...], preferred_element_type=jnp.float32)
    mid = mid + b1_ref[...]
    mid = jnp.where(mid >= 0, mid, NEG_SLOPE * mid)               # (H*W, Cmid)

    # ---- conv2: intermediate stays on-chip; pad + one K = 9*Cmid matmul ----
    mid = mid.reshape(H, W, w1_ref.shape[1])                      # (H, W, Cmid)
    slab2 = _im2col_3x3(_reflect_pad1_hw(mid), H, W)              # (H*W, 9*Cmid)
    out = jnp.dot(slab2, w2_ref[...], preferred_element_type=jnp.float32)
    out = out + b2_ref[...]
    out = jnp.where(out >= 0, out, NEG_SLOPE * out)               # (H*W, Cout)

    # Flat, reshape-free store (NHWC->NCHW handled in the wrapper).
    o_ref[0] = out.astype(o_ref.dtype)


def local_net_forward(x_nchw, params):
    """Full LocalNet forward. Input/output in PyTorch NCHW convention."""
    w1, b1, w2, b2 = params                      # HWIO weights, (C,) biases
    N, Cin, H, W = x_nchw.shape
    Cmid = w1.shape[-1]
    Cout = w2.shape[-1]

    # Layout glue in plain JAX: NCHW -> NHWC, weights -> im2col matrices.
    x = jnp.transpose(x_nchw, (0, 2, 3, 1))      # (N, H, W, Cin)
    w1r = w1.reshape(9 * Cin, Cmid)
    w2r = w2.reshape(9 * Cmid, Cout)
    b1r = b1.reshape(1, Cmid)
    b2r = b2.reshape(1, Cout)

    out_flat = pl.pallas_call(
        _local_net_kernel,
        out_shape=jax.ShapeDtypeStruct((N, H * W, Cout), x.dtype),
        grid=(N,),
        in_specs=[
            pl.BlockSpec((1, H, W, Cin), lambda n: (n, 0, 0, 0)),
            pl.BlockSpec((9 * Cin, Cmid), lambda n: (0, 0)),
            pl.BlockSpec((1, Cmid), lambda n: (0, 0)),
            pl.BlockSpec((9 * Cmid, Cout), lambda n: (0, 0)),
            pl.BlockSpec((1, Cout), lambda n: (0, 0)),
        ],
        out_specs=pl.BlockSpec((1, H * W, Cout), lambda n: (n, 0, 0)),
        compiler_params=pltpu.CompilerParams(
            dimension_semantics=("parallel",),   # 2-way split across v7x TCs
        ),
    )(x, w1r, b1r, w2r, b2r)

    # Back to NCHW to match the PyTorch module's output convention.
    return jnp.transpose(out_flat.reshape(N, H, W, Cout), (0, 3, 1, 2))


def _reference_forward(x_nchw, params):
    """Pure-JAX reference (lax.conv) for correctness checking."""
    w1, b1, w2, b2 = params
    x = jnp.transpose(x_nchw, (0, 2, 3, 1))  # NHWC

    def block(x, w, b):
        xp = jnp.pad(x, ((0, 0), (1, 1), (1, 1), (0, 0)), mode="reflect")
        y = jax.lax.conv_general_dilated(
            xp, w, window_strides=(1, 1), padding="VALID",
            dimension_numbers=("NHWC", "HWIO", "NHWC"),
        ) + b
        return jnp.where(y >= 0, y, NEG_SLOPE * y)

    out = block(block(x, w1, b1), w2, b2)
    return jnp.transpose(out, (0, 3, 1, 2))


def init_params(key, in_chans, out_chans):
    """Deterministic synthetic parameters (HWIO weights, per-channel bias)."""
    k1, k2, k3, k4 = jax.random.split(key, 4)
    scale1 = 1.0 / (in_chans * 9) ** 0.5
    scale2 = 1.0 / (out_chans * 9) ** 0.5
    w1 = jax.random.uniform(k1, (3, 3, in_chans, out_chans), jnp.float32,
                            -scale1, scale1)
    b1 = jax.random.uniform(k2, (out_chans,), jnp.float32, -scale1, scale1)
    w2 = jax.random.uniform(k3, (3, 3, out_chans, out_chans), jnp.float32,
                            -scale2, scale2)
    b2 = jax.random.uniform(k4, (out_chans,), jnp.float32, -scale2, scale2)
    return (w1, b1, w2, b2)


if __name__ == "__main__":
    IN_CHANS, OUT_CHANS = 16, 64   # module defaults
    N, H, W = 2, 16, 16

    key = jax.random.PRNGKey(0)
    kx, kp = jax.random.split(key)
    x = jax.random.normal(kx, (N, IN_CHANS, H, W), jnp.float32)  # NCHW input
    params = init_params(kp, IN_CHANS, OUT_CHANS)

    out = jax.jit(local_net_forward)(x, params)
    out = jax.block_until_ready(out)
    assert out.shape == (N, OUT_CHANS, H, W), out.shape

    ref = jax.block_until_ready(_reference_forward(x, params))
    assert jnp.allclose(out, ref, atol=1e-4, rtol=1e-4), float(
        jnp.max(jnp.abs(out - ref)))

    print("KERNEL_OK")
</pallas_src>

<mosaic_0001>
module attributes {stable_mosaic.version = 11 : i64} {
  func.func @_local_net_kernel(%arg0: i32, %arg1: memref<1x16x16x16xf32, #tpu.memory_space<vmem>>, %arg2: memref<144x64xf32, #tpu.memory_space<vmem>>, %arg3: memref<1x64xf32, #tpu.memory_space<vmem>>, %arg4: memref<576x64xf32, #tpu.memory_space<vmem>>, %arg5: memref<1x64xf32, #tpu.memory_space<vmem>>, %arg6: memref<1x256x64xf32, #tpu.memory_space<vmem>>) attributes {dimension_semantics = [#tpu.dimension_semantics<parallel>], iteration_bounds = array<i64: 2>, scalar_prefetch = 0 : i64, scratch_operands = 0 : i64, tpu.core_type = #tpu.core_type<tc>, window_params = [{transform_indices = @transform_0, window_bounds = array<i64: 1, 16, 16, 16>}, {pipeline_mode = #tpu.pipeline_mode<synchronous>, transform_indices = @transform_1, window_bounds = array<i64: 144, 64>}, {pipeline_mode = #tpu.pipeline_mode<synchronous>, transform_indices = @transform_2, window_bounds = array<i64: 1, 64>}, {pipeline_mode = #tpu.pipeline_mode<synchronous>, transform_indices = @transform_3, window_bounds = array<i64: 576, 64>}, {pipeline_mode = #tpu.pipeline_mode<synchronous>, transform_indices = @transform_4, window_bounds = array<i64: 1, 64>}, {transform_indices = @transform_5, window_bounds = array<i64: 1, 256, 64>}]} {
    %c0 = arith.constant 0 : index
    %c0_0 = arith.constant 0 : index
    %c0_1 = arith.constant 0 : index
    %c0_2 = arith.constant 0 : index
    %0 = vector.load %arg1[%c0, %c0_0, %c0_1, %c0_2] : memref<1x16x16x16xf32, #tpu.memory_space<vmem>>, vector<1x16x16x16xf32>
    %1 = vector.shape_cast %0 : vector<1x16x16x16xf32> to vector<16x16x16xf32>
    %2 = vector.extract_strided_slice %1 {offsets = [1, 0, 0], sizes = [1, 16, 16], strides = [1, 1, 1]} : vector<16x16x16xf32> to vector<1x16x16xf32>
    %3 = vector.extract_strided_slice %1 {offsets = [14, 0, 0], sizes = [1, 16, 16], strides = [1, 1, 1]} : vector<16x16x16xf32> to vector<1x16x16xf32>
    %4 = tpu.concatenate %2, %1, %3 in 0 : vector<1x16x16xf32>, vector<16x16x16xf32>, vector<1x16x16xf32> -> vector<18x16x16xf32>
    %5 = vector.extract_strided_slice %4 {offsets = [0, 1, 0], sizes = [18, 1, 16], strides = [1, 1, 1]} : vector<18x16x16xf32> to vector<18x1x16xf32>
    %6 = vector.extract_strided_slice %4 {offsets = [0, 14, 0], sizes = [18, 1, 16], strides = [1, 1, 1]} : vector<18x16x16xf32> to vector<18x1x16xf32>
    %7 = tpu.concatenate %5, %4, %6 in 1 : vector<18x1x16xf32>, vector<18x16x16xf32>, vector<18x1x16xf32> -> vector<18x18x16xf32>
    %8 = vector.extract_strided_slice %7 {offsets = [0, 0, 0], sizes = [16, 16, 16], strides = [1, 1, 1]} : vector<18x18x16xf32> to vector<16x16x16xf32>
    %9 = vector.shape_cast %8 : vector<16x16x16xf32> to vector<256x16xf32>
    %10 = vector.extract_strided_slice %7 {offsets = [0, 1, 0], sizes = [16, 16, 16], strides = [1, 1, 1]} : vector<18x18x16xf32> to vector<16x16x16xf32>
    %11 = vector.shape_cast %10 : vector<16x16x16xf32> to vector<256x16xf32>
    %12 = vector.extract_strided_slice %7 {offsets = [0, 2, 0], sizes = [16, 16, 16], strides = [1, 1, 1]} : vector<18x18x16xf32> to vector<16x16x16xf32>
    %13 = vector.shape_cast %12 : vector<16x16x16xf32> to vector<256x16xf32>
    %14 = vector.extract_strided_slice %7 {offsets = [1, 0, 0], sizes = [16, 16, 16], strides = [1, 1, 1]} : vector<18x18x16xf32> to vector<16x16x16xf32>
    %15 = vector.shape_cast %14 : vector<16x16x16xf32> to vector<256x16xf32>
    %16 = vector.extract_strided_slice %7 {offsets = [1, 1, 0], sizes = [16, 16, 16], strides = [1, 1, 1]} : vector<18x18x16xf32> to vector<16x16x16xf32>
    %17 = vector.shape_cast %16 : vector<16x16x16xf32> to vector<256x16xf32>
    %18 = vector.extract_strided_slice %7 {offsets = [1, 2, 0], sizes = [16, 16, 16], strides = [1, 1, 1]} : vector<18x18x16xf32> to vector<16x16x16xf32>
    %19 = vector.shape_cast %18 : vector<16x16x16xf32> to vector<256x16xf32>
    %20 = vector.extract_strided_slice %7 {offsets = [2, 0, 0], sizes = [16, 16, 16], strides = [1, 1, 1]} : vector<18x18x16xf32> to vector<16x16x16xf32>
    %21 = vector.shape_cast %20 : vector<16x16x16xf32> to vector<256x16xf32>
    %22 = vector.extract_strided_slice %7 {offsets = [2, 1, 0], sizes = [16, 16, 16], strides = [1, 1, 1]} : vector<18x18x16xf32> to vector<16x16x16xf32>
    %23 = vector.shape_cast %22 : vector<16x16x16xf32> to vector<256x16xf32>
    %24 = vector.extract_strided_slice %7 {offsets = [2, 2, 0], sizes = [16, 16, 16], strides = [1, 1, 1]} : vector<18x18x16xf32> to vector<16x16x16xf32>
    %25 = vector.shape_cast %24 : vector<16x16x16xf32> to vector<256x16xf32>
    %26 = tpu.concatenate %9, %11, %13, %15, %17, %19, %21, %23, %25 in 1 : vector<256x16xf32>, vector<256x16xf32>, vector<256x16xf32>, vector<256x16xf32>, vector<256x16xf32>, vector<256x16xf32>, vector<256x16xf32>, vector<256x16xf32>, vector<256x16xf32> -> vector<256x144xf32>
    %c0_3 = arith.constant 0 : index
    %c0_4 = arith.constant 0 : index
    %27 = vector.load %arg2[%c0_3, %c0_4] : memref<144x64xf32, #tpu.memory_space<vmem>>, vector<144x64xf32>
    %cst = arith.constant dense<0.000000e+00> : vector<256x64xf32>
    %28 = tpu.matmul %26, %27, %cst {dimension_numbers = #tpu.dot_dimension_numbers<[1], [0], [0], [1], [0, 0, 1, 1], [], []>} : vector<256x144xf32>, vector<144x64xf32>, vector<256x64xf32> -> vector<256x64xf32>
    %c0_5 = arith.constant 0 : index
    %c0_6 = arith.constant 0 : index
    %29 = vector.load %arg3[%c0_5, %c0_6] : memref<1x64xf32, #tpu.memory_space<vmem>>, vector<1x64xf32>
    %30 = vector.broadcast %29 : vector<1x64xf32> to vector<256x64xf32>
    %31 = arith.addf %28, %30 : vector<256x64xf32>
    %cst_7 = arith.constant 0.000000e+00 : f32
    %32 = vector.broadcast %cst_7 : f32 to vector<256x64xf32>
    %33 = arith.cmpf oge, %31, %32 : vector<256x64xf32>
    %cst_8 = arith.constant 0.00999999977 : f32
    %34 = vector.broadcast %cst_8 : f32 to vector<256x64xf32>
    %35 = arith.mulf %34, %31 : vector<256x64xf32>
    %36 = arith.select %33, %31, %35 : vector<256x64xi1>, vector<256x64xf32>
    %37 = vector.shape_cast %36 : vector<256x64xf32> to vector<16x16x64xf32>
    %38 = vector.extract_strided_slice %37 {offsets = [1, 0, 0], sizes = [1, 16, 64], strides = [1, 1, 1]} : vector<16x16x64xf32> to vector<1x16x64xf32>
    %39 = vector.extract_strided_slice %37 {offsets = [14, 0, 0], sizes = [1, 16, 64], strides = [1, 1, 1]} : vector<16x16x64xf32> to vector<1x16x64xf32>
    %40 = tpu.concatenate %38, %37, %39 in 0 : vector<1x16x64xf32>, vector<16x16x64xf32>, vector<1x16x64xf32> -> vector<18x16x64xf32>
    %41 = vector.extract_strided_slice %40 {offsets = [0, 1, 0], sizes = [18, 1, 64], strides = [1, 1, 1]} : vector<18x16x64xf32> to vector<18x1x64xf32>
    %42 = vector.extract_strided_slice %40 {offsets = [0, 14, 0], sizes = [18, 1, 64], strides = [1, 1, 1]} : vector<18x16x64xf32> to vector<18x1x64xf32>
    %43 = tpu.concatenate %41, %40, %42 in 1 : vector<18x1x64xf32>, vector<18x16x64xf32>, vector<18x1x64xf32> -> vector<18x18x64xf32>
    %44 = vector.extract_strided_slice %43 {offsets = [0, 0, 0], sizes = [16, 16, 64], strides = [1, 1, 1]} : vector<18x18x64xf32> to vector<16x16x64xf32>
    %45 = vector.shape_cast %44 : vector<16x16x64xf32> to vector<256x64xf32>
    %46 = vector.extract_strided_slice %43 {offsets = [0, 1, 0], sizes = [16, 16, 64], strides = [1, 1, 1]} : vector<18x18x64xf32> to vector<16x16x64xf32>
    %47 = vector.shape_cast %46 : vector<16x16x64xf32> to vector<256x64xf32>
    %48 = vector.extract_strided_slice %43 {offsets = [0, 2, 0], sizes = [16, 16, 64], strides = [1, 1, 1]} : vector<18x18x64xf32> to vector<16x16x64xf32>
    %49 = vector.shape_cast %48 : vector<16x16x64xf32> to vector<256x64xf32>
    %50 = vector.extract_strided_slice %43 {offsets = [1, 0, 0], sizes = [16, 16, 64], strides = [1, 1, 1]} : vector<18x18x64xf32> to vector<16x16x64xf32>
    %51 = vector.shape_cast %50 : vector<16x16x64xf32> to vector<256x64xf32>
    %52 = vector.extract_strided_slice %43 {offsets = [1, 1, 0], sizes = [16, 16, 64], strides = [1, 1, 1]} : vector<18x18x64xf32> to vector<16x16x64xf32>
    %53 = vector.shape_cast %52 : vector<16x16x64xf32> to vector<256x64xf32>
    %54 = vector.extract_strided_slice %43 {offsets = [1, 2, 0], sizes = [16, 16, 64], strides = [1, 1, 1]} : vector<18x18x64xf32> to vector<16x16x64xf32>
    %55 = vector.shape_cast %54 : vector<16x16x64xf32> to vector<256x64xf32>
    %56 = vector.extract_strided_slice %43 {offsets = [2, 0, 0], sizes = [16, 16, 64], strides = [1, 1, 1]} : vector<18x18x64xf32> to vector<16x16x64xf32>
    %57 = vector.shape_cast %56 : vector<16x16x64xf32> to vector<256x64xf32>
    %58 = vector.extract_strided_slice %43 {offsets = [2, 1, 0], sizes = [16, 16, 64], strides = [1, 1, 1]} : vector<18x18x64xf32> to vector<16x16x64xf32>
    %59 = vector.shape_cast %58 : vector<16x16x64xf32> to vector<256x64xf32>
    %60 = vector.extract_strided_slice %43 {offsets = [2, 2, 0], sizes = [16, 16, 64], strides = [1, 1, 1]} : vector<18x18x64xf32> to vector<16x16x64xf32>
    %61 = vector.shape_cast %60 : vector<16x16x64xf32> to vector<256x64xf32>
    %62 = tpu.concatenate %45, %47, %49, %51, %53, %55, %57, %59, %61 in 1 : vector<256x64xf32>, vector<256x64xf32>, vector<256x64xf32>, vector<256x64xf32>, vector<256x64xf32>, vector<256x64xf32>, vector<256x64xf32>, vector<256x64xf32>, vector<256x64xf32> -> vector<256x576xf32>
    %c0_9 = arith.constant 0 : index
    %c0_10 = arith.constant 0 : index
    %63 = vector.load %arg4[%c0_9, %c0_10] : memref<576x64xf32, #tpu.memory_space<vmem>>, vector<576x64xf32>
    %cst_11 = arith.constant dense<0.000000e+00> : vector<256x64xf32>
    %64 = tpu.matmul %62, %63, %cst_11 {dimension_numbers = #tpu.dot_dimension_numbers<[1], [0], [0], [1], [0, 0, 1, 1], [], []>} : vector<256x576xf32>, vector<576x64xf32>, vector<256x64xf32> -> vector<256x64xf32>
    %c0_12 = arith.constant 0 : index
    %c0_13 = arith.constant 0 : index
    %65 = vector.load %arg5[%c0_12, %c0_13] : memref<1x64xf32, #tpu.memory_space<vmem>>, vector<1x64xf32>
    %66 = vector.broadcast %65 : vector<1x64xf32> to vector<256x64xf32>
    %67 = arith.addf %64, %66 : vector<256x64xf32>
    %cst_14 = arith.constant 0.000000e+00 : f32
    %68 = vector.broadcast %cst_14 : f32 to vector<256x64xf32>
    %69 = arith.cmpf oge, %67, %68 : vector<256x64xf32>
    %cst_15 = arith.constant 0.00999999977 : f32
    %70 = vector.broadcast %cst_15 : f32 to vector<256x64xf32>
    %71 = arith.mulf %70, %67 : vector<256x64xf32>
    %72 = arith.select %69, %67, %71 : vector<256x64xi1>, vector<256x64xf32>
    %c0_16 = arith.constant 0 : index
    %c0_17 = arith.constant 0 : index
    %c0_18 = arith.constant 0 : index
    %73 = vector.load %arg6[%c0_16, %c0_17, %c0_18] : memref<1x256x64xf32, #tpu.memory_space<vmem>>, vector<1x256x64xf32>
    %74 = vector.shape_cast %73 : vector<1x256x64xf32> to vector<256x64xf32>
    %75 = vector.shape_cast %72 : vector<256x64xf32> to vector<1x256x64xf32>
    tpu.vector_store %arg6[%c0_16, %c0_17, %c0_18], %75 {strides = array<i32>} : memref<1x256x64xf32, #tpu.memory_space<vmem>>, vector<1x256x64xf32>,
    return
  }
  func.func @transform_0(%arg0: i32) -> (i32, i32, i32, i32) {
    %c0_i32 = arith.constant 0 : i32
    %c0_i32_0 = arith.constant 0 : i32
    %c0_i32_1 = arith.constant 0 : i32
    %c0_i32_2 = arith.constant 0 : i32
    return %arg0, %c0_i32, %c0_i32_0, %c0_i32_1 : i32, i32, i32, i32
  }
  func.func @transform_1(%arg0: i32) -> (i32, i32) {
    %c0_i32 = arith.constant 0 : i32
    %c0_i32_0 = arith.constant 0 : i32
    %c0_i32_1 = arith.constant 0 : i32
    return %c0_i32, %c0_i32_0 : i32, i32
  }
  func.func @transform_2(%arg0: i32) -> (i32, i32) {
    %c0_i32 = arith.constant 0 : i32
    %c0_i32_0 = arith.constant 0 : i32
    %c0_i32_1 = arith.constant 0 : i32
    return %c0_i32, %c0_i32_0 : i32, i32
  }
  func.func @transform_3(%arg0: i32) -> (i32, i32) {
    %c0_i32 = arith.constant 0 : i32
    %c0_i32_0 = arith.constant 0 : i32
    %c0_i32_1 = arith.constant 0 : i32
    return %c0_i32, %c0_i32_0 : i32, i32
  }
  func.func @transform_4(%arg0: i32) -> (i32, i32) {
    %c0_i32 = arith.constant 0 : i32
    %c0_i32_0 = arith.constant 0 : i32
    %c0_i32_1 = arith.constant 0 : i32
    return %c0_i32, %c0_i32_0 : i32, i32
  }
  func.func @transform_5(%arg0: i32) -> (i32, i32, i32) {
    %c0_i32 = arith.constant 0 : i32
    %c0_i32_0 = arith.constant 0 : i32
    %c0_i32_1 = arith.constant 0 : i32
    return %arg0, %c0_i32, %c0_i32_0 : i32, i32, i32
  }
}

</mosaic_0001>

<bundles_post_ra>
// kernel: local_net_forward.1
= control target key start
LH: loop header
LB: loop body
LE: loop exit
PB: predicated region body
PF: predicated region fallthrough
CT: control target
= control target key end

     0   :  { %10 = vsyncpa [#allocation3], 0  ;;  %s7856_s0 = inlined_call_operand.vmem [shape: f32[2,16,16,16], index: 0, kind: input, shape index: {}]   ;;  %s7857_s1 = inlined_call_operand.vmem [shape: f32[144,64], index: 1, kind: input, shape index: {}]   ;;  %s7858_s2 = inlined_call_operand.vmem [shape: f32[1,64], index: 2, kind: input, shape index: {}]   ;;  %s7859_s3 = inlined_call_operand.vmem [shape: f32[576,64], index: 3, kind: input, shape index: {}]   ;;  %s7860_s4 = inlined_call_operand.vmem [shape: f32[1,64], index: 4, kind: input, shape index: {}]   ;;  %s7861_s5 = inlined_call_operand.hbm [shape: f32[2,256,64], index: 5, kind: output, shape index: {}]  }
   0x1   :  { %12 = vsyncpa [#allocation3 + $0x1], 0  ;;  %s4717_s18 = smov 0   ;;  %s4719_s19 = smov 0  }
   0x2   :  { %s4721_s20 = smov 0   ;;  %s4723_s21 = smov 0  }
   0x3 LB: > { %s4738_s22 = sadd.s32 4294967295, %s4676_s21   ;;  %s3721_s23 = sadd.s32 4294967294, %s4676_s21   ;;  %s4676_s21 = sphi %s4723_s21, %s8101_s21   ;;  %s4672_s20 = sphi %s4721_s20, %s8100_s20   ;;  %s4668_s19 = sphi %s4719_s19, %s8099_s19   ;;  %s4664_s18 = sphi %s4717_s18, %s8098_s18  }
   0x4   : > { %s4742_s24 = sadd.s32 1, %s4676_s21   ;;  %s135_s25 = sadd.s32 1, %s4672_s20 }
   0x5   : > { %s132_s26 = ssub.s32 %s4676_s21, %s4742_s24  ;;  %p145_p0 = scmp.ne.s32.totalorder %s4672_s20, %s4668_s19 }
   0x6   : > { %p133_p1 = scmp.eq.s32.totalorder %s132_s26, 0  ;;  %p146_p2 = scmp.eq.s32.totalorder %s4738_s22, 1 }
   0x7   : > { %p151_p3 = scmp.ne.s32.totalorder %s4668_s19, %s4664_s18  ;;  %p152_p4 = scmp.eq.s32.totalorder %s3721_s23, 1 }
   0x8   : > { %s4753_s27 = scalar_select %p133_p1, %s4672_s20, %s135_s25  }
   0x9   : > { %p4755_p5 = por %p146_p2, %p145_p0  ;;  %p4759_p6 = por %p152_p4, %p151_p3 }
   0xa   : > { %p3724_p7 = scmp.ge.s32.totalorder %s4676_s21, 1  ;;  %p190_p8 = scmp.lt.s32.totalorder %s4676_s21, 3 }
   0xc   : > { %p191_p9 = pnand %p3724_p7, %p190_p8 }
   0xe   : > { %194 = sbr.rel (%p191_p9) target bundleno = 1157 (0x485), region = 40 }
  0x13   : > { %p218_p10 = scmp.lt.s32.totalorder %s4738_s22, 1  ;;  %vm319_vm0 = vcmask 1040384   ;;  %vm509_vm1 = vcmask 1046528   ;;  %s4678_s10 = smov 16   ;;  %vm585_vm2 = vcmask 1045504   ;;  %vm1321_vm3 = vcmask 130048  }
  0x14   : > { %s4679_s11 = smov 64   ;;  %s4680_s12 = smov 48   ;;  %vm1352_vm4 = vcmask 261120   ;;  %vm1383_vm5 = vcmask 392192   ;;  %vm1416_vm6 = vcmask 523264   ;;  %vm1449_vm7 = vcmask 654336  }
  0x15   : > { %s219_s30 = scalar_select %p218_p10, %s4738_s22, 1  ;;  %vm1482_vm8 = vcmask 785408   ;;  %vm1515_vm9 = vcmask 916480  }
  0x16   : > { %s4681_s13 = smov 32   ;;  %s4682_s14 = smov 112  }
  0x17   : > { %s3797_s6 = sshll.u32 %s219_s30, 8  ;;  %s4683_s15 = smov 96  }
  0x18   : > { %s4770_s9 = scalar_lea.vmem %s7856_s0, %s3797_s6  ;;  %s4684_s16 = smov 80  }
  0x19   : > { %v231_v0 = vld [vmem:[%s4770_s9 + $0x40] sm:$0xff]  ;;  %v232_v1 = vld [vmem:[%s4770_s9 + $0x48] sm:$0xff]  ;;  %v225_v8 = vld [vmem:[%s4770_s9 + $0x10] sm:$0xff]  ;;  %s215_s26 = sand.u32 1, %s4668_s19   ;;  %s4634_s17 = scalar_lea.hbm %s7861_s5, 512 }
  0x1a   : > { %v227_v2 = vld [vmem:[%s4770_s9 + $0x20] sm:$0xff]  ;;  %v275_v3 = vrot.slane %v231_v0, 1  ;;  %v332_v4 = vrot.slane %v231_v0, 7  ;;  %v333_v5 = vrot.slane %v232_v1, 7  ;;  %v419_v6 = vrot.slane %v232_v1, 5  ;;  %v228_v7 = vld [vmem:[%s4770_s9 + $0x28] sm:$0xff] }
  0x1b   : > { %v273_v9 = vrot.slane %v227_v2, 1  ;;  %v326_v10 = vrot.slane %v227_v2, 7  ;;  %v327_v11 = vrot.slane %v228_v7, 7  ;;  %v417_v12 = vrot.slane %v228_v7, 5  ;;  %v226_v19 = vld [vmem:[%s4770_s9 + $0x18] sm:$0xff]  ;;  %v233_v25 = vld [vmem:[%s4770_s9 + $0x50] sm:$0xff] }
  0x1c   : > { %v4778_v13 = vsel %vm319_vm0, %v332_v4, %v333_v5  ;;  %v4781_v14 = vsel %vm319_vm0, %v275_v3, %v332_v4  ;;  %v4784_v15 = vsel %vm319_vm0, %v333_v5, %v419_v6  ;;  %v271_v20 = vrot.slane %v225_v8, 1  ;;  %v234_v33 = vld [vmem:[%s4770_s9 + $0x58] sm:$0xff]  ;;  %v229_v42 = vld [vmem:[%s4770_s9 + $0x30] sm:$0xff]  ;;  %v223_v55 = vld [vmem:[%s4770_s9] sm:$0xff] }
  0x1d   : > { %7938 = vst [vmem:[#allocation5_spill] sm:$0xff] %v4778_v13  ;;  %v530_v16 = vrot.slane %v4781_v14, 1  ;;  %v531_v17 = vrot.slane %v4778_v13, 1  ;;  %v533_v18 = vrot.slane %v4784_v15, 1  ;;  %v4791_v21 = vsel %vm319_vm0, %v326_v10, %v327_v11  ;;  %v230_v50 = vld [vmem:[%s4770_s9 + $0x38] sm:$0xff]  ;;  %v224_v0 = vld [vmem:[%s4770_s9 + $0x8] sm:$0xff] }
  0x1e   : > { %v4794_v22 = vsel %vm319_vm0, %v273_v9, %v326_v10  ;;  %v4797_v23 = vsel %vm319_vm0, %v327_v11, %v417_v12  ;;  %v320_v24 = vrot.slane %v225_v8, 7  ;;  %v521_v29 = vrot.slane %v4791_v21, 1  ;;  %v239_v5 = vld [vmem:[%s4770_s9 + $0x80] sm:$0xff] }
  0x1f   : > { %v532_v26 = vsel %vm509_vm1, %v530_v16, %v531_v17  ;;  %v534_v27 = vsel %vm509_vm1, %v531_v17, %v533_v18  ;;  %v520_v28 = vrot.slane %v4794_v22, 1  ;;  %v523_v31 = vrot.slane %v4797_v23, 1  ;;  %v240_v17 = vld [vmem:[%s4770_s9 + $0x88] sm:$0xff] }
  0x20   : > { %v4804_v30 = vpack.i.bf16 %v534_v27, %v532_v26  ;;  %v321_v32 = vrot.slane %v226_v19, 7  ;;  %v415_v35 = vrot.slane %v226_v19, 5  ;;  %v4810_v36 = vsel %vm319_vm0, %v271_v20, %v320_v24 }
  0x21   : > { %v522_v34 = vsel %vm509_vm1, %v520_v28, %v521_v29  ;;  %v276_v37 = vrot.slane %v233_v25, 1  ;;  %v524_v38 = vsel %vm509_vm1, %v521_v29, %v523_v31  ;;  %v510_v40 = vrot.slane %v4810_v36, 1 }
  0x22   : > { %3902 = vrot.lane.b32.xlu2 %v4804_v30, %s4678_s10  ;;  %v4816_v39 = vsel %vm319_vm0, %v320_v24, %v321_v32  ;;  %v335_v41 = vrot.slane %v233_v25, 7  ;;  %v4820_v43 = vpack.i.bf16 %v524_v38, %v522_v34  ;;  %v4823_v44 = vsel %vm319_vm0, %v321_v32, %v415_v35  ;;  %v237_v25 = vld [vmem:[%s4770_s9 + $0x70] sm:$0xff]  ;;  %v238_v35 = vld [vmem:[%s4770_s9 + $0x78] sm:$0xff] }
  0x23   : > { %v511_v45 = vrot.slane %v4816_v39, 1  ;;  %v336_v46 = vrot.slane %v234_v33, 7  ;;  %v513_v47 = vrot.slane %v4823_v44, 1  ;;  %v420_v48 = vrot.slane %v234_v33, 5 }
  0x24   : > { %v4828_v49 = vsel %vm319_vm0, %v276_v37, %v335_v41  ;;  %3892 = vrot.lane.b32.xlu1 %v4820_v43, %s4678_s10  ;;  %v274_v54 = vrot.slane %v229_v42, 1  ;;  %v329_v59 = vrot.slane %v229_v42, 7  ;;  %v330_v62 = vrot.slane %v230_v50, 7 }
  0x25   : > { %7939 = vst [vmem:[#allocation6_spill] sm:$0xff] %v4828_v49  ;;  %v512_v51 = vsel %vm509_vm1, %v510_v40, %v511_v45  ;;  %v4835_v52 = vsel %vm319_vm0, %v335_v41, %v336_v46  ;;  %v535_v53 = vrot.slane %v4828_v49, 1  ;;  %v514_v56 = vsel %vm509_vm1, %v511_v45, %v513_v47 }
  0x26   : > { %7940 = vst [vmem:[#allocation7_spill] sm:$0xff] %v4835_v52  ;;  %v4841_v57 = vsel %vm319_vm0, %v336_v46, %v420_v48  ;;  %v536_v58 = vrot.slane %v4835_v52, 1  ;;  %v4844_v60 = vpack.i.bf16 %v514_v56, %v512_v51  ;;  %v418_v63 = vrot.slane %v230_v50, 5  ;;  %v235_v48 = vld [vmem:[%s4770_s9 + $0x60] sm:$0xff] }
  0x27   : > { %v538_v61 = vrot.slane %v4841_v57, 1  ;;  %v4850_v2 = vsel %vm319_vm0, %v274_v54, %v329_v59  ;;  %v272_v3 = vrot.slane %v223_v55, 1  ;;  %v323_v4 = vrot.slane %v223_v55, 7 }
  0x28   : > { %v537_v1 = vsel %vm509_vm1, %v535_v53, %v536_v58  ;;  %3882 = vrot.lane.b32.xlu0 %v4844_v60, %s4678_s10  ;;  %v4857_v7 = vsel %vm319_vm0, %v329_v59, %v330_v62  ;;  %v4860_v8 = vsel %vm319_vm0, %v330_v62, %v418_v63  ;;  %v525_v9 = vrot.slane %v4850_v2, 1 }
  0x29   : > { %v539_v6 = vsel %vm509_vm1, %v536_v58, %v538_v61  ;;  %v526_v11 = vrot.slane %v4857_v7, 1  ;;  %v528_v12 = vrot.slane %v4860_v8, 1  ;;  %v324_v16 = vrot.slane %v224_v0, 7  ;;  %v236_v61 = vld [vmem:[%s4770_s9 + $0x68] sm:$0xff] }
  0x2a   : > { %v4863_v10 = vpack.i.bf16 %v539_v6, %v537_v1  ;;  %v416_v18 = vrot.slane %v224_v0, 5  ;;  %v4869_v19 = vsel %vm319_vm0, %v272_v3, %v323_v4  ;;  %v279_v20 = vrot.slane %v239_v5, 1  ;;  %v245_v3 = vld [vmem:[%s4770_s9 + $0xb0] sm:$0xff] }
  0x2b   : > { %v344_v24 = vrot.slane %v239_v5, 7  ;;  %v527_v26 = vsel %vm509_vm1, %v525_v9, %v526_v11  ;;  %v529_v27 = vsel %vm509_vm1, %v526_v11, %v528_v12  ;;  %v4877_v28 = vsel %vm319_vm0, %v323_v4, %v324_v16 }
  0x2c   : > { %3907 = vrot.lane.b32.xlu2 %v4863_v10, %s4678_s10  ;;  %v515_v29 = vrot.slane %v4869_v19, 1  ;;  %v4880_v31 = vpack.i.bf16 %v529_v27, %v527_v26  ;;  %v4883_v32 = vsel %vm319_vm0, %v324_v16, %v416_v18  ;;  %v516_v33 = vrot.slane %v4877_v28, 1  ;;  %v246_v18 = vld [vmem:[%s4770_s9 + $0xb8] sm:$0xff]  ;;  %v243_v27 = vld [vmem:[%s4770_s9 + $0xa0] sm:$0xff] }
  0x2d   : > { %v345_v34 = vrot.slane %v240_v17, 7  ;;  %v518_v37 = vrot.slane %v4883_v32, 1  ;;  %v423_v38 = vrot.slane %v240_v17, 5  ;;  %v4889_v40 = vsel %vm319_vm0, %v279_v20, %v344_v24 }
  0x2e   : > { %7941 = vst [vmem:[#allocation8_spill] sm:$0xff] %v4889_v40  ;;  %v278_v41 = vrot.slane %v237_v25, 1  ;;  %3897 = vrot.lane.b32.xlu1 %v4880_v31, %s4678_s10  ;;  %v517_v42 = vsel %vm509_vm1, %v515_v29, %v516_v33  ;;  %v550_v46 = vrot.slane %v4889_v40, 1  ;;  %v341_v47 = vrot.slane %v237_v25, 7 }
  0x2f   : > { %v4895_v45 = vsel %vm319_vm0, %v344_v24, %v345_v34  ;;  %v519_v50 = vsel %vm509_vm1, %v516_v33, %v518_v37  ;;  %v4901_v51 = vsel %vm319_vm0, %v345_v34, %v423_v38  ;;  %v342_v54 = vrot.slane %v238_v35, 7 }
  0x30   : > { %7942 = vst [vmem:[#allocation9_spill] sm:$0xff] %v4895_v45  ;;  %v551_v53 = vrot.slane %v4895_v45, 1  ;;  %v4904_v55 = vpack.i.bf16 %v519_v50, %v517_v42  ;;  %v553_v56 = vrot.slane %v4901_v51, 1  ;;  %v422_v58 = vrot.slane %v238_v35, 5 }
  0x31   : > { %v4908_v59 = vsel %vm319_vm0, %v278_v41, %v341_v47  ;;  %v4913_v63 = vsel %vm319_vm0, %v341_v47, %v342_v54  ;;  %v277_v1 = vrot.slane %v235_v48, 1  ;;  %v338_v9 = vrot.slane %v235_v48, 7 }
  0x32   : > { %7943 = vst [vmem:[#allocation10_spill] sm:$0xff] %v4908_v59  ;;  %v552_v62 = vsel %vm509_vm1, %v550_v46, %v551_v53  ;;  %v545_v0 = vrot.slane %v4908_v59, 1  ;;  %3887 = vrot.lane.b32.xlu0 %v4904_v55, %s4678_s10  ;;  %v554_v4 = vsel %vm509_vm1, %v551_v53, %v553_v56  ;;  %v4921_v5 = vsel %vm319_vm0, %v342_v54, %v422_v58  ;;  %v244_v46 = vld [vmem:[%s4770_s9 + $0xa8] sm:$0xff]  ;;  %v241_v54 = vld [vmem:[%s4770_s9 + $0x90] sm:$0xff] }
  0x33   : > { %7944 = vst [vmem:[#allocation11_spill] sm:$0xff] %v4913_v63  ;;  %v546_v6 = vrot.slane %v4913_v63, 1  ;;  %v4924_v11 = vpack.i.bf16 %v554_v4, %v552_v62  ;;  %v548_v12 = vrot.slane %v4921_v5, 1  ;;  %v339_v16 = vrot.slane %v236_v61, 7 }
  0x34   : > { %v421_v17 = vrot.slane %v236_v61, 5  ;;  %v4930_v24 = vsel %vm319_vm0, %v277_v1, %v338_v9  ;;  %v282_v25 = vrot.slane %v245_v3, 1  ;;  %v353_v26 = vrot.slane %v245_v3, 7 }
  0x35   : > { %v547_v20 = vsel %vm509_vm1, %v545_v0, %v546_v6  ;;  %7945 = vst [vmem:[#allocation12_spill] sm:$0xff] %v4930_v24  ;;  %3922 = vrot.lane.b32.xlu2 %v4924_v11, %s4678_s10  ;;  %v549_v29 = vsel %vm509_vm1, %v546_v6, %v548_v12  ;;  %v4937_v33 = vsel %vm319_vm0, %v338_v9, %v339_v16  ;;  %v540_v35 = vrot.slane %v4930_v24, 1  ;;  %v242_v6 = vld [vmem:[%s4770_s9 + $0x98] sm:$0xff] }
  0x36   : > { %7946 = vst [vmem:[#allocation13_spill] sm:$0xff] %v4937_v33  ;;  %v4940_v34 = vsel %vm319_vm0, %v339_v16, %v421_v17  ;;  %v4943_v37 = vpack.i.bf16 %v549_v29, %v547_v20  ;;  %v541_v38 = vrot.slane %v4937_v33, 1  ;;  %v354_v42 = vrot.slane %v246_v18, 7 }
  0x37   : > { %v543_v41 = vrot.slane %v4940_v34, 1  ;;  %v426_v47 = vrot.slane %v246_v18, 5  ;;  %v4949_v48 = vsel %vm319_vm0, %v282_v25, %v353_v26  ;;  %v281_v50 = vrot.slane %v243_v27, 1 }
  0x38   : > { %v350_v53 = vrot.slane %v243_v27, 7  ;;  %3917 = vrot.lane.b32.xlu1 %v4943_v37, %s4678_s10  ;;  %v542_v56 = vsel %vm509_vm1, %v540_v35, %v541_v38  ;;  %v4957_v61 = vsel %vm319_vm0, %v353_v26, %v354_v42  ;;  %v565_v62 = vrot.slane %v4949_v48, 1 }
  0x39   : > { %v544_v58 = vsel %vm509_vm1, %v541_v38, %v543_v41  ;;  %v4963_v1 = vsel %vm319_vm0, %v354_v42, %v426_v47  ;;  %v566_v3 = vrot.slane %v4957_v61, 1  ;;  %v351_v4 = vrot.slane %v244_v46, 7 }
  0x3a   : > { %v4960_v0 = vpack.i.bf16 %v544_v58, %v542_v56  ;;  %v568_v9 = vrot.slane %v4963_v1, 1  ;;  %v425_v12 = vrot.slane %v244_v46, 5  ;;  %v4969_v16 = vsel %vm319_vm0, %v281_v50, %v350_v53 }
  0x3b   : > { %v280_v17 = vrot.slane %v241_v54, 1  ;;  %v4974_v18 = vsel %vm509_vm1, %v565_v62, %v566_v3  ;;  %v4977_v20 = vsel %vm319_vm0, %v350_v53, %v351_v4  ;;  %v560_v25 = vrot.slane %v4969_v16, 1 }
  0x3c   : > { %3912 = vrot.lane.b32.xlu0 %v4960_v0, %s4678_s10  ;;  %v347_v26 = vrot.slane %v241_v54, 7  ;;  %v4981_v27 = vsel %vm509_vm1, %v566_v3, %v568_v9  ;;  %v4984_v29 = vsel %vm319_vm0, %v351_v4, %v425_v12  ;;  %v561_v35 = vrot.slane %v4977_v20, 1 }
  0x3d   : > { %v348_v38 = vrot.slane %v242_v6, 7  ;;  %v3936_v41 = vpack.i.bf16 %v4981_v27, %v4974_v18  ;;  %v563_v42 = vrot.slane %v4984_v29, 1  ;;  %v424_v46 = vrot.slane %v242_v6, 5 }
  0x3e   : > { %v4991_v47 = vsel %vm319_vm0, %v280_v17, %v347_v26  ;;  %v4994_v50 = vsel %vm509_vm1, %v560_v25, %v561_v35  ;;  %v589_v9 = vrot.slane %v4823_v44, 2  ;;  %v586_v17 = vrot.slane %v4810_v36, 2 }
  0x3f   : > { %v4997_v53 = vsel %vm319_vm0, %v347_v26, %v348_v38  ;;  %v555_v54 = vrot.slane %v4991_v47, 1  ;;  %3937 = vrot.lane.b32.xlu2 %v3936_v41, %s4678_s10  ;;  %v5002_v56 = vsel %vm509_vm1, %v561_v35, %v563_v42  ;;  %v5005_v58 = vsel %vm319_vm0, %v348_v38, %v424_v46 }
  0x40   : > { %v556_v62 = vrot.slane %v4997_v53, 1  ;;  %v3931_v3 = vpack.i.bf16 %v5002_v56, %v4994_v50  ;;  %v558_v4 = vrot.slane %v5005_v58, 1  ;;  %v587_v25 = vrot.slane %v4816_v39, 2 }
  0x41   : > { %v3946_v44 = vpack.i.bf16 %v4877_v28, %v4869_v19  ;;  %v591_v42 = vrot.slane %v4869_v19, 2  ;;  %v592_v46 = vrot.slane %v4877_v28, 2 }
  0x42   : > { %v5012_v6 = vsel %vm509_vm1, %v555_v54, %v556_v62  ;;  %3932 = vrot.lane.b32.xlu1 %v3931_v3, %s4678_s10  ;;  %v5017_v12 = vsel %vm509_vm1, %v556_v62, %v558_v4  ;;  %v5030_v35 = vsel %vm585_vm2, %v586_v17, %v587_v25  ;;  %v5033_v38 = vsel %vm585_vm2, %v587_v25, %v589_v9 }
  0x43   : > { %v5023_v26 = vpack.i.bf16 %v5017_v12, %v5012_v6  ;;  %v3941_v41 = vpack.i.bf16 %v5033_v38, %v5030_v35  ;;  %v594_v54 = vrot.slane %v4883_v32, 2  ;;  %v3961_v62 = vpack.i.bf16 %v4816_v39, %v4810_v36 }
  0x44   : > { %v599_v32 = vrot.slane %v4797_v23, 2  ;;  %v596_v9 = vrot.slane %v4794_v22, 2  ;;  %v597_v17 = vrot.slane %v4791_v21, 2  ;;  %v3991_v25 = vpack.i.bf16 %v4791_v21, %v4794_v22 }
  0x45   : > { %3927 = vrot.lane.b32.xlu0 %v5023_v26, %s4678_s10  ;;  %v595_v3 = vsel %vm585_vm2, %v592_v46, %v594_v54  ;;  %v604_v54 = vrot.slane %v4860_v8, 2 }
  0x47   : > { %3952 = vrot.lane.b32.xlu2 %v4904_v55, %s4679_s11  ;;  %v593_v55 = vsel %vm585_vm2, %v591_v42, %v592_v46  ;;  %v601_v42 = vrot.slane %v4850_v2, 2  ;;  %v602_v46 = vrot.slane %v4857_v7, 2 }
  0x48   : > { %v3956_v4 = vpack.i.bf16 %v595_v3, %v593_v55  ;;  %v4016_v55 = vpack.i.bf16 %v4857_v7, %v4850_v2  ;;  %v609_v3 = vrot.slane %v4784_v15, 2 }
  0x4a   : > { %3947 = vrot.lane.b32.xlu1 %v3946_v44, %s4680_s12  ;;  %v598_v44 = vsel %vm585_vm2, %v596_v9, %v597_v17  ;;  %v5103_v9 = vld [vmem:[%s7857_s1 + $0x88] sm:$0xff] }
  0x4b   : > { %1757 = vmatpush.msra.mxu1 %v5103_v9 }
  0x4d   : > { %3942 = vrot.lane.b32.xlu0 %v3941_v41, %s4681_s13 }
  0x4f   : > { %3967 = vrot.lane.b32.xlu2 %v4844_v60, %s4682_s14 }
  0x52   : > { %3962 = vrot.lane.b32.xlu1 %v3961_v62, %s4683_s15 }
  0x55   : > { %3957 = vrot.lane.b32.xlu0 %v3956_v4, %s4684_s16 }
  0x57   : > { %3982 = vrot.lane.b32.xlu2 %v4844_v60, %s4679_s11  ;;  %v5065_v60 = vsel %vm585_vm2, %v597_v17, %v599_v32  ;;  %v607_v32 = vrot.slane %v4778_v13, 2  ;;  %v5108_v17 = vld [vmem:[%s7857_s1 + $0x80] sm:$0xff] }
  0x58   : > { %v4011_v23 = vpack.i.bf16 %v5065_v60, %v598_v44  ;;  %1758 = vmatpush.msra.mxu1 %v5108_v17 }
  0x59   : > { %3728 = vmatmul.msk.f32.vlgmr.msra.gmra.mxu1 %vm1321_vm3, %v5030_v35  ;;  %v611_v35 = vrot.slane %v4828_v49, 2 }
  0x5a   : > { %3977 = vrot.lane.b32.xlu1 %v3961_v62, %s4680_s12  ;;  %v5079_v62 = vsel %vm585_vm2, %v601_v42, %v602_v46 }
  0x5d   : > { %3972 = vrot.lane.b32.xlu0 %v3956_v4, %s4681_s13  ;;  %v606_v4 = vrot.slane %v4781_v14, 2 }
  0x5f   : > { %3997 = vrot.lane.b32.xlu2 %v4820_v43, %s4682_s14  ;;  %v5113_v15 = vsel %vm585_vm2, %v606_v4, %v607_v32  ;;  %v4076_v4 = vpack.i.bf16 %v4835_v52, %v4828_v49 }
  0x61   : > { %3729 = vmatmul.msk.f32.gmra.mxu1 %vm1321_vm3, %v5033_v38 }
  0x62   : > { %3992 = vrot.lane.b32.xlu1 %v3991_v25, %s4683_s15 }
  0x65   : > { %3987 = vrot.lane.b32.xlu0 %v3941_v41, %s4684_s16  ;;  %v5082_v41 = vsel %vm585_vm2, %v602_v46, %v604_v54  ;;  %v612_v46 = vrot.slane %v4835_v52, 2  ;;  %v614_v54 = vrot.slane %v4841_v57, 2 }
  0x67   : > { %4012 = vrot.lane.b32.xlu2 %v4011_v23, %s4684_s16  ;;  %v5152_v57 = vsel %vm585_vm2, %v612_v46, %v614_v54  ;;  %v1557_v54 = vld [vmem:[%s7857_s1 + $0x48] sm:$0xff] }
  0x69   : > { %3730 = vmatmul.msk.f32.gmra.mxu1 %vm1321_vm3, %v598_v44  ;;  %v1558_v44 = vld [vmem:[%s7857_s1 + $0x50] sm:$0xff] }
  0x6a   : > { %4007 = vrot.lane.b32.xlu1 %v4820_v43, %s4679_s11  ;;  %v4041_v43 = vpack.i.bf16 %v5082_v41, %v5079_v62 }
  0x6d   : > { %4002 = vrot.lane.b32.xlu0 %v3991_v25, %s4680_s12  ;;  %v4046_v25 = vpack.i.bf16 %v4778_v13, %v4781_v14 }
  0x6f   : > { %4027 = vrot.lane.b32.xlu2 %v4011_v23, %s4681_s13 }
  0x71   : > { %3731 = vmatmul.msk.f32.gmra.mxu1 %vm1321_vm3, %v5065_v60  ;;  %v1554_v60 = vld [vmem:[%s7857_s1 + $0x30] sm:$0xff] }
  0x72   : > { %4022 = vrot.lane.b32.xlu1 %v4880_v31, %s4682_s14 }
  0x75   : > { %4017 = vrot.lane.b32.xlu0 %v4016_v55, %s4683_s15 }
  0x77   : > { %4042 = vrot.lane.b32.xlu2 %v4041_v43, %s4684_s16 }
  0x79   : > { %3732 = vmatmul.msk.f32.gmra.mxu1 %vm1321_vm3, %v5079_v62  ;;  %v1551_v62 = vld [vmem:[%s7857_s1 + $0x18] sm:$0xff] }
  0x7a   : > { %4037 = vrot.lane.b32.xlu1 %v4880_v31, %s4679_s11  ;;  %v5116_v31 = vsel %vm585_vm2, %v607_v32, %v609_v3  ;;  %v1561_v3 = vld [vmem:[%s7857_s1 + $0x68] sm:$0xff]  ;;  %v1560_v32 = vld [vmem:[%s7857_s1 + $0x60] sm:$0xff] }
  0x7b   : > { %v4071_v23 = vpack.i.bf16 %v5116_v31, %v5113_v15 }
  0x7c   : > { %v5094_v8 = vpop.permute.xlu2 %3902 }
  0x7d   : > { %4032 = vrot.lane.b32.xlu0 %v4016_v55, %s4680_s12  ;;  %v1563_v55 = vld [vmem:[%s7857_s1 + $0x78] sm:$0xff] }
  0x7e   : > { %1630 = vmatpush.msra.mxu0 %v1563_v55  ;;  %3799 = vmatpush.msra.mxu3 %v1563_v55 }
  0x7f   : > { %4057 = vrot.lane.b32.xlu2 %v4041_v43, %s4681_s13  ;;  %v5149_v43 = vsel %vm585_vm2, %v611_v35, %v612_v46 }
  0x81   : > { %3733 = vmatmul.msk.f32.gmra.mxu1 %vm1321_vm3, %v5082_v41 }
  0x82   : > { %4052 = vrot.lane.b32.xlu1 %v4804_v30, %s4682_s14 }
  0x85   : > { %4047 = vrot.lane.b32.xlu0 %v4046_v25, %s4683_s15 }
  0x86   : > { %v5128_v42 = vpop.permute.xlu2 %3907 }
  0x87   : > { %7947 = vst [vmem:[#allocation14_spill] sm:$0xff] %v5128_v42  ;;  %4072 = vrot.lane.b32.xlu2 %v4071_v23, %s4684_s16 }
  0x89   : > { %3734 = vmatmul.msk.f32.gmra.mxu1 %vm1321_vm3, %v5113_v15 }
  0x8a   : > { %4067 = vrot.lane.b32.xlu1 %v4804_v30, %s4679_s11  ;;  %v1562_v30 = vld [vmem:[%s7857_s1 + $0x70] sm:$0xff] }
  0x8b   : > { %1631 = vmatpush.msra.mxu0 %v1562_v30  ;;  %3800 = vmatpush.msra.mxu3 %v1562_v30  ;;  %v1556_v30 = vld [vmem:[%s7857_s1 + $0x40] sm:$0xff] }
  0x8d   : > { %4062 = vrot.lane.b32.xlu0 %v4046_v25, %s4680_s12  ;;  %1632 = vmatpush.msra.mxu0 %v1561_v3  ;;  %v4101_v25 = vpack.i.bf16 %v5152_v57, %v5149_v43 }
  0x8e   : > { %3801 = vmatpush.msra.mxu3 %v1561_v3  ;;  %v616_v3 = vrot.slane %v4930_v24, 2 }
  0x8f   : > { %4087 = vrot.lane.b32.xlu2 %v4071_v23, %s4681_s13  ;;  %v5143_v38 = vpop.permute.xlu2 %3922  ;;  %1633 = vmatpush.msra.mxu0 %v1560_v32  ;;  %v1559_v23 = vld [vmem:[%s7857_s1 + $0x58] sm:$0xff] }
  0x90   : > { %7948 = vst [vmem:[#allocation15_spill] sm:$0xff] %v5143_v38  ;;  %3802 = vmatpush.msra.mxu3 %v1560_v32  ;;  %v617_v32 = vrot.slane %v4937_v33, 2  ;;  %v622_v38 = vrot.slane %v4913_v63, 2 }
  0x91   : > { %1634 = vmatpush.msra.mxu0 %v1559_v23  ;;  %3735 = vmatmul.msk.f32.gmra.mxu1 %vm1321_vm3, %v5116_v31 }
  0x92   : > { %4082 = vrot.lane.b32.xlu1 %v4863_v10, %s4682_s14  ;;  %3803 = vmatpush.msra.mxu3 %v1559_v23  ;;  %v619_v23 = vrot.slane %v4940_v34, 2  ;;  %v5205_v34 = vsel %vm585_vm2, %v616_v3, %v617_v32  ;;  %v1552_v3 = vld [vmem:[%s7857_s1 + $0x20] sm:$0xff] }
  0x93   : > { %1635 = vmatpush.msra.mxu0 %v1558_v44 }
  0x94   : > { %3804 = vmatpush.msra.mxu3 %v1558_v44 }
  0x95   : > { %4077 = vrot.lane.b32.xlu0 %v4076_v4, %s4683_s15  ;;  %1636 = vmatpush.msra.mxu0 %v1557_v54 }
  0x96   : > { %v5171_v35 = vpop.permute.xlu1 %3892  ;;  %3805 = vmatpush.msra.mxu3 %v1557_v54  ;;  %v4106_v54 = vpack.i.bf16 %v4937_v33, %v4930_v24  ;;  %v624_v33 = vrot.slane %v4921_v5, 2  ;;  %v4136_v5 = vpack.i.bf16 %v4913_v63, %v4908_v59 }
  0x97   : > { %4102 = vrot.lane.b32.xlu2 %v4101_v25, %s4684_s16  ;;  %1637 = vmatpush.msra.mxu0 %v1556_v30 }
  0x98   : > { %3806 = vmatpush.msra.mxu3 %v1556_v30  ;;  %v5262_v41 = vsel %vm585_vm2, %v622_v38, %v624_v33 }
  0x99   : > { %v5177_v46 = vpop.permute.xlu2 %3937  ;;  %3736 = vmatmul.msk.f32.gmra.mxu1 %vm1321_vm3, %v5149_v43 }
  0x9a   : > { %7949 = vst [vmem:[#allocation16_spill] sm:$0xff] %v5177_v46  ;;  %4097 = vrot.lane.b32.xlu1 %v4863_v10, %s4679_s11  ;;  %v5186_v55 = vpop.permute.xlu0 %3882  ;;  %v1555_v10 = vld [vmem:[%s7857_s1 + $0x38] sm:$0xff]  ;;  %v1548_v46 = vld [vmem:[%s7857_s1] sm:$0xff] }
  0x9b   : > { %1638 = vmatpush.msra.mxu0 %v1555_v10  ;;  %3807 = vmatpush.msra.mxu3 %v1555_v10  ;;  %v1550_v10 = vld [vmem:[%s7857_s1 + $0x10] sm:$0xff] }
  0x9d   : > { %4092 = vrot.lane.b32.xlu0 %v4076_v4, %s4680_s12  ;;  %v5208_v4 = vsel %vm585_vm2, %v617_v32, %v619_v23  ;;  %1639 = vmatpush.msra.mxu0 %v1554_v60 }
  0x9e   : > { %3808 = vmatpush.msra.mxu3 %v1554_v60  ;;  %v4131_v32 = vpack.i.bf16 %v5208_v4, %v5205_v34  ;;  %v1549_v60 = vld [vmem:[%s7857_s1 + $0x8] sm:$0xff] }
  0x9f   : > { %4117 = vrot.lane.b32.xlu2 %v4101_v25, %s4681_s13  ;;  %v1553_v25 = vld [vmem:[%s7857_s1 + $0x28] sm:$0xff] }
  0xa0   : > { %v5202_v44 = vpop.permute.xlu1 %3897  ;;  %1640 = vmatpush.msra.mxu0 %v1553_v25  ;;  %3809 = vmatpush.msra.mxu3 %v1553_v25 }
  0xa1   : > { %v5212_v30 = vpop.permute.xlu2 %3952  ;;  %3737 = vmatmul.msk.f32.gmra.mxu1 %vm1321_vm3, %v5152_v57 }
  0xa2   : > { %4112 = vrot.lane.b32.xlu1 %v4960_v0, %s4682_s14  ;;  %1641 = vmatpush.msra.mxu0 %v1552_v3  ;;  %v3955_v52 = vunpack.i.h.bf16 %v5212_v30 }
  0xa3   : > { %3810 = vmatpush.msra.mxu3 %v1552_v3 }
  0xa4   : > { %v5226_v23 = vpop.permute.xlu0 %3887  ;;  %1642 = vmatpush.msra.mxu0 %v1551_v62 }
  0xa5   : > { %4107 = vrot.lane.b32.xlu0 %v4106_v54, %s4683_s15  ;;  %3811 = vmatpush.msra.mxu3 %v1551_v62  ;;  %v621_v62 = vrot.slane %v4908_v59, 2  ;;  %v5306_v59 = vld [vmem:[%s4770_s9 + $0xc8] sm:$0xff] }
  0xa6   : > { %1643 = vmatpush.msra.mxu0 %v1550_v10 }
  0xa7   : > { %4132 = vrot.lane.b32.xlu2 %v4131_v32, %s4684_s16  ;;  %3812 = vmatpush.msra.mxu3 %v1550_v10 }
  0xa8   : > { %1644 = vmatpush.msra.mxu0 %v1549_v60 }
  0xa9   : > { %v5239_v25 = vpop.permute.xlu2 %3967  ;;  %3813 = vmatpush.msra.mxu3 %v1549_v60  ;;  %v3884_v60 = vunpack.i.l.bf16 %v5186_v55  ;;  %3738 = vmatmul.msk.f32.gmra.mxu1 %vm1321_vm3, %v5205_v34 }
  0xaa   : > { %4127 = vrot.lane.b32.xlu1 %v4960_v0, %s4679_s11  ;;  %v5248_v3 = vpop.permute.xlu1 %3917  ;;  %1645 = vmatpush.msra.mxu0 %v1548_v46  ;;  %v5259_v0 = vsel %vm585_vm2, %v621_v62, %v622_v38  ;;  %v626_v38 = vrot.slane %v4889_v40, 2 }
  0xab   : > { %7950 = vst [vmem:[#allocation17_spill] sm:$0xff] %v5248_v3  ;;  %3814 = vmatpush.msra.mxu3 %v1548_v46 }
  0xad   : > { %4122 = vrot.lane.b32.xlu0 %v4106_v54, %s4680_s12  ;;  %3815 = vmatpush.msrb.mxu3 %v5103_v9  ;;  %v4161_v9 = vpack.i.bf16 %v5262_v41, %v5259_v0  ;;  %v627_v54 = vrot.slane %v4895_v45, 2 }
  0xae   : > { %v5254_v24 = vpop.permute.xlu0 %3912 }
  0xaf   : > { %7951 = vst [vmem:[#allocation18_spill] sm:$0xff] %v5254_v24  ;;  %4147 = vrot.lane.b32.xlu2 %v4131_v32, %s4681_s13  ;;  %3816 = vmatpush.msrb.mxu3 %v5108_v17  ;;  %v629_v32 = vrot.slane %v4901_v51, 2  ;;  %v4166_v51 = vpack.i.bf16 %v4895_v45, %v4889_v40 }
  0xb1   : > { %v5267_v10 = vpop.permute.xlu2 %3982  ;;  %3739 = vmatmul.msk.f32.gmra.mxu1 %vm1321_vm3, %v5208_v4 }
  0xb2   : > { %4142 = vrot.lane.b32.xlu1 %v4943_v37, %s4682_s14 }
  0xb4   : > { %v5275_v46 = vpop.permute.xlu1 %3932 }
  0xb5   : > { %7952 = vst [vmem:[#allocation19_spill] sm:$0xff] %v5275_v46  ;;  %4137 = vrot.lane.b32.xlu0 %v4136_v5, %s4683_s15  ;;  %v5297_v46 = vsel %vm585_vm2, %v627_v54, %v629_v32 }
  0xb7   : > { %v5278_v33 = vpop.permute.xlu0 %3927  ;;  %4162 = vrot.lane.b32.xlu2 %v4161_v9, %s4684_s16 }
  0xb8   : > { %7953 = vst [vmem:[#allocation20_spill] sm:$0xff] %v5278_v33  ;;  %v3885_v33 = vunpack.i.h.bf16 %v5186_v55  ;;  %v641_v55 = vrot.slane %v4949_v48, 2 }
  0xb9   : > { %v5281_v17 = vpop.permute.xlu2 %3997  ;;  %3740 = vmatmul.msk.f32.gmra.mxu1 %vm1321_vm3, %v5259_v0 }
  0xba   : > { %4157 = vrot.lane.b32.xlu1 %v4943_v37, %s4679_s11  ;;  %v5294_v37 = vsel %vm585_vm2, %v626_v38, %v627_v54  ;;  %v3954_v54 = vunpack.i.l.bf16 %v5212_v30 }
  0xbb   : > { %v4191_v40 = vpack.i.bf16 %v5297_v46, %v5294_v37 }
  0xbc   : > { %v3948_v15 = vpop.permute.xlu1 %3947 }
  0xbd   : > { %4152 = vrot.lane.b32.xlu0 %v4136_v5, %s4680_s12  ;;  %v247_v5 = vld [vmem:[%s4770_s9 + $0xc0] sm:$0xff]  ;;  %v3949_v38 = vunpack.i.l.bf16 %v3948_v15 }
  0xbe   : > { %v283_v3 = vrot.slane %v247_v5, 1  ;;  %v356_v24 = vrot.slane %v247_v5, 7 }
  0xbf   : > { %v3943_v62 = vpop.permute.xlu0 %3942  ;;  %4177 = vrot.lane.b32.xlu2 %v4161_v9, %s4681_s13  ;;  %v1322_v9 = vsel %vm1321_vm3, %v4810_v36, %v3884_v60  ;;  %v1323_v60 = vsel %vm1321_vm3, %v4816_v39, %v3885_v33  ;;  %v3969_v36 = vunpack.i.l.bf16 %v5239_v25 }
  0xc0   : > { %v3944_v31 = vunpack.i.l.bf16 %v3943_v62  ;;  %v3945_v32 = vunpack.i.h.bf16 %v3943_v62  ;;  %v3950_v62 = vunpack.i.h.bf16 %v3948_v15  ;;  %v7956_v15 = vrot.slane %v5306_v59, 7 }
  0xc1   : > { %v5302_v63 = vpop.permute.xlu2 %4012  ;;  %3741 = vmatmul.msk.f32.gmra.mxu1 %vm1321_vm3, %v5262_v41  ;;  %v251_v41 = vld [vmem:[%s4770_s9 + $0xe0] sm:$0xff] }
  0xc2   : > { %4172 = vrot.lane.b32.xlu1 %v4924_v11, %s4682_s14  ;;  %v5317_v45 = vsel %vm1352_vm4, %v1322_v9, %v3944_v31  ;;  %v7954_v9 = vrot.slane %v4957_v61, 2  ;;  %v5336_v39 = vsel %vm1352_vm4, %v1323_v60, %v3945_v32 }
  0xc3   : > { %v1384_v31 = vsel %vm1383_vm5, %v5317_v45, %v3949_v38  ;;  %v5342_v38 = vsel %vm319_vm0, %v356_v24, %v7956_v15 }
  0xc4   : > { %v3963_v43 = vpop.permute.xlu1 %3962  ;;  %v5332_v5 = vsel %vm585_vm2, %v641_v55, %v7954_v9  ;;  %v5345_v55 = vsel %vm319_vm0, %v283_v3, %v356_v24  ;;  %v1417_v9 = vsel %vm1416_vm6, %v1384_v31, %v3954_v54  ;;  %v1385_v3 = vsel %vm1383_vm5, %v5336_v39, %v3950_v62 }
  0xc5   : > { %4167 = vrot.lane.b32.xlu0 %v4166_v51, %s4683_s15  ;;  %7955 = vst [vmem:[#allocation21_spill] sm:$0xff] %v5332_v5  ;;  %v3964_v33 = vunpack.i.l.bf16 %v3963_v43  ;;  %v4206_v60 = vpack.i.bf16 %v5332_v5, %v5294_v37  ;;  %v631_v54 = vrot.slane %v4991_v47, 2  ;;  %v646_v5 = vrot.slane %v5345_v55, 2 }
  0xc6   : > { %v1418_v62 = vsel %vm1416_vm6, %v1385_v3, %v3955_v52  ;;  %v7958_v3 = vrot.slane %v5342_v38, 2 }
  0xc7   : > { %v3958_v49 = vpop.permute.xlu0 %3957  ;;  %4192 = vrot.lane.b32.xlu2 %v4191_v40, %s4684_s16 }
  0xc8   : > { %v3959_v30 = vunpack.i.l.bf16 %v3958_v49  ;;  %v3960_v40 = vunpack.i.h.bf16 %v3958_v49 }
  0xc9   : > { %v5348_v32 = vpop.permute.xlu2 %4027  ;;  %3742 = vmatmul.msk.f32.gmra.mxu1 %vm1321_vm3, %v5294_v37 }
  0xca   : > { %4187 = vrot.lane.b32.xlu1 %v4924_v11, %s4679_s11  ;;  %v1450_v24 = vsel %vm1449_vm7, %v1417_v9, %v3959_v30  ;;  %v3965_v11 = vunpack.i.h.bf16 %v3963_v43  ;;  %v249_v30 = vld [vmem:[%s4770_s9 + $0xd0] sm:$0xff]  ;;  %v5371_v9 = vld [vmem:[%s4770_s9 + $0xd8] sm:$0xff]  ;;  %v1451_v15 = vsel %vm1449_vm7, %v1418_v62, %v3960_v40 }
  0xcb   : > { %v1483_v31 = vsel %vm1482_vm8, %v1450_v24, %v3964_v33  ;;  %v3889_v33 = vunpack.i.l.bf16 %v5226_v23  ;;  %v3970_v24 = vunpack.i.h.bf16 %v5239_v25  ;;  %v359_v40 = vrot.slane %v249_v30, 7 }
  0xcc   : > { %v1516_v49 = vsel %vm1515_vm9, %v1483_v31, %v3969_v36  ;;  %v5365_v42 = vpop.permute.xlu1 %3977  ;;  %v570_v36 = vrot.slane %v5345_v55, 1  ;;  %v5387_v31 = vsel %vm585_vm2, %v646_v5, %v7958_v3  ;;  %v7880_v62 = vrot.slane %v5371_v9, 7 }
  0xcd   : > { %4182 = vrot.lane.b32.xlu0 %v4166_v51, %s4680_s12  ;;  %1646 = vmatmul.f32.vlgmr.msra.gmra.mxu0 %v1516_v49  ;;  %v7957_v51 = vrot.slane %v4997_v53, 2  ;;  %7959 = vst [vmem:[#allocation22_spill] sm:$0xff] %v5387_v31  ;;  %v284_v49 = vrot.slane %v249_v30, 1  ;;  %v1484_v43 = vsel %vm1482_vm8, %v1451_v15, %v3965_v11  ;;  %v1324_v5 = vsel %vm1321_vm3, %v4869_v19, %v3889_v33 }
  0xce   : > { %v7960_v15 = vrot.slane %v5342_v38, 1  ;;  %v5417_v33 = vsel %vm319_vm0, %v359_v40, %v7880_v62  ;;  %v7962_v62 = vrot.slane %v5306_v59, 7  ;;  %v7967_v0 = vrot.slane %v5371_v9, 7 }
  0xcf   : > { %v3973_v57 = vpop.permute.xlu0 %3972  ;;  %4207 = vrot.lane.b32.xlu2 %v4206_v60, %s4681_s13  ;;  %v5382_v52 = vsel %vm585_vm2, %v631_v54, %v7957_v51  ;;  %v4196_v60 = vpack.i.bf16 %v4997_v53, %v4991_v47  ;;  %v3890_v54 = vunpack.i.h.bf16 %v5226_v23  ;;  %v3979_v51 = vunpack.i.l.bf16 %v5365_v42 }
  0xd0   : > { %v3974_v25 = vunpack.i.l.bf16 %v3973_v57  ;;  %v3975_v30 = vunpack.i.h.bf16 %v3973_v57  ;;  %v5407_v11 = vsel %vm509_vm1, %v570_v36, %v7960_v15  ;;  %v5411_v34 = vpack.i.bf16 %v5387_v31, %v5382_v52 }
  0xd1   : > { %v5393_v13 = vpop.permute.xlu2 %4042  ;;  %v1517_v23 = vsel %vm1515_vm9, %v1484_v43, %v3970_v24  ;;  %v644_v57 = vrot.slane %v4963_v1, 2  ;;  %v3984_v36 = vunpack.i.l.bf16 %v5267_v10  ;;  %v1325_v24 = vsel %vm1321_vm3, %v4877_v28, %v3890_v54  ;;  %3743 = vmatmul.msk.f32.gmra.mxu1 %vm1321_vm3, %v5297_v46 }
  0xd2   : > { %4202 = vrot.lane.b32.xlu1 %v5023_v26, %s4682_s14  ;;  %v1355_v3 = vsel %vm1352_vm4, %v1324_v5, %v3974_v25  ;;  %v5420_v26 = vsel %vm319_vm0, %v284_v49, %v359_v40  ;;  %v427_v25 = vrot.slane %v5306_v59, 5  ;;  %v3980_v43 = vunpack.i.h.bf16 %v5365_v42 }
  0xd3   : > { %v4216_v5 = vpack.i.bf16 %v5407_v11, %v5012_v6  ;;  %v1386_v49 = vsel %vm1383_vm5, %v1355_v3, %v3979_v51  ;;  %v1356_v40 = vsel %vm1352_vm4, %v1325_v24, %v3975_v30  ;;  %v3999_v28 = vunpack.i.l.bf16 %v5281_v17 }
  0xd4   : > { %v3993_v19 = vpop.permute.xlu1 %3992  ;;  %v7961_v42 = vrot.slane %v4957_v61, 2  ;;  %v3985_v51 = vunpack.i.h.bf16 %v5267_v10  ;;  %v4211_v30 = vpack.i.bf16 %v5345_v55, %v4991_v47  ;;  %v1419_v3 = vsel %vm1416_vm6, %v1386_v49, %v3984_v36 }
  0xd5   : > { %4197 = vrot.lane.b32.xlu0 %v4196_v60, %s4683_s15  ;;  %1649 = vmatmul.f32.gmra.mxu0 %v1517_v23  ;;  %v3994_v1 = vunpack.i.l.bf16 %v3993_v19  ;;  %v575_v60 = vrot.slane %v5420_v26, 1  ;;  %v475_v23 = vsel %vm319_vm0, %v7962_v62, %v427_v25  ;;  %v1387_v10 = vsel %vm1383_vm5, %v1356_v40, %v3980_v43 }
  0xd6   : > { %v5441_v6 = vsel %vm585_vm2, %v7961_v42, %v644_v57  ;;  %v7963_v36 = vrot.slane %v5417_v33, 1  ;;  %v634_v25 = vrot.slane %v5005_v58, 2  ;;  %v1420_v43 = vsel %vm1416_vm6, %v1387_v10, %v3985_v51 }
  0xd7   : > { %v3988_v15 = vpop.permute.xlu0 %3987  ;;  %4222 = vrot.lane.b32.xlu2 %v5411_v34, %s4684_s16  ;;  %v4236_v59 = vpack.i.bf16 %v5441_v6, %v5297_v46  ;;  %v7965_v51 = vrot.slane %v5342_v38, 2 }
  0xd8   : > { %v3989_v54 = vunpack.i.l.bf16 %v3988_v15  ;;  %v3990_v31 = vunpack.i.h.bf16 %v3988_v15  ;;  %v5461_v49 = vsel %vm509_vm1, %v575_v60, %v7963_v36  ;;  %v3995_v15 = vunpack.i.h.bf16 %v3993_v19 }
  0xd9   : > { %v5447_v24 = vpop.permute.xlu2 %4057  ;;  %v5471_v40 = vpack.i.bf16 %v5461_v49, %v4994_v50  ;;  %v4000_v60 = vunpack.i.h.bf16 %v5281_v17  ;;  %v7964_v19 = vrot.slane %v4997_v53, 2  ;;  %v428_v50 = vrot.slane %v5371_v9, 5  ;;  %3744 = vmatmul.msk.f32.gmra.mxu1 %vm1321_vm3, %v5382_v52 }
  0xda   : > { %4217 = vrot.lane.b32.xlu1 %v4216_v5, %s4679_s11  ;;  %v1452_v57 = vsel %vm1449_vm7, %v1419_v3, %v3989_v54  ;;  %v649_v5 = vrot.slane %v475_v23, 2  ;;  %v5489_v17 = vpack.i.bf16 %v5420_v26, %v4969_v16 }
  0xdb   : > { %v1485_v42 = vsel %vm1482_vm8, %v1452_v57, %v3994_v1  ;;  %v1453_v1 = vsel %vm1449_vm7, %v1420_v43, %v3990_v31 }
  0xdc   : > { %v1518_v62 = vsel %vm1515_vm9, %v1485_v42, %v3999_v28  ;;  %v4008_v4 = vpop.permute.xlu1 %4007  ;;  %v573_v28 = vrot.slane %v475_v23, 1  ;;  %v5484_v3 = vsel %vm585_vm2, %v7965_v51, %v649_v5  ;;  %v1486_v31 = vsel %vm1482_vm8, %v1453_v1, %v3995_v15 }
  0xdd   : > { %4212 = vrot.lane.b32.xlu0 %v4211_v30, %s4680_s12  ;;  %1652 = vmatmul.f32.gmra.mxu0 %v1518_v62  ;;  %v5479_v30 = vsel %vm585_vm2, %v7964_v19, %v634_v25  ;;  %v4009_v57 = vunpack.i.l.bf16 %v4008_v4  ;;  %v7966_v42 = vrot.slane %v5342_v38, 1  ;;  %v1519_v62 = vsel %vm1515_vm9, %v1486_v31, %v4000_v60 }
  0xde   : > { %v5513_v5 = vsel %vm319_vm0, %v7967_v0, %v428_v50  ;;  %v4014_v15 = vunpack.i.l.bf16 %v5302_v63  ;;  %v4010_v19 = vunpack.i.h.bf16 %v4008_v4  ;;  %v4241_v51 = vpack.i.bf16 %v5342_v38, %v4997_v53 }
  0xdf   : > { %v4003_v54 = vpop.permute.xlu0 %4002  ;;  %4237 = vrot.lane.b32.xlu2 %v4236_v59, %s4681_s13  ;;  %v5503_v36 = vsel %vm509_vm1, %v7966_v42, %v573_v28  ;;  %v5507_v59 = vpack.i.bf16 %v5484_v3, %v5479_v30  ;;  %v578_v9 = vrot.slane %v5513_v5, 1 }
  0xe0   : > { %v4004_v58 = vunpack.i.l.bf16 %v4003_v54  ;;  %v4246_v43 = vpack.i.bf16 %v5503_v36, %v5017_v12 }
  0xe1   : > { %v5492_v23 = vpop.permute.xlu2 %4072  ;;  %3745 = vmatmul.msk.f32.gmra.mxu1 %vm1321_vm3, %v5479_v30 }
  0xe2   : > { %4232 = vrot.lane.b32.xlu1 %v5471_v40, %s4682_s14  ;;  %v1388_v10 = vsel %vm1383_vm5, %v5317_v45, %v4004_v58  ;;  %v4005_v45 = vunpack.i.h.bf16 %v4003_v54  ;;  %v4074_v52 = vunpack.i.l.bf16 %v5492_v23 }
  0xe3   : > { %v1421_v1 = vsel %vm1416_vm6, %v1388_v10, %v4009_v57  ;;  %v5536_v57 = vld [vmem:[%s4770_s9 + $0xe8] sm:$0xff]  ;;  %v7968_v10 = vrot.slane %v5417_v33, 1 }
  0xe4   : > { %v4023_v25 = vpop.permute.xlu1 %4022  ;;  %v1454_v54 = vsel %vm1449_vm7, %v1421_v1, %v4014_v15  ;;  %v1389_v12 = vsel %vm1383_vm5, %v5336_v39, %v4005_v45  ;;  %v3894_v39 = vunpack.i.l.bf16 %v5171_v35  ;;  %v4029_v1 = vunpack.i.l.bf16 %v5348_v32 }
  0xe5   : > { %4227 = vrot.lane.b32.xlu0 %v5489_v17, %s4683_s15  ;;  %1655 = vmatmul.f32.gmra.mxu0 %v1519_v62  ;;  %v4024_v60 = vunpack.i.l.bf16 %v4023_v25  ;;  %v5542_v42 = vsel %vm509_vm1, %v7968_v10, %v578_v9  ;;  %v4015_v62 = vunpack.i.h.bf16 %v5302_v63  ;;  %v1422_v45 = vsel %vm1416_vm6, %v1389_v12, %v4010_v19 }
  0xe6   : > { %v285_v9 = vrot.slane %v251_v41, 1  ;;  %v1326_v19 = vsel %vm1321_vm3, %v4794_v22, %v3894_v39  ;;  %v5564_v12 = vpack.i.bf16 %v5417_v33, %v4977_v20  ;;  %v4030_v39 = vunpack.i.h.bf16 %v5348_v32 }
  0xe7   : > { %v4018_v28 = vpop.permute.xlu0 %4017  ;;  %4252 = vrot.lane.b32.xlu2 %v5507_v59, %s4684_s16 }
  0xe8   : > { %v4019_v58 = vunpack.i.l.bf16 %v4018_v28  ;;  %v4020_v15 = vunpack.i.h.bf16 %v4018_v28  ;;  %v4025_v28 = vunpack.i.h.bf16 %v4023_v25  ;;  %v1357_v25 = vsel %vm1352_vm4, %v1326_v19, %v4029_v1 }
  0xe9   : > { %v5527_v50 = vpop.permute.xlu2 %4087 }
  0xea   : > { %4247 = vrot.lane.b32.xlu1 %v4246_v43, %s4679_s11  ;;  %v1487_v31 = vsel %vm1482_vm8, %v1454_v54, %v4019_v58  ;;  %v363_v43 = vrot.slane %v5536_v57, 7  ;;  %v362_v58 = vrot.slane %v251_v41, 7  ;;  %v4281_v41 = vpack.i.bf16 %v5503_v36, %v5407_v11 }
  0xeb   : > { %v1520_v4 = vsel %vm1515_vm9, %v1487_v31, %v4024_v60  ;;  %v5555_v60 = vpack.i.bf16 %v5542_v42, %v5002_v56 }
  0xec   : > { %v5545_v0 = vpop.permute.xlu1 %4037 }
  0xed   : > { %4242 = vrot.lane.b32.xlu0 %v4241_v51, %s4680_s12  ;;  %1658 = vmatmul.f32.gmra.mxu0 %v1520_v4  ;;  %v1455_v51 = vsel %vm1449_vm7, %v1422_v45, %v4015_v62  ;;  %v4039_v22 = vunpack.i.l.bf16 %v5545_v0  ;;  %v3895_v4 = vunpack.i.h.bf16 %v5171_v35  ;;  %v5583_v62 = vsel %vm319_vm0, %v285_v9, %v362_v58 }
  0xee   : > { %v1488_v56 = vsel %vm1482_vm8, %v1455_v51, %v4020_v15  ;;  %v580_v45 = vrot.slane %v5583_v62, 1  ;;  %v4044_v51 = vunpack.i.l.bf16 %v5393_v13 }
  0xef   : > { %v4033_v63 = vpop.permute.xlu0 %4032  ;;  %4267 = vrot.lane.b32.xlu2 %v5411_v34, %s4681_s13  ;;  %v5572_v34 = vsel %vm319_vm0, %v362_v58, %v363_v43  ;;  %v1521_v37 = vsel %vm1515_vm9, %v1488_v56, %v4025_v28  ;;  %v1327_v58 = vsel %vm1321_vm3, %v4791_v21, %v3895_v4  ;;  %v636_v21 = vrot.slane %v4969_v16, 2 }
  0xf0   : > { %v4034_v54 = vunpack.i.l.bf16 %v4033_v63  ;;  %v581_v1 = vrot.slane %v5572_v34, 1  ;;  %v4035_v35 = vunpack.i.h.bf16 %v4033_v63  ;;  %v1358_v28 = vsel %vm1352_vm4, %v1327_v58, %v4030_v39 }
  0xf1   : > { %v5567_v31 = vpop.permute.xlu2 %4102  ;;  %v637_v4 = vrot.slane %v4977_v20, 2  ;;  %v652_v39 = vrot.slane %v5417_v33, 2  ;;  %v429_v58 = vrot.slane %v5536_v57, 5 }
  0xf2   : > { %4262 = vrot.lane.b32.xlu1 %v5555_v60, %s4682_s14  ;;  %v1390_v10 = vsel %vm1383_vm5, %v1357_v25, %v4034_v54  ;;  %v5602_v56 = vsel %vm509_vm1, %v580_v45, %v581_v1  ;;  %v4040_v25 = vunpack.i.h.bf16 %v5545_v0  ;;  %v651_v0 = vrot.slane %v5420_v26, 2 }
  0xf3   : > { %v1423_v9 = vsel %vm1416_vm6, %v1390_v10, %v4039_v22  ;;  %v1391_v10 = vsel %vm1383_vm5, %v1358_v28, %v4035_v35  ;;  %v5621_v45 = vpack.i.bf16 %v5602_v56, %v4974_v18  ;;  %v3899_v35 = vunpack.i.l.bf16 %v5202_v44 }
  0xf4   : > { %v4053_v15 = vpop.permute.xlu1 %4052  ;;  %v1456_v63 = vsel %vm1449_vm7, %v1423_v9, %v4044_v51  ;;  %v4045_v51 = vunpack.i.h.bf16 %v5393_v13  ;;  %v5634_v18 = vpack.i.bf16 %v5583_v62, %v4949_v48  ;;  %v5639_v13 = vsel %vm585_vm2, %v636_v21, %v637_v4 }
  0xf5   : > { %4257 = vrot.lane.b32.xlu0 %v5564_v12, %s4683_s15  ;;  %1661 = vmatmul.f32.gmra.mxu0 %v1521_v37  ;;  %v4054_v32 = vunpack.i.l.bf16 %v4053_v15  ;;  %v4055_v28 = vunpack.i.h.bf16 %v4053_v15  ;;  %v5663_v15 = vpop.f32.mrf.mxu1 }
  0xf6   : > { %3746 = vmatmul.msk.f32.gmra.mxu1 %vm1321_vm3, %v5639_v13 }
  0xf7   : > { %v4048_v54 = vpop.permute.xlu0 %4047  ;;  %4282 = vrot.lane.b32.xlu2 %v4281_v41, %s4678_s10 }
  0xf8   : > { %v4049_v19 = vunpack.i.l.bf16 %v4048_v54  ;;  %v4050_v9 = vunpack.i.h.bf16 %v4048_v54 }
  0xf9   : > { %v5606_v22 = vpop.permute.xlu2 %4117 }
  0xfa   : > { %4277 = vrot.lane.b32.xlu1 %v5471_v40, %s4679_s11  ;;  %v1489_v41 = vsel %vm1482_vm8, %v1456_v63, %v4049_v19  ;;  %v1424_v40 = vsel %vm1416_vm6, %v1391_v10, %v4040_v25  ;;  %v1328_v63 = vsel %vm1321_vm3, %v4850_v2, %v3899_v35  ;;  %v3900_v35 = vunpack.i.h.bf16 %v5202_v44 }
  0xfb   : > { %v1522_v37 = vsel %vm1515_vm9, %v1489_v41, %v4054_v32  ;;  %v4059_v32 = vunpack.i.l.bf16 %v5447_v24  ;;  %v1457_v25 = vsel %vm1449_vm7, %v1424_v40, %v4045_v51  ;;  %v4060_v40 = vunpack.i.h.bf16 %v5447_v24 }
  0xfc   : > { %v5624_v46 = vpop.permute.xlu1 %4067  ;;  %v1490_v10 = vsel %vm1482_vm8, %v1457_v25, %v4050_v9  ;;  %v1329_v44 = vsel %vm1321_vm3, %v4857_v7, %v3900_v35 }
  0xfd   : > { %4272 = vrot.lane.b32.xlu0 %v5489_v17, %s4680_s12  ;;  %1664 = vmatmul.f32.gmra.mxu0 %v1522_v37  ;;  %v5644_v17 = vsel %vm585_vm2, %v651_v0, %v652_v39  ;;  %v5661_v0 = vsel %vm319_vm0, %v363_v43, %v429_v58  ;;  %v1359_v2 = vsel %vm1352_vm4, %v1328_v63, %v4059_v32  ;;  %v4069_v37 = vunpack.i.l.bf16 %v5624_v46 }
  0xfe   : > { %v5653_v21 = vpack.i.bf16 %v5644_v17, %v5639_v13  ;;  %v1523_v57 = vsel %vm1515_vm9, %v1490_v10, %v4055_v28  ;;  %v583_v9 = vrot.slane %v5661_v0, 1  ;;  %v1360_v63 = vsel %vm1352_vm4, %v1329_v44, %v4060_v40 }
  0xff   : > { %v4063_v54 = vpop.permute.xlu0 %4062  ;;  %4297 = vrot.lane.b32.xlu2 %v5621_v45, %s4682_s14  ;;  %v4104_v13 = vunpack.i.l.bf16 %v5567_v31 }
 0x100   : > { %v4064_v19 = vunpack.i.l.bf16 %v4063_v54  ;;  %v4065_v58 = vunpack.i.h.bf16 %v4063_v54  ;;  %v5687_v24 = vsel %vm509_vm1, %v581_v1, %v583_v9  ;;  %v4070_v54 = vunpack.i.h.bf16 %v5624_v46 }
 0x101   : > { %v5656_v41 = vpop.permute.xlu2 %4132  ;;  %v639_v1 = vrot.slane %v4984_v29, 2  ;;  %v654_v46 = vrot.slane %v5513_v5, 2  ;;  %v5707_v35 = vpack.i.bf16 %v5687_v24, %v4981_v27  ;;  %v3904_v9 = vunpack.i.l.bf16 %v5094_v8 }
 0x102   : > { %4292 = vrot.lane.b32.xlu1 %v5634_v18, %s4683_s15  ;;  %v1392_v51 = vsel %vm1383_vm5, %v1359_v2, %v4064_v19  ;;  %v1393_v7 = vsel %vm1383_vm5, %v1360_v63, %v4065_v58  ;;  %v4089_v5 = vunpack.i.l.bf16 %v5527_v50  ;;  %v253_v63 = vld [vmem:[%s4770_s9 + $0xf0] sm:$0xff] }
 0x103   : > { %v1425_v32 = vsel %vm1416_vm6, %v1392_v51, %v4069_v37  ;;  %v5694_v37 = vpop.f32.mrf.mxu1  ;;  %v1426_v29 = vsel %vm1416_vm6, %v1393_v7, %v4070_v54  ;;  %v640_v27 = vsel %vm585_vm2, %v637_v4, %v639_v1  ;;  %v3905_v54 = vunpack.i.h.bf16 %v5094_v8 }
 0x104   : > { %v4083_v43 = vpop.permute.xlu1 %4082  ;;  %v1458_v10 = vsel %vm1449_vm7, %v1425_v32, %v4074_v52  ;;  %v656_v8 = vrot.slane %v5583_v62, 2  ;;  %3747 = vmatmul.msk.f32.gmra.mxu1 %vm1321_vm3, %v640_v27 }
 0x105   : > { %4287 = vrot.lane.b32.xlu0 %v5653_v21, %s4684_s16  ;;  %1667 = vmatmul.f32.gmra.mxu0 %v1523_v57  ;;  %v4084_v25 = vunpack.i.l.bf16 %v4083_v43  ;;  %v4075_v57 = vunpack.i.h.bf16 %v5492_v23  ;;  %v5727_v23 = vsel %vm585_vm2, %v652_v39, %v654_v46  ;;  %v4085_v52 = vunpack.i.h.bf16 %v4083_v43 }
 0x107   : > { %v4078_v19 = vpop.permute.xlu0 %4077  ;;  %4312 = vrot.lane.b32.xlu2 %v5555_v60, %s4679_s11  ;;  %v1459_v32 = vsel %vm1449_vm7, %v1426_v29, %v4075_v57  ;;  %v365_v57 = vrot.slane %v253_v63, 7  ;;  %v657_v29 = vrot.slane %v5572_v34, 2 }
 0x108   : > { %v4079_v28 = vunpack.i.l.bf16 %v4078_v19  ;;  %v4080_v40 = vunpack.i.h.bf16 %v4078_v19  ;;  %v5735_v19 = vpack.i.bf16 %v5727_v23, %v640_v27 }
 0x109   : > { %v5692_v2 = vpop.permute.xlu2 %4147 }
 0x10a   : > { %4307 = vrot.lane.b32.xlu1 %v5564_v12, %s4680_s12  ;;  %v1491_v60 = vsel %vm1482_vm8, %v1458_v10, %v4079_v28  ;;  %v5719_v12 = vpack.i.bf16 %v5572_v34, %v4957_v61  ;;  %v1492_v4 = vsel %vm1482_vm8, %v1459_v32, %v4080_v40 }
 0x10b   : > { %v1524_v51 = vsel %vm1515_vm9, %v1491_v60, %v4084_v25  ;;  %v1330_v25 = vsel %vm1321_vm3, %v4781_v14, %v3904_v9  ;;  %v5740_v39 = vpop.f32.mrf.mxu1  ;;  %v1525_v10 = vsel %vm1515_vm9, %v1492_v4, %v4085_v52  ;;  %v4090_v60 = vunpack.i.h.bf16 %v5527_v50  ;;  %v7969_v50 = vld [vmem:[#allocation5_spill] sm:$0xff] }
 0x10c   : > { %v5710_v30 = vpop.permute.xlu1 %4097  ;;  %v1361_v43 = vsel %vm1352_vm4, %v1330_v25, %v4089_v5  ;;  %v1331_v5 = vsel %vm1321_vm3, %v7969_v50, %v3905_v54 }
 0x10d   : > { %4302 = vrot.lane.b32.xlu0 %v5507_v59, %s4681_s13  ;;  %1670 = vmatmul.f32.gmra.mxu0 %v1524_v51  ;;  %v4099_v28 = vunpack.i.l.bf16 %v5710_v30  ;;  %v286_v51 = vrot.slane %v253_v63, 1  ;;  %v4100_v32 = vunpack.i.h.bf16 %v5710_v30  ;;  %v5785_v63 = vsel %vm585_vm2, %v656_v8, %v657_v29 }
 0x10f   : > { %v4093_v59 = vpop.permute.xlu0 %4092  ;;  %4327 = vrot.lane.b32.xlu2 %v5707_v35, %s4682_s14 }
 0x110   : > { %v4094_v58 = vunpack.i.l.bf16 %v4093_v59  ;;  %v4095_v1 = vunpack.i.h.bf16 %v4093_v59  ;;  %v1362_v59 = vsel %vm1352_vm4, %v1331_v5, %v4090_v60  ;;  %v7970_v60 = vld [vmem:[#allocation14_spill] sm:$0xff] }
 0x111   : > { %v5738_v44 = vpop.permute.xlu2 %4162 }
 0x112   : > { %4322 = vrot.lane.b32.xlu1 %v5719_v12, %s4683_s15  ;;  %v1394_v14 = vsel %vm1383_vm5, %v1361_v43, %v4094_v58  ;;  %v5764_v58 = vld [vmem:[%s4770_s9 + $0xf8] sm:$0xff]  ;;  %s3725_s9 = sshll.u32 %s215_s26, 8 }
 0x113   : > { %v1427_v46 = vsel %vm1416_vm6, %v1394_v14, %v4099_v28  ;;  %v5771_v43 = vpop.f32.mrf.mxu1  ;;  %v5779_v14 = vsel %vm319_vm0, %v286_v51, %v365_v57  ;;  %v366_v54 = vrot.slane %v5764_v58, 7  ;;  %v4119_v51 = vunpack.i.l.bf16 %v5606_v22 }
 0x114   : > { %v4113_v7 = vpop.permute.xlu1 %4112  ;;  %v1460_v25 = vsel %vm1449_vm7, %v1427_v46, %v4104_v13  ;;  %v4356_v27 = vpack.i.bf16 %v5779_v14, %v5345_v55  ;;  %v3909_v13 = vunpack.i.l.bf16 %v7970_v60 }
 0x115   : > { %4317 = vrot.lane.b32.xlu0 %v5735_v19, %s4684_s16  ;;  %1673 = vmatmul.f32.gmra.mxu0 %v1525_v10  ;;  %v4114_v9 = vunpack.i.l.bf16 %v4113_v7  ;;  %v4105_v10 = vunpack.i.h.bf16 %v5567_v31  ;;  %v5803_v31 = vsel %vm319_vm0, %v365_v57, %v366_v54 }
 0x117   : > { %v4108_v40 = vpop.permute.xlu0 %4107  ;;  %4342 = vrot.lane.b32.xlu2 %v5621_v45, %s4679_s11  ;;  %v1395_v45 = vsel %vm1383_vm5, %v1362_v59, %v4095_v1 }
 0x118   : > { %v4109_v52 = vunpack.i.l.bf16 %v4108_v40  ;;  %v4110_v1 = vunpack.i.h.bf16 %v4108_v40  ;;  %v1428_v46 = vsel %vm1416_vm6, %v1395_v45, %v4100_v32  ;;  %v4115_v40 = vunpack.i.h.bf16 %v4113_v7 }
 0x119   : > { %v5769_v4 = vpop.permute.xlu2 %4177  ;;  %v4346_v32 = vpack.i.bf16 %v5542_v42, %v5461_v49  ;;  %v3910_v42 = vunpack.i.h.bf16 %v7970_v60 }
 0x11a   : > { %4337 = vrot.lane.b32.xlu1 %v5634_v18, %s4680_s12  ;;  %v1493_v28 = vsel %vm1482_vm8, %v1460_v25, %v4109_v52  ;;  %v7972_v52 = vld [vmem:[#allocation6_spill] sm:$0xff] }
 0x11b   : > { %v1526_v30 = vsel %vm1515_vm9, %v1493_v28, %v4114_v9  ;;  %v7971_v9 = vld [vmem:[#allocation21_spill] sm:$0xff]  ;;  %v1332_v59 = vsel %vm1321_vm3, %v7972_v52, %v3909_v13  ;;  %v5812_v45 = vpop.f32.mrf.mxu1  ;;  %v663_v28 = vrot.slane %v5779_v14, 1 }
 0x11c   : > { %v5791_v18 = vpop.permute.xlu1 %4127  ;;  %v4351_v8 = vpack.i.bf16 %v5785_v63, %v7971_v9  ;;  %3748 = vmatmul.msk.f32.gmra.mxu1 %vm1321_vm3, %v7971_v9  ;;  %v1363_v57 = vsel %vm1352_vm4, %v1332_v59, %v4119_v51 }
 0x11d   : > { %4332 = vrot.lane.b32.xlu0 %v5653_v21, %s4681_s13  ;;  %1676 = vmatmul.f32.gmra.mxu0 %v1526_v30  ;;  %v1461_v21 = vsel %vm1449_vm7, %v1428_v46, %v4105_v10  ;;  %v4129_v7 = vunpack.i.l.bf16 %v5791_v18  ;;  %v664_v30 = vrot.slane %v5803_v31, 1  ;;  %v4134_v46 = vunpack.i.l.bf16 %v5656_v41 }
 0x11e   : > { %v1494_v25 = vsel %vm1482_vm8, %v1461_v21, %v4110_v1  ;;  %v4120_v1 = vunpack.i.h.bf16 %v5606_v22  ;;  %v7973_v22 = vld [vmem:[#allocation7_spill] sm:$0xff]  ;;  %v4130_v59 = vunpack.i.h.bf16 %v5791_v18  ;;  %v430_v18 = vrot.slane %v5764_v58, 5 }
 0x11f   : > { %v4123_v50 = vpop.permute.xlu0 %4122  ;;  %4357 = vrot.lane.b32.xlu2 %v4356_v27, %s4683_s15  ;;  %v1527_v10 = vsel %vm1515_vm9, %v1494_v25, %v4115_v40  ;;  %v5832_v9 = vsel %vm509_vm1, %v663_v28, %v664_v30  ;;  %v659_v40 = vrot.slane %v5661_v0, 2  ;;  %v1333_v21 = vsel %vm1321_vm3, %v7973_v22, %v3910_v42 }
 0x120   : > { %v4124_v5 = vunpack.i.l.bf16 %v4123_v50  ;;  %v4125_v51 = vunpack.i.h.bf16 %v4123_v50  ;;  %v1364_v50 = vsel %vm1352_vm4, %v1333_v21, %v4120_v1  ;;  %v4386_v28 = vpack.i.bf16 %v5803_v31, %v5342_v38  ;;  %v7975_v21 = vld [vmem:[#allocation12_spill] sm:$0xff] }
 0x121   : > { %v5822_v49 = vpop.permute.xlu2 %4192 }
 0x122   : > { %4352 = vrot.lane.b32.xlu1 %v4351_v8, %s4684_s16  ;;  %v1396_v27 = vsel %vm1383_vm5, %v1363_v57, %v4124_v5  ;;  %v1397_v0 = vsel %vm1383_vm5, %v1364_v50, %v4125_v51  ;;  %v4149_v51 = vunpack.i.l.bf16 %v5692_v2 }
 0x123   : > { %v1429_v8 = vsel %vm1416_vm6, %v1396_v27, %v4129_v7  ;;  %v5845_v57 = vpop.f32.mrf.mxu1  ;;  %v4135_v27 = vunpack.i.h.bf16 %v5656_v41  ;;  %v5876_v41 = vsel %vm319_vm0, %v366_v54, %v430_v18  ;;  %v4150_v18 = vunpack.i.h.bf16 %v5692_v2 }
 0x124   : > { %v4143_v13 = vpop.permute.xlu1 %4142  ;;  %v1462_v25 = vsel %vm1449_vm7, %v1429_v8, %v4134_v46  ;;  %3749 = vmatmul.msk.f32.gmra.mxu1 %vm1321_vm3, %v5441_v6 }
 0x125   : > { %4347 = vrot.lane.b32.xlu0 %v4346_v32, %s4678_s10  ;;  %1679 = vmatmul.f32.gmra.mxu0 %v1527_v10  ;;  %v4144_v5 = vunpack.i.l.bf16 %v4143_v13  ;;  %v4361_v32 = vpack.i.bf16 %v5832_v9, %v5407_v11  ;;  %v5857_v11 = vsel %vm585_vm2, %v657_v29, %v659_v40  ;;  %v7974_v10 = vld [vmem:[#allocation18_spill] sm:$0xff]  ;;  %v1430_v29 = vsel %vm1416_vm6, %v1397_v0, %v4130_v59 }
 0x126   : > { %v4381_v8 = vpack.i.bf16 %v5857_v11, %v5441_v6  ;;  %v1463_v22 = vsel %vm1449_vm7, %v1430_v29, %v4135_v27  ;;  %v7976_v6 = vld [vmem:[#allocation22_spill] sm:$0xff]  ;;  %v3915_v0 = vunpack.i.h.bf16 %v7974_v10 }
 0x127   : > { %v4138_v60 = vpop.permute.xlu0 %4137  ;;  %4372 = vrot.lane.b32.xlu2 %v5719_v12, %s4680_s12 }
 0x128   : > { %v4139_v52 = vunpack.i.l.bf16 %v4138_v60  ;;  %v4140_v1 = vunpack.i.h.bf16 %v4138_v60  ;;  %v4145_v60 = vunpack.i.h.bf16 %v4143_v13  ;;  %v666_v13 = vrot.slane %v5876_v41, 1 }
 0x129   : > { %v5867_v46 = vpop.permute.xlu2 %4207 }
 0x12a   : > { %4367 = vrot.lane.b32.xlu1 %v5735_v19, %s4681_s13  ;;  %v1495_v12 = vsel %vm1482_vm8, %v1462_v25, %v4139_v52  ;;  %v3914_v19 = vunpack.i.l.bf16 %v7974_v10  ;;  %v1496_v50 = vsel %vm1482_vm8, %v1463_v22, %v4140_v1  ;;  %v4401_v25 = vpack.i.bf16 %v5857_v11, %v5785_v63 }
 0x12b   : > { %v1528_v7 = vsel %vm1515_vm9, %v1495_v12, %v4144_v5  ;;  %v5883_v59 = vpop.f32.mrf.mxu1  ;;  %v1529_v12 = vsel %vm1515_vm9, %v1496_v50, %v4145_v60  ;;  %v4396_v10 = vpack.i.bf16 %v5687_v24, %v5602_v56  ;;  %v668_v60 = vrot.slane %v5779_v14, 2 }
 0x12c   : > { %v5863_v42 = vpop.permute.xlu1 %4157  ;;  %v1334_v52 = vsel %vm1321_vm3, %v7975_v21, %v3914_v19  ;;  %3750 = vmatmul.msk.f32.gmra.mxu1 %vm1321_vm3, %v7976_v6  ;;  %v5903_v19 = vsel %vm509_vm1, %v664_v30, %v666_v13  ;;  %v669_v30 = vrot.slane %v5803_v31, 2 }
 0x12d   : > { %4362 = vrot.lane.b32.xlu0 %v4361_v32, %s4682_s14  ;;  %1682 = vmatmul.f32.gmra.mxu0 %v1528_v7  ;;  %v1365_v58 = vsel %vm1352_vm4, %v1334_v52, %v4149_v51  ;;  %v4159_v54 = vunpack.i.l.bf16 %v5863_v42  ;;  %v4160_v22 = vunpack.i.h.bf16 %v5863_v42  ;;  %v4391_v56 = vpack.i.bf16 %v5903_v19, %v5503_v36 }
 0x12e   : > { %v4165_v42 = vunpack.i.h.bf16 %v5738_v44  ;;  %v5930_v36 = vsel %vm585_vm2, %v668_v60, %v669_v30 }
 0x12f   : > { %v4153_v5 = vpop.permute.xlu0 %4152  ;;  %4387 = vrot.lane.b32.xlu2 %v4386_v28, %s4683_s15  ;;  %v4164_v28 = vunpack.i.l.bf16 %v5738_v44 }
 0x130   : > { %v4154_v40 = vunpack.i.l.bf16 %v4153_v5  ;;  %v4155_v27 = vunpack.i.h.bf16 %v4153_v5 }
 0x131   : > { %v5908_v51 = vpop.permute.xlu2 %4222 }
 0x132   : > { %4382 = vrot.lane.b32.xlu1 %v4381_v8, %s4684_s16  ;;  %v1398_v32 = vsel %vm1383_vm5, %v1365_v58, %v4154_v40  ;;  %v7977_v8 = vld [vmem:[#allocation13_spill] sm:$0xff] }
 0x133   : > { %v1431_v1 = vsel %vm1416_vm6, %v1398_v32, %v4159_v54  ;;  %v5926_v6 = vpop.f32.mrf.mxu1  ;;  %v7978_v54 = vld [vmem:[#allocation17_spill] sm:$0xff] }
 0x134   : > { %v4173_v7 = vpop.permute.xlu1 %4172  ;;  %v1464_v24 = vsel %vm1449_vm7, %v1431_v1, %v4164_v28  ;;  %3751 = vmatmul.msk.f32.gmra.mxu1 %vm1321_vm3, %v5484_v3  ;;  %v3919_v13 = vunpack.i.l.bf16 %v7978_v54  ;;  %v671_v28 = vrot.slane %v5876_v41, 2 }
 0x135   : > { %4377 = vrot.lane.b32.xlu0 %v5707_v35, %s4679_s11  ;;  %1685 = vmatmul.f32.gmra.mxu0 %v1529_v12  ;;  %v4174_v29 = vunpack.i.l.bf16 %v4173_v7  ;;  %v1335_v35 = vsel %vm1321_vm3, %v7977_v8, %v3915_v0  ;;  %v4175_v12 = vunpack.i.h.bf16 %v4173_v7  ;;  %v3920_v7 = vunpack.i.h.bf16 %v7978_v54 }
 0x136   : > { %v1366_v40 = vsel %vm1352_vm4, %v1335_v35, %v4150_v18  ;;  %v4180_v35 = vunpack.i.h.bf16 %v5769_v4 }
 0x137   : > { %v4168_v2 = vpop.permute.xlu0 %4167  ;;  %4402 = vrot.lane.b32.xlu2 %v4401_v25, %s4681_s13  ;;  %v1399_v21 = vsel %vm1383_vm5, %v1366_v40, %v4155_v27  ;;  %v4179_v25 = vunpack.i.l.bf16 %v5769_v4  ;;  %v7979_v27 = vld [vmem:[#allocation10_spill] sm:$0xff]  ;;  %v5955_v40 = vsel %vm585_vm2, %v669_v30, %v671_v28  ;;  %v5968_v30 = vld [vmem:[%s7858_s2] ss:$0 sm:$0xff]  ;;  %v7981_v28 = vld [vmem:[#allocation15_spill] sm:$0xff] }
 0x138   : > { %v4169_v5 = vunpack.i.l.bf16 %v4168_v2  ;;  %v4170_v32 = vunpack.i.h.bf16 %v4168_v2  ;;  %v1432_v3 = vsel %vm1416_vm6, %v1399_v21, %v4160_v22  ;;  %v1336_v1 = vsel %vm1321_vm3, %v7979_v27, %v3919_v13 }
 0x139   : > { %v1465_v18 = vsel %vm1449_vm7, %v1432_v3, %v4165_v42  ;;  %v1367_v2 = vsel %vm1352_vm4, %v1336_v1, %v4179_v25  ;;  %v4195_v25 = vunpack.i.h.bf16 %v5822_v49  ;;  %v3924_v27 = vunpack.i.l.bf16 %v7981_v28 }
 0x13a   : > { %v1497_v52 = vsel %vm1482_vm8, %v1464_v24, %v4169_v5  ;;  %4397 = vrot.lane.b32.xlu1 %v4396_v10, %s4678_s10  ;;  %v5942_v10 = vpop.permute.xlu2 %4237  ;;  %v7980_v24 = vld [vmem:[#allocation11_spill] sm:$0xff]  ;;  %s7561_s10 = scalar_lea.vmem [#allocation2], %s3725_s9 }
 0x13b   : > { %v1530_v50 = vsel %vm1515_vm9, %v1497_v52, %v4174_v29  ;;  %v1498_v29 = vsel %vm1482_vm8, %v1465_v18, %v4170_v32  ;;  %v1337_v4 = vsel %vm1321_vm3, %v7980_v24, %v3920_v7 }
 0x13c   : > { %v4188_v58 = vpop.permute.xlu1 %4187  ;;  %3752 = vmatmul.msk.f32.gmra.mxu1 %vm1321_vm3, %v5644_v17  ;;  %v1531_v5 = vsel %vm1515_vm9, %v1498_v29, %v4175_v12  ;;  %v4194_v17 = vunpack.i.l.bf16 %v5822_v49  ;;  %v4210_v49 = vunpack.i.h.bf16 %v5867_v46 }
 0x13d   : > { %4392 = vrot.lane.b32.xlu0 %v4391_v56, %s4682_s14  ;;  %1688 = vmatmul.f32.gmra.mxu0 %v1530_v50  ;;  %v4189_v8 = vunpack.i.l.bf16 %v4188_v58  ;;  %v4190_v50 = vunpack.i.h.bf16 %v4188_v58 }
 0x13f   : > { %v4183_v0 = vpop.permute.xlu0 %4182  ;;  %1105 = vrot.lane.b32.xlu2 %v5930_v36, %s4684_s16 }
 0x140   : > { %v4184_v44 = vunpack.i.l.bf16 %v4183_v0  ;;  %v4185_v22 = vunpack.i.h.bf16 %v4183_v0 }
 0x142   : > { %1009 = vrot.lane.b32.xlu1 %v5832_v9, %s4679_s11  ;;  %v1400_v41 = vsel %vm1383_vm5, %v1367_v2, %v4184_v44  ;;  %v5960_v9 = vpop.f32.mrf.mxu1  ;;  %v5981_v0 = vpop.permute.xlu2 %4252 }
 0x143   : > { %v1433_v56 = vsel %vm1416_vm6, %v1400_v41, %v4189_v8 }
 0x144   : > { %v4203_v60 = vpop.permute.xlu1 %4202  ;;  %v1466_v13 = vsel %vm1449_vm7, %v1433_v56, %v4194_v17  ;;  %3753 = vmatmul.msk.f32.gmra.mxu1 %vm1321_vm3, %v5727_v23  ;;  %v7982_v23 = vld [vmem:[#allocation16_spill] sm:$0xff] }
 0x145   : > { %913 = vrot.lane.b32.xlu0 %v5779_v14, %s4680_s12  ;;  %1691 = vmatmul.f32.gmra.mxu0 %v1531_v5  ;;  %v4204_v21 = vunpack.i.l.bf16 %v4203_v60  ;;  %v1368_v14 = vsel %vm1352_vm4, %v1337_v4, %v4180_v35  ;;  %v3939_v1 = vunpack.i.l.bf16 %v7982_v23  ;;  %v4205_v5 = vunpack.i.h.bf16 %v4203_v60  ;;  %v7983_v56 = vld [vmem:[#allocation8_spill] sm:$0xff] }
 0x146   : > { %v1401_v54 = vsel %vm1383_vm5, %v1368_v14, %v4185_v22 }
 0x147   : > { %v4198_v52 = vpop.permute.xlu0 %4197  ;;  %1107 = vrot.lane.b32.xlu2 %v5955_v40, %s4684_s16  ;;  %v1434_v18 = vsel %vm1416_vm6, %v1401_v54, %v4190_v50  ;;  %s3656_s16 = sshll.u32 %s7561_s10, 4  ;;  %s3657_s16 = int_to_ptr.vmem [resolvable:$true] %s3656_s16 }
 0x148   : > { %v4199_v42 = vunpack.i.l.bf16 %v4198_v52  ;;  %v4200_v29 = vunpack.i.h.bf16 %v4198_v52  ;;  %v1467_v41 = vsel %vm1449_vm7, %v1434_v18, %v4195_v25 }
 0x14a   : > { %v1647_v32 = vpop.f32.mrf.mxu0  ;;  %v1499_v3 = vsel %vm1482_vm8, %v1466_v13, %v4199_v42  ;;  %1011 = vrot.lane.b32.xlu1 %v5903_v19, %s4679_s11  ;;  %v4209_v19 = vunpack.i.l.bf16 %v5867_v46  ;;  %v5994_v35 = vpop.f32.mrf.mxu1  ;;  %v1500_v24 = vsel %vm1482_vm8, %v1467_v41, %v4200_v29 }
 0x14b   : > { %v1648_v58 = vadd.f32 %v5968_v30, %v1647_v32  ;;  %v1532_v12 = vsel %vm1515_vm9, %v1499_v3, %v4204_v21  ;;  %v4225_v32 = vunpack.i.h.bf16 %v5908_v51  ;;  %v4224_v3 = vunpack.i.l.bf16 %v5908_v51  ;;  %v6011_v25 = vpop.permute.xlu2 %4267 }
 0x14c   : > { %v4218_v44 = vpop.permute.xlu1 %4217  ;;  %3754 = vmatmul.msk.f32.gmra.mxu1 %vm1321_vm3, %v5785_v63 }
 0x14d   : > { %v1761_v2 = vadd.f32 %v5663_v15, %v1648_v58  ;;  %915 = vrot.lane.b32.xlu0 %v5803_v31, %s4680_s12  ;;  %1694 = vmatmul.f32.gmra.mxu0 %v1532_v12  ;;  %v1338_v15 = vsel %vm1321_vm3, %v7983_v56, %v3924_v27  ;;  %v1344_v31 = vsel %vm1321_vm3, %v4949_v48, %v3939_v1  ;;  %v4220_v21 = vunpack.i.h.bf16 %v4218_v44  ;;  %s3798_s12 = sshll.u32 %s4738_s22, 8  ;;  %s3644_s22 = scalar_lea.sflag [#allocation3], %s215_s26 }
 0x14e   : > { %v1375_v46 = vsel %vm1352_vm4, %v1344_v31, %v4210_v49  ;;  %v1369_v4 = vsel %vm1352_vm4, %v1338_v15, %v4209_v19  ;;  %v4219_v60 = vunpack.i.l.bf16 %v4218_v44  ;;  %v1533_v48 = vsel %vm1515_vm9, %v1500_v24, %v4205_v5  ;;  %s3655_s15 = scalar_lea.hbm %s7861_s5, %s3798_s12 }
 0x14f   : > { %v1888_v8 = vmul.f32 0.01, %v1761_v2  ;;  %v4213_v7 = vpop.permute.xlu0 %4212  ;;  %vm1856_vm10 = vcmp.ge.f32.partialorder %v1761_v2, 0.0 }
 0x150   : > { %v4215_v17 = vunpack.i.h.bf16 %v4213_v7  ;;  %v4214_v22 = vunpack.i.l.bf16 %v4213_v7 }
 0x151   : > { %v1920_v14 = vsel %vm1856_vm10, %v1761_v2, %v1888_v8 }
 0x152   : > { %v1650_v52 = vpop.f32.mrf.mxu0  ;;  %v1408_v50 = vsel %vm1383_vm5, %v1375_v46, %v4215_v17  ;;  %v1402_v42 = vsel %vm1383_vm5, %v1369_v4, %v4214_v22  ;;  %v1969_v12 = vrot.slane %v1920_v14, 1  ;;  %v2019_v44 = vrot.slane %v1920_v14, 7  ;;  %v6020_v41 = vpop.f32.mrf.mxu1 }
 0x153   : > { %v1651_v54 = vadd.f32 %v5968_v30, %v1650_v52  ;;  %v1441_v18 = vsel %vm1416_vm6, %v1408_v50, %v4220_v21  ;;  %v1435_v27 = vsel %vm1416_vm6, %v1402_v42, %v4219_v60  ;;  %v3925_v4 = vunpack.i.h.bf16 %v7981_v28 }
 0x154   : > { %v4233_v13 = vpop.permute.xlu1 %4232  ;;  %v1474_v51 = vsel %vm1449_vm7, %v1441_v18, %v4225_v32  ;;  %v6026_v15 = vsel %vm319_vm0, %v1969_v12, %v2019_v44  ;;  %v3940_v21 = vunpack.i.h.bf16 %v7982_v23  ;;  %v4240_v14 = vunpack.i.h.bf16 %v5942_v10  ;;  %v7985_v12 = vld [vmem:[#allocation9_spill] sm:$0xff] }
 0x155   : > { %v1764_v58 = vadd.f32 %v5694_v37, %v1651_v54  ;;  %1697 = vmatmul.f32.gmra.mxu0 %v1533_v48  ;;  %v4235_v29 = vunpack.i.h.bf16 %v4233_v13  ;;  %v4234_v2 = vunpack.i.l.bf16 %v4233_v13  ;;  %v1468_v37 = vsel %vm1449_vm7, %v1435_v27, %v4224_v3  ;;  %v6042_v48 = vpop.permute.xlu2 %4282 }
 0x156   : > { %v2211_v42 = vrot.slane %v6026_v15, 1  ;;  %v4239_v28 = vunpack.i.l.bf16 %v5942_v10 }
 0x157   : > { %vm1857_vm11 = vcmp.ge.f32.partialorder %v1764_v58, 0.0  ;;  %v1889_v1 = vmul.f32 0.01, %v1764_v58  ;;  %v4228_v49 = vpop.permute.xlu0 %4227 }
 0x158   : > { %v4230_v19 = vunpack.i.h.bf16 %v4228_v49  ;;  %v4229_v8 = vunpack.i.l.bf16 %v4228_v49 }
 0x159   : > { %v6016_v7 = vsel %vm1857_vm11, %v1764_v58, %v1889_v1 }
 0x15a   : > { %v2020_v5 = vrot.slane %v6016_v7, 7  ;;  %v1653_v17 = vpop.f32.mrf.mxu0  ;;  %v1507_v22 = vsel %vm1482_vm8, %v1474_v51, %v4230_v19  ;;  %v1501_v56 = vsel %vm1482_vm8, %v1468_v37, %v4229_v8  ;;  %v6061_v8 = vpop.f32.mrf.mxu1  ;;  %v4255_v51 = vunpack.i.h.bf16 %v5981_v0 }
 0x15b   : > { %v1654_v31 = vadd.f32 %v5968_v30, %v1653_v17  ;;  %v1540_v24 = vsel %vm1515_vm9, %v1507_v22, %v4235_v29  ;;  %v1534_v46 = vsel %vm1515_vm9, %v1501_v56, %v4234_v2  ;;  %v4254_v17 = vunpack.i.l.bf16 %v5981_v0 }
 0x15c   : > { %1718 = vmatmul.f32.vlgmr.msra.gmra.mxu3 %v1540_v24  ;;  %v4248_v60 = vpop.permute.xlu1 %4247  ;;  %v6036_v52 = vsel %vm319_vm0, %v2019_v44, %v2020_v5  ;;  %v1339_v44 = vsel %vm1321_vm3, %v7985_v12, %v3925_v4 }
 0x15d   : > { %v1767_v50 = vadd.f32 %v5740_v39, %v1654_v31  ;;  %1700 = vmatmul.f32.gmra.mxu0 %v1534_v46  ;;  %v2212_v54 = vrot.slane %v6036_v52, 1  ;;  %v1345_v39 = vsel %vm1321_vm3, %v4957_v61, %v3940_v21  ;;  %v1370_v18 = vsel %vm1352_vm4, %v1339_v44, %v4239_v28 }
 0x15e   : > { %v1376_v10 = vsel %vm1352_vm4, %v1345_v39, %v4240_v14  ;;  %v4250_v1 = vunpack.i.h.bf16 %v4248_v60  ;;  %v4249_v29 = vunpack.i.l.bf16 %v4248_v60 }
 0x15f   : > { %vm1858_vm12 = vcmp.ge.f32.partialorder %v1767_v50, 0.0  ;;  %v1890_v23 = vmul.f32 0.01, %v1767_v50  ;;  %v4243_v13 = vpop.permute.xlu0 %4242  ;;  %v6048_v32 = vsel %vm509_vm1, %v2211_v42, %v2212_v54 }
 0x160   : > { %7984 = vst [vmem:[#allocation5_spill] sm:$0xff] %v6048_v32  ;;  %v4245_v3 = vunpack.i.h.bf16 %v4243_v13  ;;  %v4244_v58 = vunpack.i.l.bf16 %v4243_v13  ;;  %2434 = vrot.lane.b32.xlu2 %v6048_v32, %s4679_s11 }
 0x161   : > { %v1922_v27 = vsel %vm1858_vm12, %v1767_v50, %v1890_v23  ;;  %v6068_v50 = vpop.permute.xlu2 %4297 }
 0x162   : > { %v1656_v2 = vpop.f32.mrf.mxu0  ;;  %v1409_v49 = vsel %vm1383_vm5, %v1376_v10, %v4245_v3  ;;  %v1403_v61 = vsel %vm1383_vm5, %v1370_v18, %v4244_v58  ;;  %v1968_v22 = vrot.slane %v1922_v27, 1  ;;  %v2016_v56 = vrot.slane %v1922_v27, 7 }
 0x163   : > { %v1657_v19 = vadd.f32 %v5968_v30, %v1656_v2  ;;  %v1436_v24 = vsel %vm1416_vm6, %v1403_v61, %v4249_v29  ;;  %v1442_v46 = vsel %vm1416_vm6, %v1409_v49, %v4250_v1  ;;  %v2113_v10 = vrot.slane %v6016_v7, 5 }
 0x164   : > { %v4263_v37 = vpop.permute.xlu1 %4262  ;;  %v1469_v0 = vsel %vm1449_vm7, %v1436_v24, %v4254_v17  ;;  %v1475_v13 = vsel %vm1449_vm7, %v1442_v46, %v4255_v51  ;;  %v4284_v61 = vunpack.i.l.bf16 %v6042_v48  ;;  %v6091_v17 = vpop.f32.mrf.mxu1 }
 0x165   : > { %v1770_v31 = vadd.f32 %v5771_v43, %v1657_v19  ;;  %v4265_v21 = vunpack.i.h.bf16 %v4263_v37  ;;  %v4264_v60 = vunpack.i.l.bf16 %v4263_v37  ;;  %v6073_v43 = vsel %vm319_vm0, %v1968_v22, %v2016_v56  ;;  %v7986_v22 = vld [vmem:[#allocation20_spill] sm:$0xff] }
 0x166   : > { %v2206_v37 = vrot.slane %v6073_v43, 1 }
 0x167   : > { %vm1859_vm13 = vcmp.ge.f32.partialorder %v1770_v31, 0.0  ;;  %v1891_v4 = vmul.f32 0.01, %v1770_v31  ;;  %v4258_v14 = vpop.permute.xlu0 %4257 }
 0x168   : > { %v4260_v42 = vunpack.i.h.bf16 %v4258_v14  ;;  %v4259_v28 = vunpack.i.l.bf16 %v4258_v14 }
 0x169   : > { %v1923_v23 = vsel %vm1859_vm13, %v1770_v31, %v1891_v4  ;;  %v3929_v31 = vunpack.i.l.bf16 %v7986_v22  ;;  %v6114_v7 = vpop.permute.xlu2 %4312 }
 0x16a   : > { %v2017_v39 = vrot.slane %v1923_v23, 7  ;;  %v2112_v3 = vrot.slane %v1923_v23, 5  ;;  %v1659_v58 = vpop.f32.mrf.mxu0  ;;  %v1502_v12 = vsel %vm1482_vm8, %v1469_v0, %v4259_v28  ;;  %v1508_v44 = vsel %vm1482_vm8, %v1475_v13, %v4260_v42 }
 0x16b   : > { %v1660_v18 = vadd.f32 %v5968_v30, %v1659_v58  ;;  %v1535_v27 = vsel %vm1515_vm9, %v1502_v12, %v4264_v60  ;;  %v1541_v1 = vsel %vm1515_vm9, %v1508_v44, %v4265_v21  ;;  %v4270_v21 = vunpack.i.h.bf16 %v6011_v25 }
 0x16c   : > { %1703 = vmatmul.f32.gmra.mxu0 %v1535_v27  ;;  %1721 = vmatmul.f32.gmra.mxu3 %v1541_v1  ;;  %v4278_v29 = vpop.permute.xlu1 %4277  ;;  %v6082_v2 = vsel %vm319_vm0, %v2016_v56, %v2017_v39  ;;  %v6085_v49 = vsel %vm319_vm0, %v2017_v39, %v2112_v3  ;;  %v4269_v60 = vunpack.i.l.bf16 %v6011_v25  ;;  %v1346_v42 = vsel %vm1321_vm3, %v5345_v55, %v4284_v61 }
 0x16d   : > { %v1773_v19 = vadd.f32 %v5812_v45, %v1660_v18  ;;  %v2207_v51 = vrot.slane %v6082_v2, 1  ;;  %v2209_v24 = vrot.slane %v6085_v49, 1  ;;  %v6101_v45 = vsel %vm319_vm0, %v2020_v5, %v2113_v10 }
 0x16e   : > { %v2214_v25 = vrot.slane %v6101_v45, 1  ;;  %v1340_v13 = vsel %vm1321_vm3, %v4991_v47, %v3929_v31  ;;  %v4280_v58 = vunpack.i.h.bf16 %v4278_v29  ;;  %v1377_v55 = vsel %vm1352_vm4, %v1346_v42, %v4270_v21 }
 0x16f   : > { %vm1860_vm14 = vcmp.ge.f32.partialorder %v1773_v19, 0.0  ;;  %v1892_v56 = vmul.f32 0.01, %v1773_v19  ;;  %v4273_v46 = vpop.permute.xlu0 %4272  ;;  %v6096_v4 = vsel %vm509_vm1, %v2206_v37, %v2207_v51  ;;  %v6106_v14 = vsel %vm509_vm1, %v2207_v51, %v2209_v24  ;;  %v6134_v24 = vpop.f32.mrf.mxu1 }
 0x170   : > { %7987 = vst [vmem:[#allocation14_spill] sm:$0xff] %v6096_v4  ;;  %2430 = vrot.lane.b32.xlu0 %v6096_v4, %s4679_s11  ;;  %2432 = vrot.lane.b32.xlu1 %v6106_v14, %s4679_s11  ;;  %v4275_v28 = vunpack.i.h.bf16 %v4273_v46  ;;  %v4274_v23 = vunpack.i.l.bf16 %v4273_v46  ;;  %v1371_v3 = vsel %vm1352_vm4, %v1340_v13, %v4269_v60  ;;  %v4279_v18 = vunpack.i.l.bf16 %v4278_v29 }
 0x171   : > { %7988 = vst [vmem:[#allocation21_spill] sm:$0xff] %v6106_v14  ;;  %v1924_v5 = vsel %vm1860_vm14, %v1773_v19, %v1892_v56  ;;  %v6130_v47 = vsel %vm509_vm1, %v2212_v54, %v2214_v25  ;;  %v4299_v29 = vunpack.i.l.bf16 %v6068_v50  ;;  %v6147_v13 = vpop.permute.xlu2 %4327 }
 0x172   : > { %v1662_v0 = vpop.f32.mrf.mxu0  ;;  %v1970_v44 = vrot.slane %v1924_v5, 1  ;;  %v2022_v10 = vrot.slane %v1924_v5, 7  ;;  %v1410_v1 = vsel %vm1383_vm5, %v1377_v55, %v4275_v28  ;;  %v1404_v61 = vsel %vm1383_vm5, %v1371_v3, %v4274_v23  ;;  %7989 = vst [vmem:[#allocation6_spill] sm:$0xff] %v6130_v47 }
 0x173   : > { %v1663_v39 = vadd.f32 %v5968_v30, %v1662_v0  ;;  %v1437_v21 = vsel %vm1416_vm6, %v1404_v61, %v4279_v18  ;;  %v1443_v60 = vsel %vm1416_vm6, %v1410_v1, %v4280_v58  ;;  %v3930_v61 = vunpack.i.h.bf16 %v7986_v22 }
 0x174   : > { %v6122_v12 = vpop.permute.xlu1 %4292  ;;  %v6143_v42 = vsel %vm319_vm0, %v1970_v44, %v2022_v10 }
 0x175   : > { %v1776_v27 = vadd.f32 %v5845_v57, %v1663_v39  ;;  %v7883_v51 = vunpack.i.h.bf16 %v6122_v12  ;;  %v4294_v37 = vunpack.i.l.bf16 %v6122_v12  ;;  %v7882_v57 = vunpack.i.h.bf16 %v6068_v50 }
 0x177   : > { %vm1861_vm15 = vcmp.ge.f32.partialorder %v1776_v27, 0.0  ;;  %v1893_v19 = vmul.f32 0.01, %v1776_v27  ;;  %v4288_v31 = vpop.permute.xlu0 %4287 }
 0x178   : > { %v4290_v56 = vunpack.i.h.bf16 %v4288_v31  ;;  %v4289_v46 = vunpack.i.l.bf16 %v4288_v31  ;;  %2436 = vrot.lane.b32.xlu0 %v6130_v47, %s4679_s11  ;;  %v2216_v31 = vrot.slane %v6143_v42, 1 }
 0x179   : > { %v1925_v54 = vsel %vm1861_vm15, %v1776_v27, %v1893_v19 }
 0x17a   : > { %v2023_v5 = vrot.slane %v1925_v54, 7  ;;  %v2114_v28 = vrot.slane %v1925_v54, 5  ;;  %v1665_v23 = vpop.f32.mrf.mxu0  ;;  %v1470_v0 = vsel %vm1449_vm7, %v1437_v21, %v4289_v46  ;;  %v1476_v25 = vsel %vm1449_vm7, %v1443_v60, %v4290_v56 }
 0x17b   : > { %v1666_v39 = vadd.f32 %v5968_v30, %v1665_v23  ;;  %v1503_v3 = vsel %vm1482_vm8, %v1470_v0, %v4294_v37  ;;  %v1509_v58 = vsel %vm1482_vm8, %v1476_v25, %v7883_v51  ;;  %v1341_v60 = vsel %vm1321_vm3, %v4997_v53, %v3930_v61 }
 0x17c   : > { %v1536_v55 = vsel %vm1515_vm9, %v1503_v3, %v4299_v29  ;;  %v1542_v44 = vsel %vm1515_vm9, %v1509_v58, %v7882_v57  ;;  %v4308_v18 = vpop.permute.xlu1 %4307  ;;  %v6159_v27 = vsel %vm319_vm0, %v2022_v10, %v2023_v5  ;;  %v6162_v1 = vsel %vm319_vm0, %v2023_v5, %v2114_v28 }
 0x17d   : > { %v1779_v19 = vadd.f32 %v5883_v59, %v1666_v39  ;;  %1706 = vmatmul.f32.gmra.mxu0 %v1536_v55  ;;  %1724 = vmatmul.f32.gmra.mxu3 %v1542_v44  ;;  %v2217_v37 = vrot.slane %v6159_v27, 1  ;;  %v4285_v29 = vunpack.i.h.bf16 %v6042_v48  ;;  %v2219_v56 = vrot.slane %v6162_v1, 1  ;;  %v6182_v48 = vpop.f32.mrf.mxu1 }
 0x17e   : > { %v4310_v23 = vunpack.i.h.bf16 %v4308_v18  ;;  %v4309_v0 = vunpack.i.l.bf16 %v4308_v18  ;;  %v4315_v53 = vunpack.i.h.bf16 %v6114_v7  ;;  %v4314_v44 = vunpack.i.l.bf16 %v6114_v7 }
 0x17f   : > { %vm1862_vm10 = vcmp.ge.f32.partialorder %v1779_v19, 0.0  ;;  %v1894_v10 = vmul.f32 0.01, %v1779_v19  ;;  %v4303_v46 = vpop.permute.xlu0 %4302  ;;  %v6171_v54 = vsel %vm509_vm1, %v2216_v31, %v2217_v37  ;;  %v6174_v59 = vsel %vm509_vm1, %v2217_v37, %v2219_v56  ;;  %v6193_v31 = vpop.permute.xlu2 %4342 }
 0x180   : > { %7990 = vst [vmem:[#allocation7_spill] sm:$0xff] %v6171_v54  ;;  %v4305_v21 = vunpack.i.h.bf16 %v4303_v46  ;;  %v4304_v22 = vunpack.i.l.bf16 %v4303_v46  ;;  %2438 = vrot.lane.b32.xlu1 %v6171_v54, %s4679_s11  ;;  %2440 = vrot.lane.b32.xlu2 %v6174_v59, %s4679_s11  ;;  %v1347_v5 = vsel %vm1321_vm3, %v5342_v38, %v4285_v29  ;;  %v4329_v7 = vunpack.i.l.bf16 %v6147_v13 }
 0x181   : > { %7991 = vst [vmem:[#allocation18_spill] sm:$0xff] %v6174_v59  ;;  %v1926_v28 = vsel %vm1862_vm10, %v1779_v19, %v1894_v10 }
 0x182   : > { %v1668_v25 = vpop.f32.mrf.mxu0  ;;  %v1378_v39 = vsel %vm1352_vm4, %v1347_v5, %v4305_v21  ;;  %v1372_v3 = vsel %vm1352_vm4, %v1341_v60, %v4304_v22  ;;  %v1971_v61 = vrot.slane %v1926_v28, 1  ;;  %v2025_v37 = vrot.slane %v1926_v28, 7 }
 0x183   : > { %v1669_v58 = vadd.f32 %v5968_v30, %v1668_v25  ;;  %v1411_v18 = vsel %vm1383_vm5, %v1378_v39, %v4310_v23  ;;  %v1405_v19 = vsel %vm1383_vm5, %v1372_v3, %v4309_v0  ;;  %v7884_v21 = vunpack.i.h.bf16 %v6147_v13 }
 0x184   : > { %v6190_v55 = vpop.permute.xlu1 %4322  ;;  %v1444_v28 = vsel %vm1416_vm6, %v1411_v18, %v4315_v53  ;;  %v6205_v23 = vsel %vm319_vm0, %v1971_v61, %v2025_v37 }
 0x185   : > { %v1782_v38 = vadd.f32 %v5926_v6, %v1669_v58  ;;  %v7885_v56 = vunpack.i.h.bf16 %v6190_v55  ;;  %v4324_v10 = vunpack.i.l.bf16 %v6190_v55  ;;  %v1438_v6 = vsel %vm1416_vm6, %v1405_v19, %v4314_v44 }
 0x187   : > { %vm1863_vm11 = vcmp.ge.f32.partialorder %v1782_v38, 0.0  ;;  %v1895_v29 = vmul.f32 0.01, %v1782_v38  ;;  %v4318_v46 = vpop.permute.xlu0 %4317 }
 0x188   : > { %v4320_v22 = vunpack.i.h.bf16 %v4318_v46  ;;  %v4319_v60 = vunpack.i.l.bf16 %v4318_v46 }
 0x189   : > { %v1927_v5 = vsel %vm1863_vm11, %v1782_v38, %v1895_v29  ;;  %v6214_v38 = vpop.f32.mrf.mxu1 }
 0x18a   : > { %v2026_v0 = vrot.slane %v1927_v5, 7  ;;  %v2115_v25 = vrot.slane %v1927_v5, 5  ;;  %v1671_v39 = vpop.f32.mrf.mxu0  ;;  %v1471_v3 = vsel %vm1449_vm7, %v1438_v6, %v4319_v60  ;;  %v1477_v58 = vsel %vm1449_vm7, %v1444_v28, %v4320_v22 }
 0x18b   : > { %v1672_v57 = vadd.f32 %v5968_v30, %v1671_v39  ;;  %v1504_v51 = vsel %vm1482_vm8, %v1471_v3, %v4324_v10  ;;  %v1510_v44 = vsel %vm1482_vm8, %v1477_v58, %v7885_v56  ;;  %v2221_v22 = vrot.slane %v6205_v23, 1 }
 0x18c   : > { %v1537_v53 = vsel %vm1515_vm9, %v1504_v51, %v4329_v7  ;;  %v1543_v61 = vsel %vm1515_vm9, %v1510_v44, %v7884_v21  ;;  %v4338_v18 = vpop.permute.xlu1 %4337  ;;  %v6221_v19 = vsel %vm319_vm0, %v2025_v37, %v2026_v0  ;;  %v6224_v29 = vsel %vm319_vm0, %v2026_v0, %v2115_v25  ;;  %v6230_v7 = vpop.permute.xlu2 %4357 }
 0x18d   : > { %v1785_v10 = vadd.f32 %v5960_v9, %v1672_v57  ;;  %1709 = vmatmul.f32.gmra.mxu0 %v1537_v53  ;;  %1727 = vmatmul.f32.gmra.mxu3 %v1543_v61  ;;  %v2222_v46 = vrot.slane %v6221_v19, 1  ;;  %v2224_v51 = vrot.slane %v6224_v29, 1  ;;  %v7994_v9 = vld [vmem:[#allocation19_spill] sm:$0xff]  ;;  %v4339_v44 = vunpack.i.l.bf16 %v4338_v18 }
 0x18e   : > { %v3934_v57 = vunpack.i.l.bf16 %v7994_v9  ;;  %v4360_v54 = vunpack.i.h.bf16 %v6230_v7 }
 0x18f   : > { %v4333_v60 = vpop.permute.xlu0 %4332  ;;  %v6233_v5 = vsel %vm509_vm1, %v2221_v22, %v2222_v46  ;;  %v1896_v37 = vmul.f32 0.01, %v1785_v10  ;;  %v6236_v6 = vsel %vm509_vm1, %v2222_v46, %v2224_v51  ;;  %vm1864_vm12 = vcmp.ge.f32.partialorder %v1785_v10, 0.0 }
 0x190   : > { %7992 = vst [vmem:[#allocation12_spill] sm:$0xff] %v6233_v5  ;;  %2442 = vrot.lane.b32.xlu0 %v6233_v5, %s4679_s11  ;;  %2444 = vrot.lane.b32.xlu1 %v6236_v6, %s4679_s11  ;;  %v4334_v28 = vunpack.i.l.bf16 %v4333_v60  ;;  %v1342_v58 = vsel %vm1321_vm3, %v4969_v16, %v3934_v57  ;;  %v4335_v5 = vunpack.i.h.bf16 %v4333_v60  ;;  %v4359_v60 = vunpack.i.l.bf16 %v6230_v7 }
 0x191   : > { %7993 = vst [vmem:[#allocation22_spill] sm:$0xff] %v6236_v6  ;;  %v1928_v39 = vsel %vm1864_vm12, %v1785_v10, %v1896_v37  ;;  %v6247_v61 = vpop.f32.mrf.mxu1  ;;  %v4345_v6 = vunpack.i.h.bf16 %v6193_v31  ;;  %v4344_v10 = vunpack.i.l.bf16 %v6193_v31 }
 0x192   : > { %v1674_v0 = vpop.f32.mrf.mxu0  ;;  %v1373_v46 = vsel %vm1352_vm4, %v1342_v58, %v4334_v28  ;;  %v1972_v22 = vrot.slane %v1928_v39, 1  ;;  %v2028_v51 = vrot.slane %v1928_v39, 7 }
 0x193   : > { %v1675_v25 = vadd.f32 %v5968_v30, %v1674_v0  ;;  %v4340_v0 = vunpack.i.h.bf16 %v4338_v18  ;;  %v1406_v16 = vsel %vm1383_vm5, %v1373_v46, %v4339_v44 }
 0x194   : > { %v4353_v3 = vpop.permute.xlu1 %4352  ;;  %v6253_v57 = vpop.permute.xlu2 %4372  ;;  %v6261_v18 = vsel %vm319_vm0, %v1972_v22, %v2028_v51 }
 0x195   : > { %v1788_v53 = vadd.f32 %v5994_v35, %v1675_v25  ;;  %v4354_v28 = vunpack.i.l.bf16 %v4353_v3  ;;  %v4355_v46 = vunpack.i.h.bf16 %v4353_v3  ;;  %v2226_v22 = vrot.slane %v6261_v18, 1 }
 0x197   : > { %vm1865_vm13 = vcmp.ge.f32.partialorder %v1788_v53, 0.0  ;;  %v1897_v21 = vmul.f32 0.01, %v1788_v53  ;;  %v4348_v56 = vpop.permute.xlu0 %4347 }
 0x198   : > { %v4349_v37 = vunpack.i.l.bf16 %v4348_v56 }
 0x199   : > { %v1929_v35 = vsel %vm1865_vm13, %v1788_v53, %v1897_v21  ;;  %v6279_v3 = vpop.f32.mrf.mxu1 }
 0x19a   : > { %v2029_v25 = vrot.slane %v1929_v35, 7  ;;  %v2116_v59 = vrot.slane %v1929_v35, 5  ;;  %v1348_v39 = vsel %vm1321_vm3, %v5420_v26, %v4349_v37  ;;  %v1677_v58 = vpop.f32.mrf.mxu0  ;;  %v1439_v35 = vsel %vm1416_vm6, %v1406_v16, %v4344_v10 }
 0x19b   : > { %v1379_v14 = vsel %vm1352_vm4, %v1348_v39, %v4335_v5  ;;  %v1678_v31 = vadd.f32 %v5968_v30, %v1677_v58  ;;  %v1472_v39 = vsel %vm1449_vm7, %v1439_v35, %v4354_v28  ;;  %v4350_v16 = vunpack.i.h.bf16 %v4348_v56 }
 0x19c   : > { %v4368_v44 = vpop.permute.xlu1 %4367  ;;  %v6265_v21 = vsel %vm319_vm0, %v2028_v51, %v2029_v25  ;;  %v6268_v53 = vsel %vm319_vm0, %v2029_v25, %v2116_v59  ;;  %v1412_v26 = vsel %vm1383_vm5, %v1379_v14, %v4340_v0  ;;  %v3935_v59 = vunpack.i.h.bf16 %v7994_v9 }
 0x19d   : > { %v1791_v37 = vadd.f32 %v6020_v41, %v1678_v31  ;;  %v2227_v5 = vrot.slane %v6265_v21, 1  ;;  %v2229_v7 = vrot.slane %v6268_v53, 1  ;;  %v1445_v51 = vsel %vm1416_vm6, %v1412_v26, %v4345_v6 }
 0x19e   : > { %v4370_v31 = vunpack.i.h.bf16 %v4368_v44  ;;  %v1505_v6 = vsel %vm1482_vm8, %v1472_v39, %v4359_v60  ;;  %v1478_v9 = vsel %vm1449_vm7, %v1445_v51, %v4355_v46  ;;  %v4369_v26 = vunpack.i.l.bf16 %v4368_v44 }
 0x19f   : > { %vm1866_vm14 = vcmp.ge.f32.partialorder %v1791_v37, 0.0  ;;  %v1898_v25 = vmul.f32 0.01, %v1791_v37  ;;  %v4363_v14 = vpop.permute.xlu0 %4362  ;;  %v6282_v58 = vsel %vm509_vm1, %v2226_v22, %v2227_v5  ;;  %v6285_v10 = vsel %vm509_vm1, %v2227_v5, %v2229_v7  ;;  %v6295_v7 = vpop.permute.xlu2 %4387 }
 0x1a0   : > { %v4365_v41 = vunpack.i.h.bf16 %v4363_v14  ;;  %v4364_v0 = vunpack.i.l.bf16 %v4363_v14  ;;  %7995 = vst [vmem:[#allocation13_spill] sm:$0xff] %v6282_v58  ;;  %2446 = vrot.lane.b32.xlu2 %v6282_v58, %s4679_s11  ;;  %2448 = vrot.lane.b32.xlu0 %v6285_v10, %s4679_s11  ;;  %v1511_v5 = vsel %vm1482_vm8, %v1478_v9, %v4360_v54  ;;  %v4375_v60 = vunpack.i.h.bf16 %v6253_v57 }
 0x1a1   : > { %7996 = vst [vmem:[#allocation17_spill] sm:$0xff] %v6285_v10  ;;  %v1930_v28 = vsel %vm1866_vm14, %v1791_v37, %v1898_v25  ;;  %v1343_v10 = vsel %vm1321_vm3, %v4977_v20, %v3935_v59  ;;  %v4374_v46 = vunpack.i.l.bf16 %v6253_v57  ;;  %v1349_v37 = vsel %vm1321_vm3, %v5417_v33, %v4350_v16  ;;  %v2829_v57 = vld [vmem:[%s7859_s3 + $0x78] sm:$0xff]  ;;  %v6319_v9 = vpop.f32.mrf.mxu1 }
 0x1a2   : > { %v1680_v35 = vpop.f32.mrf.mxu0  ;;  %v1538_v22 = vsel %vm1515_vm9, %v1505_v6, %v4364_v0  ;;  %v1544_v14 = vsel %vm1515_vm9, %v1511_v5, %v4365_v41  ;;  %v1973_v54 = vrot.slane %v1930_v28, 1  ;;  %v2031_v39 = vrot.slane %v1930_v28, 7  ;;  %v2877_v59 = vld [vmem:[%s7859_s3 + $0x1f8] sm:$0xff]  ;;  %2950 = vmatpush.msra.mxu2 %v2829_v57  ;;  %v2828_v28 = vld [vmem:[%s7859_s3 + $0x70] sm:$0xff]  ;;  %3817 = vmatpush.msra.mxu3 %v2829_v57 }
 0x1a3   : > { %v1681_v56 = vadd.f32 %v5968_v30, %v1680_v35  ;;  %1712 = vmatmul.f32.gmra.mxu0 %v1538_v22  ;;  %1730 = vmatmul.f32.gmra.mxu3 %v1544_v14  ;;  %v1374_v25 = vsel %vm1352_vm4, %v1343_v10, %v4369_v26  ;;  %v1380_v41 = vsel %vm1352_vm4, %v1349_v37, %v4370_v31  ;;  %v2876_v26 = vld [vmem:[%s7859_s3 + $0x1f0] sm:$0xff] }
 0x1a4   : > { %v4383_v44 = vpop.permute.xlu1 %4382  ;;  %3289 = vmatpush.msrb.mxu0 %v2877_v59  ;;  %v1407_v10 = vsel %vm1383_vm5, %v1374_v25, %v4374_v46  ;;  %v1413_v31 = vsel %vm1383_vm5, %v1380_v41, %v4375_v60  ;;  %v6317_v6 = vsel %vm319_vm0, %v1973_v54, %v2031_v39  ;;  %2951 = vmatpush.msra.mxu2 %v2828_v28  ;;  %v2827_v60 = vld [vmem:[%s7859_s3 + $0x68] sm:$0xff] }
 0x1a5   : > { %v1794_v51 = vadd.f32 %v6061_v8, %v1681_v56  ;;  %v4385_v5 = vunpack.i.h.bf16 %v4383_v44  ;;  %v4384_v56 = vunpack.i.l.bf16 %v4383_v44  ;;  %v2875_v46 = vld [vmem:[%s7859_s3 + $0x1e8] sm:$0xff]  ;;  %3818 = vmatpush.msra.mxu3 %v2828_v28  ;;  %v4390_v44 = vunpack.i.h.bf16 %v6295_v7 }
 0x1a6   : > { %3290 = vmatpush.msrb.mxu0 %v2876_v26  ;;  %2952 = vmatpush.msra.mxu2 %v2827_v60 }
 0x1a7   : > { %vm1867_vm15 = vcmp.ge.f32.partialorder %v1794_v51, 0.0  ;;  %v1899_v0 = vmul.f32 0.01, %v1794_v51  ;;  %v4378_v20 = vpop.permute.xlu0 %4377  ;;  %v6346_v57 = vpop.permute.xlu2 %4402  ;;  %3819 = vmatpush.msra.mxu3 %v2827_v60 }
 0x1a8   : > { %v4380_v33 = vunpack.i.h.bf16 %v4378_v20  ;;  %v4379_v16 = vunpack.i.l.bf16 %v4378_v20  ;;  %v4389_v20 = vunpack.i.l.bf16 %v6295_v7  ;;  %3291 = vmatpush.msrb.mxu0 %v2875_v46  ;;  %v4404_v46 = vunpack.i.l.bf16 %v6346_v57 }
 0x1a9   : > { %v1931_v8 = vsel %vm1867_vm15, %v1794_v51, %v1899_v0 }
 0x1aa   : > { %v2032_v35 = vrot.slane %v1931_v8, 7  ;;  %v2117_v22 = vrot.slane %v1931_v8, 5  ;;  %v1683_v14 = vpop.f32.mrf.mxu0  ;;  %v1440_v37 = vsel %vm1416_vm6, %v1407_v10, %v4379_v16  ;;  %v1446_v54 = vsel %vm1416_vm6, %v1413_v31, %v4380_v33  ;;  %v2874_v8 = vld [vmem:[%s7859_s3 + $0x1e0] sm:$0xff] }
 0x1ab   : > { %v1684_v51 = vadd.f32 %v5968_v30, %v1683_v14  ;;  %v2231_v16 = vrot.slane %v6317_v6, 1  ;;  %v1479_v31 = vsel %vm1449_vm7, %v1446_v54, %v4385_v5  ;;  %3292 = vmatpush.msrb.mxu0 %v2874_v8  ;;  %v2873_v14 = vld [vmem:[%s7859_s3 + $0x1d8] sm:$0xff] }
 0x1ac   : > { %v6337_v25 = vpop.permute.xlu1 %4397  ;;  %v6340_v41 = vsel %vm319_vm0, %v2031_v39, %v2032_v35  ;;  %v6343_v0 = vsel %vm319_vm0, %v2032_v35, %v2117_v22  ;;  %v2826_v39 = vld [vmem:[%s7859_s3 + $0x60] sm:$0xff]  ;;  %v2825_v22 = vld [vmem:[%s7859_s3 + $0x58] sm:$0xff]  ;;  %v1512_v54 = vsel %vm1482_vm8, %v1479_v31, %v4390_v44  ;;  %v2823_v44 = vld [vmem:[%s7859_s3 + $0x48] sm:$0xff]  ;;  %v6395_v31 = vpop.f32.mrf.mxu1 }
 0x1ad   : > { %v1797_v59 = vadd.f32 %v6091_v17, %v1684_v51  ;;  %v2232_v33 = vrot.slane %v6340_v41, 1  ;;  %v4399_v7 = vunpack.i.l.bf16 %v6337_v25  ;;  %v2234_v10 = vrot.slane %v6343_v0, 1  ;;  %2953 = vmatpush.msra.mxu2 %v2826_v39  ;;  %3820 = vmatpush.msra.mxu3 %v2826_v39  ;;  %v2824_v51 = vld [vmem:[%s7859_s3 + $0x50] sm:$0xff] }
 0x1ae   : > { %v1473_v17 = vsel %vm1449_vm7, %v1440_v37, %v4384_v56  ;;  %3293 = vmatpush.msrb.mxu0 %v2873_v14 }
 0x1af   : > { %v1900_v28 = vmul.f32 0.01, %v1797_v59  ;;  %v4393_v26 = vpop.permute.xlu0 %4392  ;;  %v6362_v35 = vsel %vm509_vm1, %v2231_v16, %v2232_v33  ;;  %vm1868_vm10 = vcmp.ge.f32.partialorder %v1797_v59, 0.0  ;;  %v6371_v5 = vsel %vm509_vm1, %v2232_v33, %v2234_v10  ;;  %2954 = vmatpush.msra.mxu2 %v2825_v22  ;;  %v2872_v33 = vld [vmem:[%s7859_s3 + $0x1d0] sm:$0xff]  ;;  %3821 = vmatpush.msra.mxu3 %v2825_v22 }
 0x1b0   : > { %7997 = vst [vmem:[#allocation10_spill] sm:$0xff] %v6362_v35  ;;  %v4395_v56 = vunpack.i.h.bf16 %v4393_v26  ;;  %v4394_v60 = vunpack.i.l.bf16 %v4393_v26  ;;  %2450 = vrot.lane.b32.xlu1 %v6362_v35, %s4679_s11  ;;  %2452 = vrot.lane.b32.xlu2 %v6371_v5, %s4679_s11  ;;  %v1506_v37 = vsel %vm1482_vm8, %v1473_v17, %v4389_v20  ;;  %v1350_v10 = vsel %vm1321_vm3, %v5583_v62, %v4399_v7  ;;  %v2871_v26 = vld [vmem:[%s7859_s3 + $0x1c8] sm:$0xff] }
 0x1b1   : > { %7998 = vst [vmem:[#allocation11_spill] sm:$0xff] %v6371_v5  ;;  %2955 = vmatpush.msra.mxu2 %v2824_v51  ;;  %v1932_v20 = vsel %vm1868_vm10, %v1797_v59, %v1900_v28  ;;  %3294 = vmatpush.msrb.mxu0 %v2872_v33  ;;  %v1381_v7 = vsel %vm1352_vm4, %v1350_v10, %v4404_v46  ;;  %v2822_v59 = vld [vmem:[%s7859_s3 + $0x40] sm:$0xff]  ;;  %v2821_v46 = vld [vmem:[%s7859_s3 + $0x38] sm:$0xff]  ;;  %v2868_v10 = vld [vmem:[%s7859_s3 + $0x1b0] sm:$0xff] }
 0x1b2   : > { %v1686_v16 = vpop.f32.mrf.mxu0  ;;  %v1539_v39 = vsel %vm1515_vm9, %v1506_v37, %v4394_v60  ;;  %v1545_v8 = vsel %vm1515_vm9, %v1512_v54, %v4395_v56  ;;  %v2870_v28 = vld [vmem:[%s7859_s3 + $0x1c0] sm:$0xff]  ;;  %3822 = vmatpush.msra.mxu3 %v2824_v51  ;;  %v1974_v22 = vrot.slane %v1932_v20, 1  ;;  %v2034_v56 = vrot.slane %v1932_v20, 7  ;;  %v1106_v60 = vpop.permute.xlu2 %1105  ;;  %v2869_v33 = vld [vmem:[%s7859_s3 + $0x1b8] sm:$0xff] }
 0x1b3   : > { %v1687_v17 = vadd.f32 %v5968_v30, %v1686_v16  ;;  %1715 = vmatmul.f32.gmra.mxu0 %v1539_v39  ;;  %1733 = vmatmul.f32.gmra.mxu3 %v1545_v8  ;;  %v4400_v37 = vunpack.i.h.bf16 %v6337_v25  ;;  %v4405_v16 = vunpack.i.h.bf16 %v6346_v57  ;;  %v2820_v8 = vld [vmem:[%s7859_s3 + $0x30] sm:$0xff]  ;;  %v2819_v57 = vld [vmem:[%s7859_s3 + $0x28] sm:$0xff] }
 0x1b4   : > { %v1010_v14 = vpop.permute.xlu1 %1009  ;;  %2956 = vmatpush.msra.mxu2 %v2823_v44  ;;  %3295 = vmatpush.msrb.mxu0 %v2871_v26 }
 0x1b5   : > { %v1800_v62 = vadd.f32 %v6134_v24, %v1687_v17  ;;  %3823 = vmatpush.msra.mxu3 %v2823_v44 }
 0x1b6   : > { %2957 = vmatpush.msra.mxu2 %v2822_v59  ;;  %3296 = vmatpush.msrb.mxu0 %v2870_v28  ;;  %v1351_v28 = vsel %vm1321_vm3, %v5572_v34, %v4400_v37 }
 0x1b7   : > { %vm1869_vm11 = vcmp.ge.f32.partialorder %v1800_v62, 0.0  ;;  %v1901_v24 = vmul.f32 0.01, %v1800_v62  ;;  %v914_v54 = vpop.permute.xlu0 %913  ;;  %3824 = vmatpush.msra.mxu3 %v2822_v59 }
 0x1b8   : > { %v1414_v51 = vsel %vm1383_vm5, %v1381_v7, %v914_v54  ;;  %2958 = vmatpush.msra.mxu2 %v2821_v46  ;;  %v6426_v7 = vsel %vm319_vm0, %v1974_v22, %v2034_v56  ;;  %3297 = vmatpush.msrb.mxu0 %v2869_v33  ;;  %v2867_v22 = vld [vmem:[%s7859_s3 + $0x1a8] sm:$0xff] }
 0x1b9   : > { %v1933_v39 = vsel %vm1869_vm11, %v1800_v62, %v1901_v24  ;;  %v1447_v25 = vsel %vm1416_vm6, %v1414_v51, %v1010_v14  ;;  %v7999_v62 = vunpack.i.h.bf16 %v6122_v12  ;;  %3825 = vmatpush.msra.mxu3 %v2821_v46  ;;  %v2236_v34 = vrot.slane %v6426_v7, 1  ;;  %v6452_v46 = vpop.f32.mrf.mxu1 }
 0x1ba   : > { %v2035_v20 = vrot.slane %v1933_v39, 7  ;;  %v2118_v44 = vrot.slane %v1933_v39, 5  ;;  %v1480_v17 = vsel %vm1449_vm7, %v1447_v25, %v1106_v60  ;;  %v1689_v26 = vpop.f32.mrf.mxu0  ;;  %2959 = vmatpush.msra.mxu2 %v2820_v8  ;;  %v8000_v60 = vunpack.i.h.bf16 %v6068_v50  ;;  %3298 = vmatpush.msrb.mxu0 %v2868_v10  ;;  %v2818_v50 = vld [vmem:[%s7859_s3 + $0x20] sm:$0xff] }
 0x1bb   : > { %v1690_v14 = vadd.f32 %v5968_v30, %v1689_v26  ;;  %v1513_v59 = vsel %vm1482_vm8, %v1480_v17, %v7999_v62  ;;  %v1382_v51 = vsel %vm1352_vm4, %v1351_v28, %v4405_v16  ;;  %3826 = vmatpush.msra.mxu3 %v2820_v8  ;;  %v1108_v26 = vpop.permute.xlu2 %1107  ;;  %v2864_v8 = vld [vmem:[%s7859_s3 + $0x190] sm:$0xff] }
 0x1bc   : > { %v1546_v24 = vsel %vm1515_vm9, %v1513_v59, %v8000_v60  ;;  %v6444_v54 = vsel %vm319_vm0, %v2034_v56, %v2035_v20  ;;  %2960 = vmatpush.msra.mxu2 %v2819_v57  ;;  %v6447_v30 = vsel %vm319_vm0, %v2035_v20, %v2118_v44  ;;  %v2866_v56 = vld [vmem:[%s7859_s3 + $0x1a0] sm:$0xff]  ;;  %3299 = vmatpush.msrb.mxu0 %v2867_v22  ;;  %v2817_v20 = vld [vmem:[%s7859_s3 + $0x18] sm:$0xff]  ;;  %v2816_v59 = vld [vmem:[%s7859_s3 + $0x10] sm:$0xff] }
 0x1bd   : > { %v1803_v12 = vadd.f32 %v6182_v48, %v1690_v14  ;;  %1736 = vmatmul.f32.gmra.mxu3 %v1546_v24  ;;  %v2237_v37 = vrot.slane %v6444_v54, 1  ;;  %v2239_v33 = vrot.slane %v6447_v30, 1  ;;  %v1012_v48 = vpop.permute.xlu1 %1011  ;;  %v2865_v44 = vld [vmem:[%s7859_s3 + $0x198] sm:$0xff]  ;;  %v8003_v24 = vunpack.i.h.bf16 %v6190_v55 }
 0x1be   : > { %2961 = vmatpush.msra.mxu2 %v2818_v50  ;;  %3300 = vmatpush.msrb.mxu0 %v2866_v56 }
 0x1bf   : > { %vm1870_vm12 = vcmp.ge.f32.partialorder %v1803_v12, 0.0  ;;  %v1902_v39 = vmul.f32 0.01, %v1803_v12  ;;  %v916_v25 = vpop.permute.xlu0 %915  ;;  %v6463_v10 = vsel %vm509_vm1, %v2236_v34, %v2237_v37  ;;  %v6472_v17 = vsel %vm509_vm1, %v2237_v37, %v2239_v33  ;;  %3827 = vmatpush.msra.mxu3 %v2819_v57  ;;  %v2815_v34 = vld [vmem:[%s7859_s3 + $0x8] sm:$0xff]  ;;  %v2814_v33 = vld [vmem:[%s7859_s3] sm:$0xff] }
 0x1c0   : > { %8001 = vst [vmem:[#allocation15_spill] sm:$0xff] %v6463_v10  ;;  %v1415_v16 = vsel %vm1383_vm5, %v1382_v51, %v916_v25  ;;  %2454 = vrot.lane.b32.xlu0 %v6463_v10, %s4679_s11  ;;  %2962 = vmatpush.msra.mxu2 %v2817_v20  ;;  %v2863_v57 = vld [vmem:[%s7859_s3 + $0x188] sm:$0xff]  ;;  %v8004_v37 = vunpack.i.h.bf16 %v6147_v13 }
 0x1c1   : > { %8002 = vst [vmem:[#allocation16_spill] sm:$0xff] %v6472_v17  ;;  %v6477_v14 = vsel %vm1870_vm12, %v1803_v12, %v1902_v39  ;;  %v1448_v62 = vsel %vm1416_vm6, %v1415_v16, %v1012_v48  ;;  %3301 = vmatpush.msrb.mxu0 %v2865_v44  ;;  %3828 = vmatpush.msra.mxu3 %v2818_v50  ;;  %v2862_v50 = vld [vmem:[%s7859_s3 + $0x180] sm:$0xff]  ;;  %v6512_v13 = vpop.f32.mrf.mxu1 }
 0x1c2   : > { %v1975_v28 = vrot.slane %v6477_v14, 1  ;;  %v2037_v22 = vrot.slane %v6477_v14, 7  ;;  %v1481_v60 = vsel %vm1449_vm7, %v1448_v62, %v1108_v26  ;;  %2963 = vmatpush.msra.mxu2 %v2816_v59  ;;  %v1692_v39 = vpop.f32.mrf.mxu0 }
 0x1c3   : > { %v1514_v12 = vsel %vm1482_vm8, %v1481_v60, %v8003_v24  ;;  %3302 = vmatpush.msrb.mxu0 %v2864_v8  ;;  %3829 = vmatpush.msra.mxu3 %v2817_v20  ;;  %v6527_v20 = vld [vmem:[%s7858_s2] ss:$0 sm:$0xff] }
 0x1c4   : > { %v1547_v56 = vsel %vm1515_vm9, %v1514_v12, %v8004_v37  ;;  %v6504_v55 = vsel %vm319_vm0, %v1975_v28, %v2037_v22  ;;  %2964 = vmatpush.msra.mxu2 %v2815_v34  ;;  %v1693_v44 = vadd.f32 %v6527_v20, %v1692_v39 }
 0x1c5   : > { %1739 = vmatmul.f32.gmra.mxu3 %v1547_v56  ;;  %3303 = vmatpush.msrb.mxu0 %v2863_v57 }
 0x1c6   : > { %2965 = vmatpush.msra.mxu2 %v2814_v33  ;;  %3830 = vmatpush.msra.mxu3 %v2816_v59  ;;  %v1806_v62 = vadd.f32 %v6214_v38, %v1693_v44  ;;  %v2435_v38 = vpop.permute.xlu2 %2434 }
 0x1c7   : > { %3304 = vmatpush.msrb.mxu0 %v2862_v50 }
 0x1c8   : > { %3831 = vmatpush.msra.mxu3 %v2815_v34  ;;  %v1903_v28 = vmul.f32 0.01, %v1806_v62  ;;  %vm1871_vm4 = vcmp.ge.f32.partialorder %v1806_v62, 0.0 }
 0x1c9   : > { %v6516_v51 = vpop.f32.mrf.mxu1 }
 0x1ca   : > { %3832 = vmatpush.msra.mxu3 %v2814_v33  ;;  %v6542_v12 = vpop.f32.mrf.mxu0  ;;  %v1935_v34 = vsel %vm1871_vm4, %v1806_v62, %v1903_v28 }
 0x1cb   : > { %v2038_v33 = vrot.slane %v1935_v34, 7  ;;  %v2119_v50 = vrot.slane %v1935_v34, 5 }
 0x1cd   : > { %3755 = vmatmul.msk.f32.vlgmr.msrb.gmra.mxu3 %vm1321_vm3, %v5857_v11  ;;  %v6554_v62 = vsel %vm319_vm0, %v2037_v22, %v2038_v33 }
 0x1d1   : > { %v6520_v48 = vpop.f32.mrf.mxu1 }
 0x1d2   : > { %v1698_v28 = vpop.f32.mrf.mxu0 }
 0x1d3   : > { %v1699_v10 = vadd.f32 %v6527_v20, %v1698_v28 }
 0x1d5   : > { %3756 = vmatmul.msk.f32.gmra.mxu3 %vm1321_vm3, %v5930_v36 }
 0x1dd   : > { %3757 = vmatmul.msk.f32.gmra.mxu3 %vm1321_vm3, %v5955_v40  ;;  %v1832_v40 = vpop.f32.mrf.mxu1 }
 0x1df   : > { %v1719_v25 = vpop.f32.mrf.mxu3 }
 0x1e0   : > { %v1720_v36 = vadd.f32 %v6527_v20, %v1719_v25 }
 0x1e2   : > { %v2431_v16 = vpop.permute.xlu0 %2430  ;;  %v1833_v59 = vadd.f32 %v1832_v40, %v1720_v36  ;;  %v2433_v8 = vpop.permute.xlu1 %2432  ;;  %v2720_v36 = vsel %vm1416_vm6, %v6026_v15, %v2435_v38 }
 0x1e3   : > { %v6532_v26 = vsel %vm1416_vm6, %v6073_v43, %v2431_v16  ;;  %v2719_v60 = vsel %vm1416_vm6, %v6082_v2, %v2433_v8 }
 0x1e4   : > { %2966 = vmatmul.f32.vlgmr.msra.gmra.mxu2 %v6532_v26  ;;  %3305 = vmatmul.f32.vlgmr.msrb.gmra.mxu0 %v6532_v26  ;;  %v1912_v24 = vmul.f32 0.01, %v1833_v59  ;;  %vm1880_vm5 = vcmp.ge.f32.partialorder %v1833_v59, 0.0 }
 0x1e5   : > { %3758 = vmatmul.msk.f32.gmra.mxu3 %vm1321_vm3, %v5785_v63  ;;  %v1835_v57 = vpop.f32.mrf.mxu1 }
 0x1e6   : > { %v1944_v37 = vsel %vm1880_vm5, %v1833_v59, %v1912_v24  ;;  %v6557_v59 = vsel %vm319_vm0, %v2038_v33, %v2119_v50 }
 0x1e7   : > { %v1980_v44 = vrot.slane %v1944_v37, 1  ;;  %v2052_v16 = vrot.slane %v1944_v37, 7  ;;  %v7892_v37 = vrot.slane %v6554_v62, 1 }
 0x1e9   : > { %v6560_v24 = vsel %vm319_vm0, %v1980_v44, %v2052_v16 }
 0x1ea   : > { %v2437_v38 = vpop.permute.xlu0 %2436  ;;  %v2266_v33 = vrot.slane %v6560_v24, 1 }
 0x1ec   : > { %2969 = vmatmul.f32.gmra.mxu2 %v2719_v60  ;;  %3308 = vmatmul.f32.gmra.mxu0 %v2719_v60 }
 0x1ed   : > { %3759 = vmatmul.msk.f32.gmra.mxu3 %vm1321_vm3, %v5857_v11 }
 0x1ef   : > { %v1722_v63 = vpop.f32.mrf.mxu3 }
 0x1f0   : > { %v1723_v56 = vadd.f32 %v6527_v20, %v1722_v63 }
 0x1f2   : > { %v1836_v39 = vadd.f32 %v1835_v57, %v1723_v56  ;;  %v2439_v25 = vpop.permute.xlu1 %2438  ;;  %v2441_v57 = vpop.permute.xlu2 %2440  ;;  %v2244_v56 = vrot.slane %v6557_v59, 1 }
 0x1f3   : > { %v2722_v40 = vsel %vm1416_vm6, %v6143_v42, %v2439_v25  ;;  %v2721_v25 = vsel %vm1416_vm6, %v6036_v52, %v2437_v38  ;;  %v2723_v44 = vsel %vm1416_vm6, %v6159_v27, %v2441_v57 }
 0x1f4   : > { %vm1881_vm3 = vcmp.ge.f32.partialorder %v1836_v39, 0.0  ;;  %v1913_v11 = vmul.f32 0.01, %v1836_v39  ;;  %2972 = vmatmul.f32.gmra.mxu2 %v2720_v36  ;;  %3311 = vmatmul.f32.gmra.mxu0 %v2722_v40 }
 0x1f6   : > { %v1945_v8 = vsel %vm1881_vm3, %v1836_v39, %v1913_v11 }
 0x1f7   : > { %v2053_v34 = vrot.slane %v1945_v8, 7  ;;  %v2124_v63 = vrot.slane %v1945_v8, 5 }
 0x1f9   : > { %v6565_v14 = vsel %vm319_vm0, %v2052_v16, %v2053_v34  ;;  %v6568_v22 = vsel %vm319_vm0, %v2053_v34, %v2124_v63  ;;  %v6580_v16 = vsel %vm509_vm1, %v7892_v37, %v2244_v56  ;;  %v6591_v34 = vpop.f32.mrf.mxu0  ;;  %v2861_v56 = vld [vmem:[%s7859_s3 + $0x178] sm:$0xff] }
 0x1fa   : > { %v2267_v50 = vrot.slane %v6565_v14, 1  ;;  %v2269_v39 = vrot.slane %v6568_v22, 1  ;;  %8005 = vst [vmem:[#allocation8_spill] sm:$0xff] %v6580_v16  ;;  %3176 = vmatpush.msrb.mxu1 %v2861_v56 }
 0x1fc   : > { %2975 = vmatmul.f32.gmra.mxu2 %v2721_v25  ;;  %3314 = vmatmul.f32.gmra.mxu0 %v2723_v44  ;;  %v6583_v36 = vsel %vm509_vm1, %v2266_v33, %v2267_v50  ;;  %v6586_v11 = vsel %vm509_vm1, %v2267_v50, %v2269_v39  ;;  %v2447_v39 = vpop.permute.xlu2 %2446 }
 0x1fd   : > { %8006 = vst [vmem:[#allocation9_spill] sm:$0xff] %v6583_v36  ;;  %v4416_v8 = vpack.i.bf16 %v6583_v36, %v6580_v16 }
 0x1fe   : > { %8007 = vst [vmem:[#allocation20_spill] sm:$0xff] %v6586_v11 }
 0x1ff   : > { %4417 = vrot.lane.b32.xlu0 %v4416_v8, %s4679_s11 }
 0x201   : > { %v6599_v33 = vpop.f32.mrf.mxu0 }
 0x202   : > { %v2443_v63 = vpop.permute.xlu0 %2442  ;;  %v2445_v38 = vpop.permute.xlu1 %2444 }
 0x203   : > { %v2724_v57 = vsel %vm1416_vm6, %v6205_v23, %v2443_v63  ;;  %v2725_v50 = vsel %vm1416_vm6, %v6221_v19, %v2445_v38  ;;  %v2860_v63 = vld [vmem:[%s7859_s3 + $0x170] sm:$0xff]  ;;  %v2885_v38 = vld [vmem:[%s7859_s3 + $0x238] sm:$0xff] }
 0x204   : > { %2978 = vmatmul.f32.gmra.mxu2 %v6532_v26  ;;  %3317 = vmatmul.f32.gmra.mxu0 %v2724_v57  ;;  %v2726_v26 = vsel %vm1416_vm6, %v6261_v18, %v2447_v39  ;;  %v2859_v39 = vld [vmem:[%s7859_s3 + $0x168] sm:$0xff] }
 0x205   : > { %3177 = vmatpush.msrb.mxu1 %v2860_v63  ;;  %3410 = vmatpush.msrb.mxu2 %v2885_v38 }
 0x207   : > { %3178 = vmatpush.msrb.mxu1 %v2859_v39 }
 0x209   : > { %v6603_v25 = vpop.f32.mrf.mxu0 }
 0x20c   : > { %2981 = vmatmul.f32.gmra.mxu2 %v2719_v60  ;;  %3320 = vmatmul.f32.gmra.mxu0 %v2725_v50 }
 0x211   : > { %v6610_v56 = vpop.f32.mrf.mxu0 }
 0x212   : > { %v2449_v8 = vpop.permute.xlu0 %2448 }
 0x213   : > { %v2727_v60 = vsel %vm1416_vm6, %v6265_v21, %v2449_v8  ;;  %v2453_v8 = vpop.permute.xlu2 %2452 }
 0x214   : > { %2984 = vmatmul.f32.gmra.mxu2 %v2722_v40  ;;  %3323 = vmatmul.f32.gmra.mxu0 %v2726_v26  ;;  %v6617_v40 = vpop.f32.mrf.mxu3  ;;  %v6634_v5 = vsel %vm1416_vm6, %v6340_v41, %v2453_v8 }
 0x21c   : > { %2987 = vmatmul.f32.gmra.mxu2 %v2723_v44  ;;  %3326 = vmatmul.f32.gmra.mxu0 %v2727_v60  ;;  %v6628_v38 = vpop.f32.mrf.mxu3 }
 0x220   : > { %v1713_v37 = vpop.f32.mrf.mxu0 }
 0x221   : > { %v1714_v44 = vadd.f32 %v6527_v20, %v1713_v37  ;;  %v1812_v37 = vadd.f32 %v6279_v3, %v1699_v10 }
 0x222   : > { %v2451_v63 = vpop.permute.xlu1 %2450 }
 0x223   : > { %v6624_v36 = vsel %vm1416_vm6, %v6317_v6, %v2451_v63  ;;  %v1827_v16 = vadd.f32 %v6516_v51, %v1714_v44  ;;  %v1905_v58 = vmul.f32 0.01, %v1812_v37  ;;  %vm1873_vm8 = vcmp.ge.f32.partialorder %v1812_v37, 0.0 }
 0x224   : > { %2990 = vmatmul.f32.gmra.mxu2 %v2724_v57  ;;  %3329 = vmatmul.f32.gmra.mxu0 %v6624_v36  ;;  %v1696_v57 = vadd.f32 %v6527_v20, %v6542_v12 }
 0x225   : > { %v1910_v39 = vmul.f32 0.01, %v1827_v16  ;;  %vm1878_vm7 = vcmp.ge.f32.partialorder %v1827_v16, 0.0  ;;  %v6650_v10 = vsel %vm1873_vm8, %v1812_v37, %v1905_v58 }
 0x226   : > { %v6640_v63 = vpop.f32.mrf.mxu3  ;;  %v1809_v51 = vadd.f32 %v6247_v61, %v1696_v57  ;;  %v2041_v58 = vrot.slane %v6650_v10, 7 }
 0x227   : > { %v1942_v28 = vsel %vm1878_vm7, %v1827_v16, %v1910_v39 }
 0x228   : > { %v1979_v12 = vrot.slane %v1942_v28, 1  ;;  %v2049_v47 = vrot.slane %v1942_v28, 7  ;;  %v1904_v3 = vmul.f32 0.01, %v1809_v51  ;;  %vm1872_vm13 = vcmp.ge.f32.partialorder %v1809_v51, 0.0  ;;  %v2884_v28 = vld [vmem:[%s7859_s3 + $0x230] sm:$0xff] }
 0x229   : > { %3411 = vmatpush.msrb.mxu2 %v2884_v28 }
 0x22a   : > { %v6655_v39 = vsel %vm319_vm0, %v1979_v12, %v2049_v47 }
 0x22c   : > { %2993 = vmatmul.f32.gmra.mxu2 %v2725_v50  ;;  %3332 = vmatmul.f32.gmra.mxu0 %v6634_v5 }
 0x230   : > { %v1716_v35 = vpop.f32.mrf.mxu0 }
 0x231   : > { %v1717_v44 = vadd.f32 %v6527_v20, %v1716_v35 }
 0x232   : > { %v2455_v8 = vpop.permute.xlu0 %2454 }
 0x233   : > { %v1830_v50 = vadd.f32 %v6520_v48, %v1717_v44  ;;  %v6647_v4 = vsel %vm1416_vm6, %v6426_v7, %v2455_v8  ;;  %v1936_v44 = vsel %vm1872_vm13, %v1809_v51, %v1904_v3  ;;  %v8008_v3 = vrot.slane %v6554_v62, 1 }
 0x234   : > { %2996 = vmatmul.f32.gmra.mxu2 %v2726_v26  ;;  %3335 = vmatmul.f32.gmra.mxu0 %v6647_v4  ;;  %v2858_v26 = vld [vmem:[%s7859_s3 + $0x160] sm:$0xff]  ;;  %v1976_v32 = vrot.slane %v1936_v44, 1  ;;  %v2040_v51 = vrot.slane %v1936_v44, 7 }
 0x235   : > { %vm1879_vm9 = vcmp.ge.f32.partialorder %v1830_v50, 0.0  ;;  %v1911_v61 = vmul.f32 0.01, %v1830_v50  ;;  %3179 = vmatpush.msrb.mxu1 %v2858_v26 }
 0x236   : > { %v6652_v48 = vpop.f32.mrf.mxu3  ;;  %v6690_v44 = vsel %vm319_vm0, %v2040_v51, %v2041_v58 }
 0x237   : > { %v1943_v35 = vsel %vm1879_vm9, %v1830_v50, %v1911_v61  ;;  %v2241_v50 = vrot.slane %v6504_v55, 1 }
 0x238   : > { %v2050_v16 = vrot.slane %v1943_v35, 7  ;;  %v2123_v57 = vrot.slane %v1943_v35, 5  ;;  %v2261_v35 = vrot.slane %v6655_v39, 1 }
 0x239   : > { %v6677_v26 = vsel %vm509_vm1, %v2241_v50, %v8008_v3  ;;  %v6697_v50 = vsel %vm319_vm0, %v1976_v32, %v2040_v51  ;;  %v2857_v3 = vld [vmem:[%s7859_s3 + $0x158] sm:$0xff] }
 0x23a   : > { %v6665_v37 = vsel %vm319_vm0, %v2049_v47, %v2050_v16  ;;  %v6668_v8 = vsel %vm319_vm0, %v2050_v16, %v2123_v57  ;;  %8009 = vst [vmem:[#allocation19_spill] sm:$0xff] %v6677_v26  ;;  %3180 = vmatpush.msrb.mxu1 %v2857_v3  ;;  %v2246_v32 = vrot.slane %v6697_v50, 1 }
 0x23b   : > { %v2262_v12 = vrot.slane %v6665_v37, 1  ;;  %v2264_v61 = vrot.slane %v6668_v8, 1 }
 0x23c   : > { %2999 = vmatmul.f32.gmra.mxu2 %v2727_v60 }
 0x23d   : > { %v6680_v47 = vsel %vm509_vm1, %v2262_v12, %v2264_v61  ;;  %v6683_v16 = vsel %vm509_vm1, %v2261_v35, %v2262_v12  ;;  %v1702_v12 = vadd.f32 %v6527_v20, %v6591_v34  ;;  %v1705_v61 = vadd.f32 %v6527_v20, %v6599_v33 }
 0x23e   : > { %8010 = vst [vmem:[#allocation23_spill] sm:$0xff] %v6680_v47  ;;  %v4411_v57 = vpack.i.bf16 %v6680_v47, %v6677_v26  ;;  %v4406_v28 = vpack.i.bf16 %v6683_v16, %v6472_v17  ;;  %v7904_v35 = vrot.slane %v6690_v44, 1 }
 0x23f   : > { %8011 = vst [vmem:[#allocation24_spill] sm:$0xff] %v6683_v16  ;;  %v1815_v34 = vadd.f32 %v6319_v9, %v1702_v12  ;;  %v1818_v51 = vadd.f32 %v6395_v31, %v1705_v61  ;;  %v1708_v31 = vadd.f32 %v6527_v20, %v6603_v25  ;;  %v2120_v61 = vrot.slane %v6650_v10, 5  ;;  %v2856_v25 = vld [vmem:[%s7859_s3 + $0x150] sm:$0xff] }
 0x240   : > { %v6692_v60 = vpop.f32.mrf.mxu3  ;;  %4412 = vrot.lane.b32.xlu2 %v4411_v57, %s4679_s11  ;;  %4407 = vrot.lane.b32.xlu1 %v4406_v28, %s4679_s11  ;;  %v1726_v57 = vadd.f32 %v6527_v20, %v6617_v40  ;;  %v1838_v28 = vpop.f32.mrf.mxu1  ;;  %v6716_v33 = vsel %vm509_vm1, %v2246_v32, %v7904_v35  ;;  %v1711_v40 = vadd.f32 %v6527_v20, %v6610_v56  ;;  %v2883_v35 = vld [vmem:[%s7859_s3 + $0x228] sm:$0xff] }
 0x241   : > { %8012 = vst [vmem:[#allocation25_spill] sm:$0xff] %v6716_v33  ;;  %v4421_v16 = vpack.i.bf16 %v6586_v11, %v6716_v33  ;;  %v1907_v9 = vmul.f32 0.01, %v1818_v51  ;;  %vm1874_vm14 = vcmp.ge.f32.partialorder %v1815_v34, 0.0  ;;  %vm1875_vm15 = vcmp.ge.f32.partialorder %v1818_v51, 0.0  ;;  %3181 = vmatpush.msrb.mxu1 %v2856_v25  ;;  %3412 = vmatpush.msrb.mxu2 %v2883_v35 }
 0x242   : > { %v1839_v47 = vadd.f32 %v1838_v28, %v1726_v57  ;;  %v1824_v57 = vadd.f32 %v6512_v13, %v1711_v40  ;;  %v1729_v13 = vadd.f32 %v6527_v20, %v6628_v38 }
 0x243   : > { %v6730_v28 = vsel %vm1875_vm15, %v1818_v51, %v1907_v9 }
 0x244   : > { %3002 = vmatmul.f32.gmra.mxu2 %v6624_v36  ;;  %v1906_v36 = vmul.f32 0.01, %v1815_v34  ;;  %v1914_v12 = vmul.f32 0.01, %v1839_v47  ;;  %vm1882_vm10 = vcmp.ge.f32.partialorder %v1839_v47, 0.0  ;;  %vm1877_vm11 = vcmp.ge.f32.partialorder %v1824_v57, 0.0 }
 0x245   : > { %v1909_v10 = vmul.f32 0.01, %v1824_v57 }
 0x246   : > { %v1938_v56 = vsel %vm1874_vm14, %v1815_v34, %v1906_v36  ;;  %v1946_v32 = vsel %vm1882_vm10, %v1839_v47, %v1914_v12  ;;  %v7907_v47 = vrot.slane %v6730_v28, 7 }
 0x247   : > { %v1977_v34 = vrot.slane %v1938_v56, 1  ;;  %v1981_v36 = vrot.slane %v1946_v32, 1  ;;  %v2055_v9 = vrot.slane %v1946_v32, 7  ;;  %v1941_v12 = vsel %vm1877_vm11, %v1824_v57, %v1909_v10 }
 0x248   : > { %v6722_v3 = vpop.f32.mrf.mxu3  ;;  %4422 = vrot.lane.b32.xlu1 %v4421_v16, %s4679_s11  ;;  %v1821_v16 = vadd.f32 %v6452_v46, %v1708_v31  ;;  %v2043_v46 = vrot.slane %v1938_v56, 7  ;;  %v2047_v57 = vrot.slane %v1941_v12, 7  ;;  %v2122_v25 = vrot.slane %v1941_v12, 5 }
 0x24a   : > { %v1908_v40 = vmul.f32 0.01, %v1821_v16  ;;  %vm1876_vm12 = vcmp.ge.f32.partialorder %v1821_v16, 0.0  ;;  %v6756_v32 = vsel %vm319_vm0, %v1977_v34, %v2043_v46  ;;  %v2855_v34 = vld [vmem:[%s7859_s3 + $0x148] sm:$0xff] }
 0x24b   : > { %3182 = vmatpush.msrb.mxu1 %v2855_v34 }
 0x24c   : > { %3005 = vmatmul.f32.gmra.mxu2 %v6634_v5  ;;  %v6742_v5 = vsel %vm319_vm0, %v2041_v58, %v2120_v61  ;;  %v6750_v58 = vsel %vm319_vm0, %v2043_v46, %v7907_v47  ;;  %v1940_v35 = vsel %vm1876_vm12, %v1821_v16, %v1908_v40  ;;  %v6753_v61 = vsel %vm319_vm0, %v1981_v36, %v2055_v9 }
 0x24d   : > { %v2249_v38 = vrot.slane %v6742_v5, 1  ;;  %v2046_v33 = vrot.slane %v1940_v35, 7  ;;  %v2271_v36 = vrot.slane %v6753_v61, 1 }
 0x250   : > { %v1841_v51 = vpop.f32.mrf.mxu3 }
 0x251   : > { %v1842_v31 = vadd.f32 %v1841_v51, %v1729_v13  ;;  %v2252_v51 = vrot.slane %v6750_v58, 1 }
 0x253   : > { %vm1883_vm4 = vcmp.ge.f32.partialorder %v1842_v31, 0.0  ;;  %v1915_v11 = vmul.f32 0.01, %v1842_v31 }
 0x254   : > { %3008 = vmatmul.f32.gmra.mxu2 %v6647_v4  ;;  %v1732_v4 = vadd.f32 %v6527_v20, %v6640_v63 }
 0x255   : > { %v1947_v56 = vsel %vm1883_vm4, %v1842_v31, %v1915_v11  ;;  %v2251_v11 = vrot.slane %v6756_v32, 1 }
 0x256   : > { %v2056_v10 = vrot.slane %v1947_v56, 7  ;;  %v2125_v13 = vrot.slane %v1947_v56, 5  ;;  %v6780_v56 = vsel %vm319_vm0, %v2046_v33, %v2047_v57 }
 0x258   : > { %v6762_v47 = vsel %vm319_vm0, %v2055_v9, %v2056_v10  ;;  %v1844_v16 = vpop.f32.mrf.mxu3  ;;  %v6765_v40 = vsel %vm319_vm0, %v2056_v10, %v2125_v13  ;;  %v8013_v9 = vrot.slane %v6690_v44, 1  ;;  %v6783_v10 = vsel %vm319_vm0, %v2047_v57, %v2122_v25 }
 0x259   : > { %v1845_v46 = vadd.f32 %v1844_v16, %v1732_v4  ;;  %v2272_v63 = vrot.slane %v6762_v47, 1  ;;  %v2274_v31 = vrot.slane %v6765_v40, 1  ;;  %v6789_v16 = vsel %vm509_vm1, %v2251_v11, %v2252_v51 }
 0x25a   : > { %v6777_v12 = vsel %vm509_vm1, %v8013_v9, %v2249_v38  ;;  %8016 = vst [vmem:[#allocation28_spill] sm:$0xff] %v6789_v16  ;;  %v2257_v57 = vrot.slane %v6780_v56, 1  ;;  %v2259_v25 = vrot.slane %v6783_v10, 1  ;;  %v1735_v11 = vadd.f32 %v6527_v20, %v6652_v48 }
 0x25b   : > { %8014 = vst [vmem:[#allocation26_spill] sm:$0xff] %v6777_v12  ;;  %v1916_v13 = vmul.f32 0.01, %v1845_v46  ;;  %v6786_v4 = vsel %vm509_vm1, %v2271_v36, %v2272_v63  ;;  %v6792_v34 = vsel %vm509_vm1, %v2272_v63, %v2274_v31  ;;  %vm1884_vm5 = vcmp.ge.f32.partialorder %v1845_v46, 0.0 }
 0x25c   : > { %8015 = vst [vmem:[#allocation27_spill] sm:$0xff] %v6786_v4  ;;  %v4426_v38 = vpack.i.bf16 %v6786_v4, %v6777_v12  ;;  %v4431_v9 = vpack.i.bf16 %v6792_v34, %v6789_v16  ;;  %v2121_v63 = vrot.slane %v6730_v28, 5  ;;  %v6806_v4 = vsel %vm509_vm1, %v2257_v57, %v2259_v25 }
 0x25d   : > { %8017 = vst [vmem:[#allocation29_spill] sm:$0xff] %v6792_v34  ;;  %v1948_v36 = vsel %vm1884_vm5, %v1845_v46, %v1916_v13  ;;  %v2882_v34 = vld [vmem:[%s7859_s3 + $0x220] sm:$0xff]  ;;  %v1978_v16 = vrot.slane %v1940_v35, 1  ;;  %v4446_v48 = vpack.i.bf16 %v6026_v15, %v6806_v4  ;;  %v8019_v46 = vrot.slane %v6730_v28, 7 }
 0x25e   : > { %4427 = vrot.lane.b32.xlu2 %v4426_v38, %s4679_s11  ;;  %4432 = vrot.lane.b32.xlu0 %v4431_v9, %s4679_s11  ;;  %8018 = vst [vmem:[#allocation30_spill] sm:$0xff] %v6806_v4  ;;  %v1982_v12 = vrot.slane %v1948_v36, 1  ;;  %v2058_v38 = vrot.slane %v1948_v36, 7 }
 0x25f   : > { %3413 = vmatpush.msrb.mxu2 %v2882_v34  ;;  %v6816_v13 = vsel %vm319_vm0, %v8019_v46, %v2121_v63  ;;  %v6824_v34 = vsel %vm319_vm0, %v1978_v16, %v2046_v33 }
 0x260   : > { %v1847_v31 = vpop.f32.mrf.mxu3  ;;  %v2254_v36 = vrot.slane %v6816_v13, 1 }
 0x261   : > { %v1848_v26 = vadd.f32 %v1847_v31, %v1735_v11  ;;  %v2282_v11 = vrot.slane %v6082_v2, 2  ;;  %v6820_v31 = vsel %vm319_vm0, %v1982_v12, %v2058_v38  ;;  %v2854_v12 = vld [vmem:[%s7859_s3 + $0x140] sm:$0xff] }
 0x262   : > { %v2276_v16 = vrot.slane %v6820_v31, 1  ;;  %3183 = vmatpush.msrb.mxu1 %v2854_v12 }
 0x263   : > { %vm1885_vm3 = vcmp.ge.f32.partialorder %v1848_v26, 0.0  ;;  %v1917_v9 = vmul.f32 0.01, %v1848_v26 }
 0x265   : > { %v1949_v25 = vsel %vm1885_vm3, %v1848_v26, %v1917_v9  ;;  %v2281_v26 = vrot.slane %v6073_v43, 2  ;;  %v2256_v9 = vrot.slane %v6824_v34, 1 }
 0x266   : > { %v2059_v35 = vrot.slane %v1949_v25, 7  ;;  %v2126_v17 = vrot.slane %v1949_v25, 5  ;;  %4447 = vrot.lane.b32.xlu0 %v4446_v48, %s4679_s11  ;;  %v6851_v25 = vsel %vm509_vm1, %v2252_v51, %v2254_v36  ;;  %v2289_v51 = vrot.slane %v6101_v45, 2 }
 0x267   : > { %v2286_v36 = vrot.slane %v6026_v15, 2 }
 0x268   : > { %v6828_v28 = vsel %vm319_vm0, %v2058_v38, %v2059_v35  ;;  %v6831_v63 = vsel %vm319_vm0, %v2059_v35, %v2126_v17  ;;  %v6842_v38 = vsel %vm585_vm2, %v2281_v26, %v2282_v11  ;;  %v6845_v17 = vsel %vm509_vm1, %v2256_v9, %v2257_v57 }
 0x269   : > { %v2277_v48 = vrot.slane %v6828_v28, 1  ;;  %v2279_v33 = vrot.slane %v6831_v63, 1  ;;  %v4461_v26 = vpack.i.bf16 %v6842_v38, %v6082_v2  ;;  %v2287_v57 = vrot.slane %v6036_v52, 2  ;;  %v2853_v2 = vld [vmem:[%s7859_s3 + $0x138] sm:$0xff] }
 0x26a   : > { %v2294_v9 = vrot.slane %v6162_v1, 2  ;;  %3184 = vmatpush.msrb.mxu1 %v2853_v2 }
 0x26b   : > { %v6848_v46 = vsel %vm509_vm1, %v2277_v48, %v2279_v33  ;;  %v6854_v35 = vsel %vm509_vm1, %v2276_v16, %v2277_v48  ;;  %v2292_v48 = vrot.slane %v6159_v27, 2  ;;  %v6871_v33 = vsel %vm585_vm2, %v2286_v36, %v2287_v57 }
 0x26c   : > { %8020 = vst [vmem:[#allocation31_spill] sm:$0xff] %v6848_v46  ;;  %v4441_v4 = vpack.i.bf16 %v6848_v46, %v6845_v17  ;;  %v4436_v12 = vpack.i.bf16 %v6854_v35, %v6851_v25  ;;  %v4451_v45 = vpack.i.bf16 %v6871_v33, %v6036_v52  ;;  %v2291_v52 = vrot.slane %v6143_v42, 2  ;;  %v2879_v46 = vld [vmem:[%s7859_s3 + $0x208] sm:$0xff] }
 0x26d   : > { %8021 = vst [vmem:[#allocation32_spill] sm:$0xff] %v6854_v35  ;;  %v6884_v1 = vsel %vm585_vm2, %v2292_v48, %v2294_v9  ;;  %v2881_v9 = vld [vmem:[%s7859_s3 + $0x218] sm:$0xff] }
 0x26e   : > { %4442 = vrot.lane.b32.xlu2 %v4441_v4, %s4679_s11  ;;  %4437 = vrot.lane.b32.xlu1 %v4436_v12, %s4679_s11  ;;  %v6877_v4 = vsel %vm585_vm2, %v2287_v57, %v2289_v51  ;;  %v4476_v16 = vpack.i.bf16 %v6884_v1, %v6205_v23  ;;  %v2302_v12 = vrot.slane %v6265_v21, 2  ;;  %v6896_v57 = vsel %vm585_vm2, %v2291_v52, %v2292_v48 }
 0x26f   : > { %4462 = vrot.lane.b32.xlu0 %v4461_v26, %s4679_s11  ;;  %v4456_v15 = vpack.i.bf16 %v6877_v4, %v6073_v43  ;;  %v2284_v26 = vrot.slane %v6085_v49, 2  ;;  %v2301_v43 = vrot.slane %v6261_v18, 2  ;;  %v4471_v2 = vpack.i.bf16 %v6896_v57, %v6159_v27  ;;  %3414 = vmatpush.msrb.mxu2 %v2881_v9 }
 0x270   : > { %v2307_v27 = vrot.slane %v6340_v41, 2  ;;  %v2304_v9 = vrot.slane %v6268_v53, 2 }
 0x271   : > { %v6899_v51 = vsel %vm585_vm2, %v2301_v43, %v2302_v12  ;;  %v6902_v36 = vsel %vm585_vm2, %v2282_v11, %v2284_v26  ;;  %v2299_v11 = vrot.slane %v6224_v29, 2  ;;  %v2317_v43 = vrot.slane %v6554_v62, 2 }
 0x272   : > { %v4466_v49 = vpack.i.bf16 %v6902_v36, %v6143_v42  ;;  %v4491_v48 = vpack.i.bf16 %v6899_v51, %v6265_v21  ;;  %v2309_v42 = vrot.slane %v6343_v0, 2  ;;  %v2852_v21 = vld [vmem:[%s7859_s3 + $0x130] sm:$0xff] }
 0x273   : > { %3185 = vmatpush.msrb.mxu1 %v2852_v21  ;;  %v2851_v21 = vld [vmem:[%s7859_s3 + $0x128] sm:$0xff] }
 0x274   : > { %v6935_v0 = vsel %vm585_vm2, %v2307_v27, %v2309_v42  ;;  %v1850_v42 = vpop.f32.mrf.mxu3 }
 0x275   : > { %v4506_v52 = vpack.i.bf16 %v6935_v0, %v6426_v7  ;;  %3186 = vmatpush.msrb.mxu1 %v2851_v21 }
 0x276   : > { %4452 = vrot.lane.b32.xlu1 %v4451_v45, %s4679_s11  ;;  %4457 = vrot.lane.b32.xlu2 %v4456_v15, %s4679_s11  ;;  %v2297_v45 = vrot.slane %v6221_v19, 2  ;;  %v2296_v15 = vrot.slane %v6205_v23, 2 }
 0x277   : > { %4477 = vrot.lane.b32.xlu0 %v4476_v16, %s4679_s11 }
 0x278   : > { %v6922_v16 = vsel %vm585_vm2, %v2296_v15, %v2297_v45  ;;  %v6928_v26 = vsel %vm585_vm2, %v2297_v45, %v2299_v11  ;;  %v2312_v15 = vrot.slane %v6444_v54, 2 }
 0x279   : > { %v4481_v29 = vpack.i.bf16 %v6922_v16, %v6221_v19  ;;  %v4486_v23 = vpack.i.bf16 %v6928_v26, %v6261_v18  ;;  %v2306_v19 = vrot.slane %v6317_v6, 2  ;;  %v2316_v18 = vrot.slane %v6504_v55, 2 }
 0x27e   : > { %4467 = vrot.lane.b32.xlu1 %v4466_v49, %s4679_s11  ;;  %4472 = vrot.lane.b32.xlu2 %v4471_v2, %s4679_s11  ;;  %v6947_v49 = vsel %vm585_vm2, %v2306_v19, %v2307_v27  ;;  %v6950_v2 = vsel %vm585_vm2, %v2316_v18, %v2317_v43  ;;  %v2314_v27 = vrot.slane %v6447_v30, 2  ;;  %v2319_v19 = vrot.slane %v6557_v59, 2 }
 0x27f   : > { %4492 = vrot.lane.b32.xlu0 %v4491_v48, %s4679_s11  ;;  %v6953_v48 = vsel %vm585_vm2, %v2302_v12, %v2304_v9  ;;  %v4501_v53 = vpack.i.bf16 %v6947_v49, %v6340_v41  ;;  %v4521_v11 = vpack.i.bf16 %v6950_v2, %v6554_v62  ;;  %v2311_v12 = vrot.slane %v6426_v7, 2  ;;  %v2880_v7 = vld [vmem:[%s7859_s3 + $0x210] sm:$0xff] }
 0x280   : > { %v4496_v45 = vpack.i.bf16 %v6953_v48, %v6317_v6  ;;  %v2324_v6 = vrot.slane %v6742_v5, 2  ;;  %v2322_v41 = vrot.slane %v6690_v44, 2  ;;  %3415 = vmatpush.msrb.mxu2 %v2880_v7  ;;  %v2332_v18 = vrot.slane %v6780_v56, 2  ;;  %v2850_v7 = vld [vmem:[%s7859_s3 + $0x120] sm:$0xff] }
 0x281   : > { %v1741_v59 = vadd.f32 %v6527_v20, %v6722_v3  ;;  %v1738_v3 = vadd.f32 %v6527_v20, %v6692_v60  ;;  %3187 = vmatpush.msrb.mxu1 %v2850_v7  ;;  %v2337_v20 = vrot.slane %v6665_v37, 2  ;;  %v2329_v60 = vrot.slane %v6816_v13, 2 }
 0x282   : > { %3416 = vmatpush.msrb.mxu2 %v2879_v46 }
 0x286   : > { %4482 = vrot.lane.b32.xlu1 %v4481_v29, %s4679_s11  ;;  %4487 = vrot.lane.b32.xlu2 %v4486_v23, %s4679_s11  ;;  %v6973_v29 = vsel %vm585_vm2, %v2311_v12, %v2312_v15  ;;  %v6976_v23 = vsel %vm585_vm2, %v2312_v15, %v2314_v27  ;;  %v1853_v15 = vpop.f32.mrf.mxu3  ;;  %v7006_v27 = vsel %vm585_vm2, %v2317_v43, %v2319_v19  ;;  %v2339_v19 = vrot.slane %v6668_v8, 2  ;;  %v2842_v8 = vld [vmem:[%s7859_s3 + $0xe0] sm:$0xff] }
 0x287   : > { %4507 = vrot.lane.b32.xlu0 %v4506_v52, %s4679_s11  ;;  %v4511_v30 = vpack.i.bf16 %v6973_v29, %v6444_v54  ;;  %v4516_v5 = vpack.i.bf16 %v6976_v23, %v6504_v55  ;;  %v6986_v52 = vsel %vm585_vm2, %v2322_v41, %v2324_v6  ;;  %v4526_v21 = vpack.i.bf16 %v7006_v27, %v6697_v50 }
 0x288   : > { %v4536_v9 = vpack.i.bf16 %v6986_v52, %v6756_v32  ;;  %v1854_v43 = vadd.f32 %v1853_v15, %v1741_v59  ;;  %v2843_v15 = vld [vmem:[%s7859_s3 + $0xe8] sm:$0xff]  ;;  %v7045_v13 = vsel %vm585_vm2, %v2337_v20, %v2339_v19  ;;  %v2334_v19 = vrot.slane %v6783_v10, 2  ;;  %v2849_v10 = vld [vmem:[%s7859_s3 + $0x118] sm:$0xff] }
 0x289   : > { %8022 = vst [vmem:[#allocation33_spill] sm:$0xff] %v7045_v13  ;;  %3188 = vmatpush.msrb.mxu1 %v2849_v10 }
 0x28a   : > { %vm1887_vm7 = vcmp.ge.f32.partialorder %v1854_v43, 0.0 }
 0x28e   : > { %4497 = vrot.lane.b32.xlu1 %v4496_v45, %s4679_s11  ;;  %4502 = vrot.lane.b32.xlu2 %v4501_v53, %s4679_s11  ;;  %v2321_v45 = vrot.slane %v6697_v50, 2  ;;  %v2331_v53 = vrot.slane %v6824_v34, 2 }
 0x28f   : > { %4522 = vrot.lane.b32.xlu0 %v4521_v11, %s4679_s11  ;;  %v2845_v11 = vld [vmem:[%s7859_s3 + $0xf8] sm:$0xff] }
 0x290   : > { %v7001_v12 = vsel %vm585_vm2, %v2321_v45, %v2322_v41  ;;  %3063 = vmatpush.msrb.mxu3 %v2845_v11  ;;  %v7011_v6 = vsel %vm585_vm2, %v2331_v53, %v2332_v18  ;;  %v2844_v41 = vld [vmem:[%s7859_s3 + $0xf0] sm:$0xff]  ;;  %v1851_v45 = vadd.f32 %v1850_v42, %v1738_v3  ;;  %v2326_v53 = vrot.slane %v6756_v32, 2 }
 0x291   : > { %v1919_v11 = vmul.f32 0.01, %v1854_v43 }
 0x292   : > { %3064 = vmatpush.msrb.mxu3 %v2844_v41  ;;  %v1918_v59 = vmul.f32 0.01, %v1851_v45  ;;  %vm1886_vm8 = vcmp.ge.f32.partialorder %v1851_v45, 0.0 }
 0x293   : > { %v7050_v41 = vsel %vm1887_vm7, %v1854_v43, %v1919_v11  ;;  %v7062_v43 = vpop.f32.mrf.mxu2  ;;  %v2346_v11 = vrot.slane %v6753_v61, 2 }
 0x294   : > { %3065 = vmatpush.msrb.mxu3 %v2843_v15  ;;  %v2127_v35 = vrot.slane %v7050_v41, 5 }
 0x296   : > { %4512 = vrot.lane.b32.xlu1 %v4511_v30, %s4679_s11  ;;  %4517 = vrot.lane.b32.xlu2 %v4516_v5, %s4679_s11  ;;  %v4531_v30 = vpack.i.bf16 %v7001_v12, %v6690_v44  ;;  %v4551_v5 = vpack.i.bf16 %v7011_v6, %v6780_v56 }
 0x297   : > { %4537 = vrot.lane.b32.xlu0 %v4536_v9, %s4679_s11  ;;  %v2327_v9 = vrot.slane %v6750_v58, 2  ;;  %3066 = vmatpush.msrb.mxu3 %v2842_v8 }
 0x299   : > { %v7042_v42 = vsel %vm585_vm2, %v2326_v53, %v2327_v9  ;;  %v2336_v53 = vrot.slane %v6655_v39, 2 }
 0x29a   : > { %v4541_v7 = vpack.i.bf16 %v7042_v42, %v6750_v58 }
 0x29e   : > { %4527 = vrot.lane.b32.xlu1 %v4526_v21, %s4679_s11  ;;  %4532 = vrot.lane.b32.xlu2 %v4531_v30, %s4679_s11  ;;  %v7048_v21 = vsel %vm585_vm2, %v2327_v9, %v2329_v60  ;;  %v4566_v30 = vpack.i.bf16 %v7045_v13, %v6560_v24  ;;  %v7915_v9 = vrot.slane %v6762_v47, 2  ;;  %v2062_v60 = vrot.slane %v7050_v41, 7 }
 0x29f   : > { %4552 = vrot.lane.b32.xlu0 %v4551_v5, %s4679_s11  ;;  %v4546_v3 = vpack.i.bf16 %v7048_v21, %v6824_v34  ;;  %v1950_v5 = vsel %vm1886_vm8, %v1851_v45, %v1918_v59  ;;  %v2841_v45 = vld [vmem:[%s7859_s3 + $0xd8] sm:$0xff]  ;;  %v7072_v59 = vsel %vm585_vm2, %v2336_v53, %v2337_v20  ;;  %v7091_v20 = vsel %vm585_vm2, %v2332_v18, %v2334_v19 }
 0x2a0   : > { %v1983_v15 = vrot.slane %v1950_v5, 1  ;;  %v2061_v8 = vrot.slane %v1950_v5, 7  ;;  %8023 = vst [vmem:[#allocation34_spill] sm:$0xff] %v7072_v59  ;;  %3067 = vmatpush.msrb.mxu3 %v2841_v45  ;;  %v4556_v5 = vpack.i.bf16 %v7091_v20, %v6655_v39  ;;  %v4561_v53 = vpack.i.bf16 %v7072_v59, %v6665_v37 }
 0x2a1   : > { %v2342_v45 = vrot.slane %v6565_v14, 2  ;;  %v2341_v19 = vrot.slane %v6560_v24, 2 }
 0x2a2   : > { %v7101_v10 = vsel %vm319_vm0, %v1983_v15, %v2061_v8  ;;  %v2839_v15 = vld [vmem:[%s7859_s3 + $0xc8] sm:$0xff] }
 0x2a6   : > { %4542 = vrot.lane.b32.xlu1 %v4541_v7, %s4679_s11  ;;  %4547 = vrot.lane.b32.xlu2 %v4546_v3, %s4679_s11  ;;  %v2840_v7 = vld [vmem:[%s7859_s3 + $0xd0] sm:$0xff]  ;;  %v7083_v3 = vsel %vm585_vm2, %v2346_v11, %v7915_v9  ;;  %v2388_v9 = vrot.slane %v7101_v10, 1 }
 0x2a7   : > { %4567 = vrot.lane.b32.xlu0 %v4566_v30, %s4679_s11  ;;  %8024 = vst [vmem:[#allocation35_spill] sm:$0xff] %v7083_v3  ;;  %v7086_v30 = vsel %vm319_vm0, %v2061_v8, %v2062_v60  ;;  %3068 = vmatpush.msrb.mxu3 %v2840_v7  ;;  %v4581_v11 = vpack.i.bf16 %v7083_v3, %v6762_v47  ;;  %v2344_v7 = vrot.slane %v6568_v22, 2  ;;  %v7116_v8 = vpop.f32.mrf.mxu2  ;;  %v2838_v22 = vld [vmem:[%s7859_s3 + $0xc0] sm:$0xff] }
 0x2a8   : > { %v7924_v18 = vrot.slane %v7086_v30, 1 }
 0x2a9   : > { %3069 = vmatpush.msrb.mxu3 %v2839_v15  ;;  %v7133_v46 = vsel %vm585_vm2, %v2342_v45, %v2344_v7 }
 0x2aa   : > { %8026 = vst [vmem:[#allocation37_spill] sm:$0xff] %v7133_v46  ;;  %v4576_v59 = vpack.i.bf16 %v7133_v46, %v6753_v61  ;;  %v4418_v46 = vpop.permute.xlu0 %4417 }
 0x2ab   : > { %3070 = vmatpush.msrb.mxu3 %v2838_v22  ;;  %v2352_v22 = vrot.slane %v6828_v28, 2 }
 0x2ae   : > { %4557 = vrot.lane.b32.xlu1 %v4556_v5, %s4679_s11  ;;  %4562 = vrot.lane.b32.xlu2 %v4561_v53, %s4679_s11  ;;  %v7119_v5 = vsel %vm585_vm2, %v2341_v19, %v2342_v45  ;;  %v2349_v45 = vrot.slane %v6765_v40, 2  ;;  %v2836_v40 = vld [vmem:[%s7859_s3 + $0xb0] sm:$0xff] }
 0x2af   : > { %4582 = vrot.lane.b32.xlu0 %v4581_v11, %s4679_s11  ;;  %v7127_v11 = vsel %vm509_vm1, %v2388_v9, %v7924_v18  ;;  %v4571_v19 = vpack.i.bf16 %v7119_v5, %v6565_v14 }
 0x2b0   : > { %8025 = vst [vmem:[#allocation36_spill] sm:$0xff] %v7127_v11  ;;  %v4596_v9 = vpack.i.bf16 %v7101_v10, %v7127_v11 }
 0x2b2   : > { %v4408_v53 = vpop.permute.xlu1 %4407 }
 0x2b3   : > { %v4410_v3 = vunpack.i.h.bf16 %v4408_v53  ;;  %v4409_v13 = vunpack.i.l.bf16 %v4408_v53  ;;  %v4413_v53 = vpop.permute.xlu2 %4412 }
 0x2b4   : > { %v4415_v7 = vunpack.i.h.bf16 %v4413_v53 }
 0x2b5   : > { %v7137_v15 = vsel %vm1416_vm6, %v6655_v39, %v4410_v3  ;;  %v2731_v41 = vsel %vm1416_vm6, %v6444_v54, %v4409_v13  ;;  %v2175_v39 = vsel %vm319_vm0, %v2062_v60, %v2127_v35  ;;  %v2351_v3 = vrot.slane %v6820_v31, 2  ;;  %v2837_v54 = vld [vmem:[%s7859_s3 + $0xb8] sm:$0xff]  ;;  %v2848_v13 = vld [vmem:[%s7859_s3 + $0x110] sm:$0xff] }
 0x2b6   : > { %4572 = vrot.lane.b32.xlu1 %v4571_v19, %s4679_s11  ;;  %3038 = vmatmul.f32.vlgmr.msra.gmra.mxu3 %v7137_v15  ;;  %v2426_v60 = vrot.slane %v7086_v30, 2  ;;  %v7166_v19 = vpop.f32.mrf.mxu2  ;;  %v2391_v11 = vrot.slane %v2175_v39, 1 }
 0x2b7   : > { %4577 = vrot.lane.b32.xlu2 %v4576_v59, %s4679_s11  ;;  %4597 = vrot.lane.b32.xlu0 %v4596_v9, %s4679_s11  ;;  %v7163_v35 = vsel %vm585_vm2, %v2351_v3, %v2352_v22  ;;  %v2428_v59 = vrot.slane %v2175_v39, 2  ;;  %v4414_v9 = vunpack.i.l.bf16 %v4413_v53  ;;  %v2425_v39 = vrot.slane %v7101_v10, 2 }
 0x2b8   : > { %3011 = vmatmul.f32.gmra.mxu2 %v2731_v41  ;;  %3338 = vmatmul.f32.gmra.mxu0 %v2731_v41  ;;  %8027 = vst [vmem:[#allocation38_spill] sm:$0xff] %v7163_v35  ;;  %v8028_v41 = vrot.slane %v6762_v47, 2  ;;  %v4591_v3 = vpack.i.bf16 %v7163_v35, %v6828_v28 }
 0x2b9   : > { %3071 = vmatpush.msrb.mxu3 %v2837_v54  ;;  %3189 = vmatpush.msrb.mxu1 %v2848_v13  ;;  %v7177_v13 = vsel %vm1416_vm6, %v6665_v37, %v4415_v7  ;;  %v7184_v53 = vsel %vm585_vm2, %v2426_v60, %v2428_v59  ;;  %v2732_v37 = vsel %vm1416_vm6, %v6504_v55, %v4414_v9  ;;  %v2835_v7 = vld [vmem:[%s7859_s3 + $0xa8] sm:$0xff]  ;;  %v8030_v59 = vrot.slane %v7086_v30, 1  ;;  %v2834_v55 = vld [vmem:[%s7859_s3 + $0xa0] sm:$0xff] }
 0x2ba   : > { %v7171_v18 = vsel %vm585_vm2, %v8028_v41, %v2349_v45  ;;  %8029 = vst [vmem:[#allocation39_spill] sm:$0xff] %v7184_v53  ;;  %v2354_v45 = vrot.slane %v6831_v63, 2  ;;  %v7202_v41 = vsel %vm585_vm2, %v2425_v39, %v2426_v60  ;;  %v2847_v9 = vld [vmem:[%s7859_s3 + $0x108] sm:$0xff] }
 0x2bb   : > { %3072 = vmatpush.msrb.mxu3 %v2836_v40  ;;  %v4586_v54 = vpack.i.bf16 %v7171_v18, %v6820_v31  ;;  %v4420_v40 = vunpack.i.h.bf16 %v4418_v46  ;;  %v7199_v63 = vsel %vm509_vm1, %v8030_v59, %v2391_v11  ;;  %8032 = vst [vmem:[#allocation41_spill] sm:$0xff] %v7202_v41  ;;  %3190 = vmatpush.msrb.mxu1 %v2847_v9  ;;  %v4428_v9 = vpop.permute.xlu2 %4427 }
 0x2bc   : > { %8031 = vst [vmem:[#allocation40_spill] sm:$0xff] %v7199_v63  ;;  %v4606_v60 = vpack.i.bf16 %v7202_v41, %v7086_v30 }
 0x2bd   : > { %3073 = vmatpush.msrb.mxu3 %v2835_v7  ;;  %v7221_v39 = vsel %vm1416_vm6, %v6560_v24, %v4420_v40  ;;  %v4423_v7 = vpop.permute.xlu1 %4422  ;;  %v2833_v24 = vld [vmem:[%s7859_s3 + $0x98] sm:$0xff]  ;;  %v2846_v40 = vld [vmem:[%s7859_s3 + $0x100] sm:$0xff] }
 0x2be   : > { %4587 = vrot.lane.b32.xlu1 %v4586_v54, %s4679_s11  ;;  %3041 = vmatmul.f32.gmra.mxu3 %v7177_v13  ;;  %v4419_v54 = vunpack.i.l.bf16 %v4418_v46  ;;  %v4424_v59 = vunpack.i.l.bf16 %v4423_v7 }
 0x2bf   : > { %4592 = vrot.lane.b32.xlu2 %v4591_v3, %s4679_s11  ;;  %2678 = vrot.lane.b32.xlu0 %v7184_v53, %s4679_s11  ;;  %v7211_v3 = vsel %vm585_vm2, %v2352_v22, %v2354_v45  ;;  %v2878_v22 = vld [vmem:[%s7859_s3 + $0x200] sm:$0xff]  ;;  %v4425_v45 = vunpack.i.h.bf16 %v4423_v7  ;;  %v2831_v7 = vld [vmem:[%s7859_s3 + $0x88] sm:$0xff] }
 0x2c0   : > { %3014 = vmatmul.f32.gmra.mxu2 %v2732_v37  ;;  %3341 = vmatmul.f32.gmra.mxu0 %v2732_v37  ;;  %8033 = vst [vmem:[#allocation42_spill] sm:$0xff] %v7211_v3  ;;  %v4601_v11 = vpack.i.bf16 %v7199_v63, %v7211_v3  ;;  %v7215_v37 = vpop.f32.mrf.mxu2  ;;  %v2733_v46 = vsel %vm1416_vm6, %v6554_v62, %v4419_v54  ;;  %v2832_v62 = vld [vmem:[%s7859_s3 + $0x90] sm:$0xff]  ;;  %v8034_v53 = vld [vmem:[#allocation5_spill] sm:$0xff] }
 0x2c1   : > { %3074 = vmatpush.msrb.mxu3 %v2834_v55  ;;  %3417 = vmatpush.msrb.mxu2 %v2878_v22  ;;  %v7242_v55 = vsel %vm1416_vm6, %v6565_v14, %v4425_v45  ;;  %v2830_v14 = vld [vmem:[%s7859_s3 + $0x80] sm:$0xff]  ;;  %v4429_v22 = vunpack.i.l.bf16 %v4428_v9 }
 0x2c2   : > { %3191 = vmatpush.msrb.mxu1 %v2846_v40 }
 0x2c3   : > { %3075 = vmatpush.msrb.mxu3 %v2833_v24 }
 0x2c5   : > { %3076 = vmatpush.msrb.mxu3 %v2832_v62 }
 0x2c6   : > { %4602 = vrot.lane.b32.xlu1 %v4601_v11, %s4679_s11  ;;  %3044 = vmatmul.f32.gmra.mxu3 %v7221_v39  ;;  %v2734_v11 = vsel %vm1416_vm6, %v6697_v50, %v4424_v59  ;;  %v2735_v50 = vsel %vm1416_vm6, %v6690_v44, %v4429_v22 }
 0x2c7   : > { %4607 = vrot.lane.b32.xlu2 %v4606_v60, %s4679_s11  ;;  %3077 = vmatpush.msrb.mxu3 %v2831_v7  ;;  %s3658_s11 = sshll.u32 %s3655_s15, 4  ;;  %s3659_s11 = int_to_ptr.hbm [resolvable:$true] %s3658_s11 }
 0x2c8   : > { %3017 = vmatmul.f32.gmra.mxu2 %v2733_v46  ;;  %3344 = vmatmul.f32.gmra.mxu0 %v2733_v46  ;;  %v7245_v54 = vpop.f32.mrf.mxu2  ;;  %v4430_v46 = vunpack.i.h.bf16 %v4428_v9  ;;  %s4628_s30 = sshra.s32 %s3659_s11, 4  ;;  %s4629_s30 = int_to_ptr.hbm [resolvable:$true] %s4628_s30 }
 0x2c9   : > { %3078 = vmatpush.msrb.mxu3 %v2830_v14  ;;  %s4630_s6 = scalar_lea.hbm %s4629_s30, 256  ;;  %p4635_p0 = scmp.lt.s32.totalorder %s4629_s30, %s7861_s5 }
 0x2ca   : > { %v7257_v24 = vsel %vm1416_vm6, %v6753_v61, %v4430_v46  ;;  %v4443_v46 = vpop.permute.xlu2 %4442  ;;  %p4631_p11 = scmp.ne.s32.totalorder %s4629_s30, %s4630_s6  ;;  %p4636_p1 = scmp.lt.s32.totalorder %s4634_s17, %s4630_s6 }
 0x2cc   : > { %p4632_p12 = pnand %p4631_p11, %p4755_p5  ;;  %p4637_p2 = por %p4636_p1, %p4635_p0 }
 0x2ce   : > { %3047 = vmatmul.f32.gmra.mxu3 %v7242_v55  ;;  %p4633_p13 = pneg %p4632_p12 }
 0x2d0   : > { %3020 = vmatmul.f32.gmra.mxu2 %v2734_v11  ;;  %3347 = vmatmul.f32.gmra.mxu0 %v2734_v11  ;;  %v4433_v60 = vpop.permute.xlu0 %4432  ;;  %v7262_v40 = vpop.f32.mrf.mxu2  ;;  %p4638_p3 = pnand %p4637_p2, %p4633_p13 }
 0x2d1   : > { %v4435_v62 = vunpack.i.h.bf16 %v4433_v60  ;;  %v4434_v59 = vunpack.i.l.bf16 %v4433_v60 }
 0x2d2   : > { %v4458_v63 = vpop.permute.xlu2 %4457 }
 0x2d3   : > { %v7266_v9 = vsel %vm1416_vm6, %v6762_v47, %v4435_v62  ;;  %v2736_v61 = vsel %vm1416_vm6, %v6756_v32, %v4434_v59 }
 0x2d6   : > { %3050 = vmatmul.f32.gmra.mxu3 %v7257_v24 }
 0x2d8   : > { %3023 = vmatmul.f32.gmra.mxu2 %v2735_v50  ;;  %3350 = vmatmul.f32.gmra.mxu0 %v2735_v50  ;;  %v4448_v45 = vpop.permute.xlu0 %4447  ;;  %v7273_v14 = vpop.f32.mrf.mxu2  ;;  %v4445_v50 = vunpack.i.h.bf16 %v4443_v46 }
 0x2de   : > { %3053 = vmatmul.f32.gmra.mxu3 %v7266_v9 }
 0x2e0   : > { %3026 = vmatmul.f32.gmra.mxu2 %v2736_v61  ;;  %3353 = vmatmul.f32.gmra.mxu0 %v2736_v61  ;;  %v4438_v11 = vpop.permute.xlu1 %4437  ;;  %v4444_v61 = vunpack.i.l.bf16 %v4443_v46 }
 0x2e1   : > { %v4440_v44 = vunpack.i.h.bf16 %v4438_v11  ;;  %v7271_v7 = vpop.permute.xlu0 %4462  ;;  %v4439_v22 = vunpack.i.l.bf16 %v4438_v11 }
 0x2e2   : > { %v4465_v3 = vunpack.i.h.bf16 %v7271_v7 }
 0x2e3   : > { %v7277_v60 = vsel %vm1416_vm6, %v6820_v31, %v4440_v44  ;;  %v2737_v47 = vsel %vm1416_vm6, %v6750_v58, %v4439_v22  ;;  %v7286_v31 = vpop.f32.mrf.mxu2  ;;  %v7290_v44 = vsel %vm1416_vm6, %v6828_v28, %v4445_v50  ;;  %v4460_v58 = vunpack.i.h.bf16 %v4458_v63 }
 0x2e4   : > { %v2738_v22 = vsel %vm1416_vm6, %v6824_v34, %v4444_v61 }
 0x2e6   : > { %3056 = vmatmul.f32.gmra.mxu3 %v7277_v60 }
 0x2e8   : > { %3029 = vmatmul.f32.gmra.mxu2 %v2737_v47  ;;  %3356 = vmatmul.f32.gmra.mxu0 %v2737_v47  ;;  %v4453_v32 = vpop.permute.xlu1 %4452  ;;  %v4450_v47 = vunpack.i.h.bf16 %v4448_v45 }
 0x2e9   : > { %v4455_v62 = vunpack.i.h.bf16 %v4453_v32  ;;  %v7282_v59 = vpop.permute.xlu0 %4477 }
 0x2ea   : > { %v2748_v28 = vsel %vm1416_vm6, %v6842_v38, %v4450_v47 }
 0x2eb   : > { %v2780_v11 = vsel %vm1416_vm6, %v8034_v53, %v4455_v62  ;;  %v4449_v53 = vunpack.i.l.bf16 %v4448_v45  ;;  %v8035_v62 = vld [vmem:[#allocation6_spill] sm:$0xff]  ;;  %v7301_v50 = vpop.f32.mrf.mxu2  ;;  %v4454_v45 = vunpack.i.l.bf16 %v4453_v32  ;;  %v4459_v32 = vunpack.i.l.bf16 %v4458_v63 }
 0x2ec   : > { %3192 = vmatmul.f32.vlgmr.msrb.gmra.mxu1 %v2780_v11  ;;  %v2781_v11 = vsel %vm1416_vm6, %v8035_v62, %v4460_v58  ;;  %v4464_v63 = vunpack.i.l.bf16 %v7271_v7 }
 0x2ed   : > { %v2739_v34 = vsel %vm1416_vm6, %v6780_v56, %v4449_v53  ;;  %v2749_v47 = vsel %vm1416_vm6, %v6902_v36, %v4454_v45  ;;  %v2750_v45 = vsel %vm1416_vm6, %v6871_v33, %v4459_v32  ;;  %v4480_v32 = vunpack.i.h.bf16 %v7282_v59 }
 0x2ee   : > { %3059 = vmatmul.f32.gmra.mxu3 %v7290_v44  ;;  %v2751_v33 = vsel %vm1416_vm6, %v6877_v4, %v4464_v63 }
 0x2f0   : > { %3032 = vmatmul.f32.gmra.mxu2 %v2738_v22  ;;  %3359 = vmatmul.f32.gmra.mxu0 %v2738_v22  ;;  %v4468_v46 = vpop.permute.xlu1 %4467  ;;  %v8036_v22 = vld [vmem:[#allocation14_spill] sm:$0xff] }
 0x2f1   : > { %v7295_v41 = vpop.permute.xlu0 %4492  ;;  %v2782_v58 = vsel %vm1416_vm6, %v8036_v22, %v4465_v3 }
 0x2f3   : > { %v7319_v53 = vpop.f32.mrf.mxu2 }
 0x2f4   : > { %3195 = vmatmul.f32.gmra.mxu1 %v2781_v11  ;;  %v4470_v11 = vunpack.i.h.bf16 %v4468_v46 }
 0x2f6   : > { %3079 = vmatmul.f32.vlgmr.msrb.gmra.mxu3 %v2748_v28  ;;  %v8037_v28 = vld [vmem:[#allocation21_spill] sm:$0xff] }
 0x2f7   : > { %v2783_v3 = vsel %vm1416_vm6, %v8037_v28, %v4470_v11  ;;  %v8038_v11 = vld [vmem:[#allocation7_spill] sm:$0xff] }
 0x2f8   : > { %3035 = vmatmul.f32.gmra.mxu2 %v2739_v34  ;;  %3362 = vmatmul.f32.gmra.mxu0 %v2739_v34  ;;  %v7306_v61 = vpop.permute.xlu1 %4482  ;;  %v4473_v34 = vpop.permute.xlu2 %4472 }
 0x2f9   : > { %v7310_v62 = vpop.permute.xlu0 %4507 }
 0x2fc   : > { %3198 = vmatmul.f32.gmra.mxu1 %v2782_v58 }
 0x2fe   : > { %3082 = vmatmul.f32.gmra.mxu3 %v2749_v47  ;;  %v7333_v47 = vpop.f32.mrf.mxu2 }
 0x300   : > { %3365 = vmatmul.f32.gmra.mxu0 %v7137_v15  ;;  %3760 = vmatmul.msk.f32.vlgmr.msrb.gmra.mxu2 %vm1416_vm6, %v6842_v38  ;;  %v7317_v56 = vpop.permute.xlu1 %4497  ;;  %v4475_v15 = vunpack.i.h.bf16 %v4473_v34  ;;  %v4488_v35 = vpop.permute.xlu2 %4487 }
 0x301   : > { %v7325_v22 = vpop.permute.xlu0 %4522 }
 0x302   : > { %v2784_v28 = vsel %vm1416_vm6, %v8038_v11, %v4475_v15  ;;  %v8039_v15 = vld [vmem:[#allocation18_spill] sm:$0xff] }
 0x303   : > { %v2785_v11 = vsel %vm1416_vm6, %v8039_v15, %v4480_v32  ;;  %v8041_v32 = vld [vmem:[#allocation12_spill] sm:$0xff] }
 0x304   : > { %3201 = vmatmul.f32.gmra.mxu1 %v2783_v3  ;;  %v4469_v3 = vunpack.i.l.bf16 %v4468_v46 }
 0x306   : > { %3085 = vmatmul.f32.gmra.mxu3 %v2750_v45  ;;  %v7347_v45 = vpop.f32.mrf.mxu0  ;;  %v7351_v4 = vpop.f32.mrf.mxu2  ;;  %v2752_v63 = vsel %vm1416_vm6, %v6842_v38, %v4469_v3  ;;  %v4490_v3 = vunpack.i.h.bf16 %v4488_v35 }
 0x307   : > { %8040 = vst [vmem:[#allocation5_spill] sm:$0xff] %v7351_v4  ;;  %v4510_v4 = vunpack.i.h.bf16 %v7310_v62 }
 0x308   : > { %3368 = vmatmul.f32.gmra.mxu0 %v7177_v13  ;;  %3761 = vmatmul.msk.f32.gmra.mxu2 %vm1416_vm6, %v6902_v36  ;;  %v7330_v58 = vpop.permute.xlu1 %4512 }
 0x309   : > { %v7340_v13 = vpop.permute.xlu0 %4537 }
 0x30c   : > { %3204 = vmatmul.f32.gmra.mxu1 %v2784_v28  ;;  %v4474_v28 = vunpack.i.l.bf16 %v4473_v34  ;;  %v4479_v34 = vunpack.i.l.bf16 %v7282_v59 }
 0x30e   : > { %3088 = vmatmul.f32.gmra.mxu3 %v2751_v33  ;;  %v2753_v38 = vsel %vm1416_vm6, %v6902_v36, %v4474_v28  ;;  %v2754_v36 = vsel %vm1416_vm6, %v6896_v57, %v4479_v34 }
 0x310   : > { %3371 = vmatmul.f32.gmra.mxu0 %v7221_v39  ;;  %3762 = vmatmul.msk.f32.gmra.mxu2 %vm1416_vm6, %v6896_v57  ;;  %v7345_v7 = vpop.permute.xlu1 %4527  ;;  %v4485_v39 = vunpack.i.h.bf16 %v7306_v61 }
 0x311   : > { %v7361_v33 = vpop.permute.xlu0 %4552 }
 0x312   : > { %v2786_v15 = vsel %vm1416_vm6, %v8041_v32, %v4485_v39  ;;  %v8043_v39 = vld [vmem:[#allocation22_spill] sm:$0xff] }
 0x313   : > { %v2787_v32 = vsel %vm1416_vm6, %v8043_v39, %v4490_v3  ;;  %v8045_v3 = vld [vmem:[#allocation13_spill] sm:$0xff] }
 0x314   : > { %3207 = vmatmul.f32.gmra.mxu1 %v2785_v11  ;;  %v7365_v11 = vpop.f32.mrf.mxu0 }
 0x316   : > { %3091 = vmatmul.f32.gmra.mxu3 %v2752_v63 }
 0x318   : > { %3374 = vmatmul.f32.gmra.mxu0 %v7242_v55  ;;  %3763 = vmatmul.msk.f32.gmra.mxu2 %vm1416_vm6, %v6884_v1  ;;  %v7359_v46 = vpop.permute.xlu1 %4542  ;;  %v7369_v55 = vpop.f32.mrf.mxu2 }
 0x319   : > { %8042 = vst [vmem:[#allocation6_spill] sm:$0xff] %v7369_v55 }
 0x31c   : > { %3210 = vmatmul.f32.gmra.mxu1 %v2786_v15  ;;  %v7379_v15 = vpop.permute.xlu0 %4567  ;;  %v7383_v28 = vpop.f32.mrf.mxu0 }
 0x31e   : > { %3094 = vmatmul.f32.gmra.mxu3 %v2753_v38  ;;  %v4484_v38 = vunpack.i.l.bf16 %v7306_v61  ;;  %v4489_v61 = vunpack.i.l.bf16 %v4488_v35  ;;  %v4494_v35 = vunpack.i.l.bf16 %v7295_v41 }
 0x320   : > { %3377 = vmatmul.f32.gmra.mxu0 %v7257_v24  ;;  %3764 = vmatmul.msk.f32.gmra.mxu2 %vm1416_vm6, %v6922_v16  ;;  %v7375_v63 = vpop.permute.xlu1 %4557  ;;  %v4495_v24 = vunpack.i.h.bf16 %v7295_v41  ;;  %v7389_v59 = vpop.f32.mrf.mxu2  ;;  %v2755_v57 = vsel %vm1416_vm6, %v6884_v1, %v4484_v38  ;;  %v2756_v1 = vsel %vm1416_vm6, %v6922_v16, %v4489_v61  ;;  %v8051_v61 = vld [vmem:[#allocation10_spill] sm:$0xff] }
 0x321   : > { %8044 = vst [vmem:[#allocation14_spill] sm:$0xff] %v7389_v59  ;;  %v4503_v59 = vpop.permute.xlu2 %4502 }
 0x322   : > { %v2788_v39 = vsel %vm1416_vm6, %v8045_v3, %v4495_v24  ;;  %v8047_v3 = vld [vmem:[#allocation17_spill] sm:$0xff] }
 0x324   : > { %3213 = vmatmul.f32.gmra.mxu1 %v2787_v32  ;;  %v7398_v34 = vpop.permute.xlu0 %4582 }
 0x326   : > { %3097 = vmatmul.f32.gmra.mxu3 %v2754_v36  ;;  %v7401_v36 = vpop.f32.mrf.mxu0 }
 0x328   : > { %3380 = vmatmul.f32.gmra.mxu0 %v7266_v9  ;;  %3765 = vmatmul.msk.f32.gmra.mxu2 %vm1416_vm6, %v6928_v26  ;;  %v7394_v32 = vpop.permute.xlu1 %4572  ;;  %v4500_v9 = vunpack.i.h.bf16 %v7317_v56  ;;  %v7406_v24 = vpop.f32.mrf.mxu2 }
 0x329   : > { %8046 = vst [vmem:[#allocation21_spill] sm:$0xff] %v7406_v24 }
 0x32c   : > { %3216 = vmatmul.f32.gmra.mxu1 %v2788_v39  ;;  %v2789_v39 = vsel %vm1416_vm6, %v8047_v3, %v4500_v9  ;;  %v7414_v55 = vpop.permute.xlu0 %4597 }
 0x32d   : > { %8048 = vst [vmem:[#allocation7_spill] sm:$0xff] %v7414_v55  ;;  %v4599_v3 = vunpack.i.l.bf16 %v7414_v55 }
 0x32e   : > { %3100 = vmatmul.f32.gmra.mxu3 %v2755_v57  ;;  %v4505_v57 = vunpack.i.h.bf16 %v4503_v59  ;;  %v7422_v9 = vpop.f32.mrf.mxu0 }
 0x32f   : > { %v2812_v41 = vsel %vm1416_vm6, %v7101_v10, %v4599_v3  ;;  %v4515_v3 = vunpack.i.h.bf16 %v7330_v58 }
 0x330   : > { %3383 = vmatmul.f32.gmra.mxu0 %v7277_v60  ;;  %3766 = vmatmul.msk.f32.gmra.mxu2 %vm1416_vm6, %v6899_v51  ;;  %v7412_v38 = vpop.permute.xlu1 %4587 }
 0x334   : > { %3219 = vmatmul.f32.gmra.mxu1 %v2789_v39  ;;  %v2790_v39 = vsel %vm1416_vm6, %v8051_v61, %v4505_v57 }
 0x336   : > { %3103 = vmatmul.f32.gmra.mxu3 %v2756_v1  ;;  %v2757_v1 = vsel %vm1416_vm6, %v6928_v26, %v4494_v35  ;;  %v8053_v26 = vld [vmem:[#allocation11_spill] sm:$0xff] }
 0x337   : > { %v2791_v35 = vsel %vm1416_vm6, %v8053_v26, %v4510_v4  ;;  %v8054_v26 = vld [vmem:[#allocation15_spill] sm:$0xff] }
 0x338   : > { %3386 = vmatmul.f32.gmra.mxu0 %v7290_v44  ;;  %3767 = vmatmul.msk.f32.gmra.mxu2 %vm1416_vm6, %v6953_v48 }
 0x339   : > { %v7420_v24 = vpop.f32.mrf.mxu3 }
 0x33a   : > { %8049 = vst [vmem:[#allocation18_spill] sm:$0xff] %v7420_v24  ;;  %v7434_v24 = vpop.permute.xlu1 %4602 }
 0x33b   : > { %v7425_v16 = vpop.f32.mrf.mxu2  ;;  %v4605_v57 = vunpack.i.h.bf16 %v7434_v24 }
 0x33c   : > { %8050 = vst [vmem:[#allocation12_spill] sm:$0xff] %v7425_v16  ;;  %3222 = vmatmul.f32.gmra.mxu1 %v2790_v39  ;;  %v4499_v16 = vunpack.i.l.bf16 %v7317_v56  ;;  %v7446_v39 = vpop.f32.mrf.mxu0 }
 0x33d   : > { %v2813_v56 = vsel %vm1416_vm6, %v7086_v30, %v4605_v57 }
 0x33e   : > { %3106 = vmatmul.f32.gmra.mxu3 %v2757_v1  ;;  %v2758_v10 = vsel %vm1416_vm6, %v6899_v51, %v4499_v16  ;;  %v4504_v1 = vunpack.i.l.bf16 %v4503_v59  ;;  %v4509_v59 = vunpack.i.l.bf16 %v7310_v62  ;;  %v4514_v62 = vunpack.i.l.bf16 %v7330_v58 }
 0x340   : > { %3389 = vmatmul.f32.gmra.mxu0 %v2812_v41  ;;  %3768 = vmatmul.msk.f32.gmra.mxu2 %vm1416_vm6, %v6947_v49  ;;  %v2759_v51 = vsel %vm1416_vm6, %v6953_v48, %v4504_v1  ;;  %v2760_v48 = vsel %vm1416_vm6, %v6947_v49, %v4509_v59  ;;  %v4525_v1 = vunpack.i.h.bf16 %v7325_v22  ;;  %v2761_v49 = vsel %vm1416_vm6, %v6935_v0, %v4514_v62 }
 0x341   : > { %v7439_v55 = vpop.f32.mrf.mxu3  ;;  %v4530_v59 = vunpack.i.h.bf16 %v7345_v7  ;;  %v4524_v62 = vunpack.i.l.bf16 %v7325_v22  ;;  %v4529_v22 = vunpack.i.l.bf16 %v7345_v7  ;;  %v4545_v7 = vunpack.i.h.bf16 %v7359_v46 }
 0x342   : > { %8052 = vst [vmem:[#allocation22_spill] sm:$0xff] %v7439_v55  ;;  %v4518_v55 = vpop.permute.xlu2 %4517 }
 0x343   : > { %v7442_v61 = vpop.f32.mrf.mxu2  ;;  %v4520_v30 = vunpack.i.h.bf16 %v4518_v55 }
 0x344   : > { %3225 = vmatmul.f32.gmra.mxu1 %v2791_v35  ;;  %v2792_v35 = vsel %vm1416_vm6, %v8054_v26, %v4515_v3  ;;  %v7463_v16 = vpop.f32.mrf.mxu0  ;;  %v8056_v3 = vld [vmem:[#allocation16_spill] sm:$0xff] }
 0x346   : > { %3109 = vmatmul.f32.gmra.mxu3 %v2758_v10 }
 0x348   : > { %3392 = vmatmul.f32.gmra.mxu0 %v2813_v56  ;;  %3769 = vmatmul.msk.f32.gmra.mxu2 %vm1416_vm6, %v6935_v0  ;;  %v2793_v56 = vsel %vm1416_vm6, %v8056_v3, %v4520_v30 }
 0x349   : > { %v7455_v41 = vpop.f32.mrf.mxu3 }
 0x34b   : > { %v7457_v4 = vpop.f32.mrf.mxu2 }
 0x34c   : > { %3228 = vmatmul.f32.gmra.mxu1 %v2792_v35 }
 0x34e   : > { %3112 = vmatmul.f32.gmra.mxu3 %v2759_v51  ;;  %v8058_v51 = vld [vmem:[#allocation19_spill] sm:$0xff] }
 0x34f   : > { %v2794_v30 = vsel %vm1416_vm6, %v8058_v51, %v4525_v1 }
 0x350   : > { %3395 = vmatmul.f32.gmra.mxu0 %v7277_v60  ;;  %3770 = vmatmul.msk.f32.gmra.mxu2 %vm1416_vm6, %v6973_v29  ;;  %v7478_v60 = vpop.f32.mrf.mxu0 }
 0x351   : > { %v7469_v57 = vpop.f32.mrf.mxu3 }
 0x352   : > { %8055 = vst [vmem:[#allocation13_spill] sm:$0xff] %v7469_v57 }
 0x353   : > { %v7471_v10 = vpop.f32.mrf.mxu2 }
 0x354   : > { %3231 = vmatmul.f32.gmra.mxu1 %v2793_v56  ;;  %v8060_v56 = vld [vmem:[#allocation8_spill] sm:$0xff] }
 0x356   : > { %3115 = vmatmul.f32.gmra.mxu3 %v2760_v48  ;;  %v2795_v48 = vsel %vm1416_vm6, %v8060_v56, %v4530_v59  ;;  %v2763_v56 = vsel %vm1416_vm6, %v6976_v23, %v4524_v62  ;;  %v2764_v62 = vsel %vm1416_vm6, %v6950_v2, %v4529_v22 }
 0x358   : > { %3398 = vmatmul.f32.gmra.mxu0 %v7290_v44  ;;  %3771 = vmatmul.msk.f32.gmra.mxu2 %vm1416_vm6, %v6976_v23  ;;  %v4519_v44 = vunpack.i.l.bf16 %v4518_v55  ;;  %v7527_v23 = vld [vmem:[%s7860_s4] ss:$0 sm:$0xff] }
 0x359   : > { %v7484_v26 = vpop.f32.mrf.mxu3 }
 0x35a   : > { %8057 = vst [vmem:[#allocation17_spill] sm:$0xff] %v7484_v26  ;;  %v4533_v26 = vpop.permute.xlu2 %4532  ;;  %v2762_v1 = vsel %vm1416_vm6, %v6973_v29, %v4519_v44  ;;  %v4540_v29 = vunpack.i.h.bf16 %v7340_v13 }
 0x35b   : > { %v7486_v35 = vpop.f32.mrf.mxu2  ;;  %v4535_v0 = vunpack.i.h.bf16 %v4533_v26 }
 0x35c   : > { %3234 = vmatmul.f32.gmra.mxu1 %v2794_v30 }
 0x35e   : > { %3118 = vmatmul.f32.gmra.mxu3 %v2761_v49  ;;  %v8062_v49 = vld [vmem:[#allocation25_spill] sm:$0xff] }
 0x35f   : > { %v2796_v59 = vsel %vm1416_vm6, %v8062_v49, %v4535_v0  ;;  %v2968_v49 = vadd.f32 %v7527_v23, %v7062_v43 }
 0x360   : > { %3772 = vmatmul.msk.f32.gmra.mxu2 %vm1416_vm6, %v6950_v2 }
 0x361   : > { %v7495_v3 = vpop.f32.mrf.mxu3 }
 0x362   : > { %8059 = vst [vmem:[#allocation10_spill] sm:$0xff] %v7495_v3  ;;  %v4548_v22 = vpop.permute.xlu2 %4547 }
 0x363   : > { %v7497_v58 = vpop.f32.mrf.mxu2  ;;  %v4550_v3 = vunpack.i.h.bf16 %v4548_v22 }
 0x364   : > { %3237 = vmatmul.f32.gmra.mxu1 %v2795_v48 }
 0x366   : > { %3121 = vmatmul.f32.gmra.mxu3 %v2762_v1 }
 0x368   : > { %3773 = vmatmul.msk.f32.gmra.mxu2 %vm1416_vm6, %v7006_v27 }
 0x369   : > { %v7506_v55 = vpop.f32.mrf.mxu3  ;;  %v3193_v51 = vpop.f32.mrf.mxu1 }
 0x36a   : > { %8061 = vst [vmem:[#allocation11_spill] sm:$0xff] %v7506_v55  ;;  %v8064_v55 = vld [vmem:[#allocation26_spill] sm:$0xff] }
 0x36b   : > { %v7508_v30 = vpop.f32.mrf.mxu2  ;;  %v2797_v0 = vsel %vm1416_vm6, %v8064_v55, %v4540_v29  ;;  %v4534_v55 = vunpack.i.l.bf16 %v4533_v26  ;;  %v2971_v26 = vadd.f32 %v7527_v23, %v7116_v8 }
 0x36c   : > { %3240 = vmatmul.f32.gmra.mxu1 %v2796_v59 }
 0x36e   : > { %3124 = vmatmul.f32.gmra.mxu3 %v2763_v56 }
 0x370   : > { %3774 = vmatmul.msk.f32.gmra.mxu2 %vm1416_vm6, %v7001_v12 }
 0x371   : > { %v7518_v44 = vpop.f32.mrf.mxu3  ;;  %v3196_v48 = vpop.f32.mrf.mxu1 }
 0x372   : > { %8063 = vst [vmem:[#allocation15_spill] sm:$0xff] %v7518_v44 }
 0x373   : > { %v7520_v1 = vpop.f32.mrf.mxu2 }
 0x374   : > { %3243 = vmatmul.f32.gmra.mxu1 %v2797_v0  ;;  %v8065_v0 = vld [vmem:[#allocation28_spill] sm:$0xff] }
 0x375   : > { %v2798_v2 = vsel %vm1416_vm6, %v8065_v0, %v4545_v7 }
 0x376   : > { %3127 = vmatmul.f32.gmra.mxu3 %v2764_v62  ;;  %v2765_v62 = vsel %vm1416_vm6, %v7006_v27, %v4534_v55 }
 0x378   : > { %3775 = vmatmul.msk.f32.gmra.mxu2 %vm1416_vm6, %v6986_v52 }
 0x379   : > { %v3080_v59 = vpop.f32.mrf.mxu3  ;;  %v3199_v56 = vpop.f32.mrf.mxu1 }
 0x37a   : > { %v3081_v29 = vadd.f32 %v3080_v59, %v2968_v49  ;;  %v4539_v49 = vunpack.i.l.bf16 %v7340_v13  ;;  %v4555_v13 = vunpack.i.h.bf16 %v7361_v33 }
 0x37b   : > { %v7536_v44 = vpop.f32.mrf.mxu2 }
 0x37c   : > { %3246 = vmatmul.f32.gmra.mxu1 %v2798_v2  ;;  %v3194_v43 = vadd.f32 %v3193_v51, %v3081_v29  ;;  %v2799_v51 = vsel %vm1416_vm6, %v6851_v25, %v4550_v3  ;;  %v2766_v8 = vsel %vm1416_vm6, %v7001_v12, %v4539_v49  ;;  %v4544_v25 = vunpack.i.l.bf16 %v7359_v46 }
 0x37e   : > { %3130 = vmatmul.f32.gmra.mxu3 %v2765_v62  ;;  %v3307_v0 = vadd.f32 %v7347_v45, %v3194_v43  ;;  %v2974_v45 = vadd.f32 %v7527_v23, %v7166_v19  ;;  %v2800_v19 = vsel %vm1416_vm6, %v6845_v17, %v4555_v13  ;;  %v2767_v46 = vsel %vm1416_vm6, %v6986_v52, %v4544_v25  ;;  %v7580_v13 = vpop.f32.mrf.mxu0 }
 0x380   : > { %3776 = vmatmul.msk.f32.gmra.mxu2 %vm1416_vm6, %v7042_v42 }
 0x381   : > { %v3083_v59 = vpop.f32.mrf.mxu3  ;;  %v3202_v57 = vpop.f32.mrf.mxu1 }
 0x382   : > { %v3084_v7 = vadd.f32 %v3083_v59, %v2971_v26 }
 0x383   : > { %v3419_v27 = vpop.f32.mrf.mxu2 }
 0x384   : > { %v3420_v55 = vadd.f32 %v3419_v27, %v3307_v0  ;;  %3249 = vmatmul.f32.gmra.mxu1 %v2799_v51  ;;  %v3197_v29 = vadd.f32 %v3196_v48, %v3084_v7  ;;  %v4560_v0 = vunpack.i.h.bf16 %v7375_v63  ;;  %v2977_v27 = vadd.f32 %v7527_v23, %v7215_v37  ;;  %v7582_v37 = vpop.permute.xlu2 %4562 }
 0x386   : > { %vm3515_vm0 = vcmp.ge.f32.partialorder %v3420_v55, 0.0  ;;  %v3547_v2 = vmul.f32 0.01, %v3420_v55  ;;  %3133 = vmatmul.f32.gmra.mxu3 %v2766_v8  ;;  %v3310_v43 = vadd.f32 %v7365_v11, %v3197_v29  ;;  %v4549_v11 = vunpack.i.l.bf16 %v4548_v22  ;;  %v8066_v29 = vld [vmem:[#allocation30_spill] sm:$0xff] }
 0x388   : > { %v3579_v62 = vsel %vm3515_vm0, %v3420_v55, %v3547_v2  ;;  %3777 = vmatmul.msk.f32.gmra.mxu2 %vm1416_vm6, %v7048_v21  ;;  %v2801_v2 = vsel %vm1416_vm6, %v8066_v29, %v4560_v0  ;;  %v2768_v22 = vsel %vm1416_vm6, %v7042_v42, %v4549_v11  ;;  %v7599_v0 = vpop.f32.mrf.mxu0 }
 0x389   : > { %3611 = vst.msk [vmem:[%s7561_s10] sm:$0xff] %vm1416_vm6, %v3579_v62  ;;  %v3086_v12 = vpop.f32.mrf.mxu3  ;;  %v3205_v3 = vpop.f32.mrf.mxu1 }
 0x38a   : > { %v3087_v48 = vadd.f32 %v3086_v12, %v2974_v45  ;;  %v2980_v12 = vadd.f32 %v7527_v23, %v7245_v54 }
 0x38b   : > { %v3422_v26 = vpop.f32.mrf.mxu2 }
 0x38c   : > { %v3423_v49 = vadd.f32 %v3422_v26, %v3310_v43  ;;  %3252 = vmatmul.f32.gmra.mxu1 %v2800_v19  ;;  %v3200_v59 = vadd.f32 %v3199_v56, %v3087_v48  ;;  %v4554_v43 = vunpack.i.l.bf16 %v7361_v33 }
 0x38e   : > { %vm3516_vm1 = vcmp.ge.f32.partialorder %v3423_v49, 0.0  ;;  %v3548_v7 = vmul.f32 0.01, %v3423_v49  ;;  %3136 = vmatmul.f32.gmra.mxu3 %v2767_v46  ;;  %v3313_v52 = vadd.f32 %v7383_v28, %v3200_v59  ;;  %v4565_v28 = vunpack.i.h.bf16 %v7582_v37  ;;  %v8067_v46 = vld [vmem:[#allocation24_spill] sm:$0xff] }
 0x38f   : > { %v2769_v54 = vsel %vm1416_vm6, %v7048_v21, %v4554_v43  ;;  %v4564_v43 = vunpack.i.l.bf16 %v7582_v37 }
 0x390   : > { %v3580_v51 = vsel %vm3516_vm1, %v3423_v49, %v3548_v7  ;;  %3778 = vmatmul.msk.f32.gmra.mxu2 %vm1416_vm6, %v7011_v6  ;;  %v2802_v59 = vsel %vm1416_vm6, %v8067_v46, %v4565_v28  ;;  %v2986_v28 = vadd.f32 %v7527_v23, %v7273_v14  ;;  %v7627_v46 = vpop.permute.xlu2 %4577 }
 0x391   : > { %3612 = vst.msk [vmem:[%s7561_s10 + $0x8] sm:$0xff] %vm1416_vm6, %v3580_v51  ;;  %v3089_v17 = vpop.f32.mrf.mxu3  ;;  %v3208_v55 = vpop.f32.mrf.mxu1  ;;  %v4570_v51 = vunpack.i.h.bf16 %v7379_v15 }
 0x392   : > { %v3090_v8 = vadd.f32 %v3089_v17, %v2977_v27  ;;  %v8068_v17 = vld [vmem:[#allocation34_spill] sm:$0xff] }
 0x393   : > { %v3425_v56 = vpop.f32.mrf.mxu2 }
 0x394   : > { %v3426_v45 = vadd.f32 %v3425_v56, %v3313_v52  ;;  %3255 = vmatmul.f32.gmra.mxu1 %v2801_v2  ;;  %v3203_v62 = vadd.f32 %v3202_v57, %v3090_v8  ;;  %v4559_v8 = vunpack.i.l.bf16 %v7375_v63  ;;  %v8069_v2 = vld [vmem:[#allocation23_spill] sm:$0xff] }
 0x396   : > { %vm3517_vm2 = vcmp.ge.f32.partialorder %v3426_v45, 0.0  ;;  %v3549_v25 = vmul.f32 0.01, %v3426_v45  ;;  %3139 = vmatmul.f32.gmra.mxu3 %v2768_v22  ;;  %v3316_v57 = vadd.f32 %v7401_v36, %v3203_v62  ;;  %v2983_v36 = vadd.f32 %v7527_v23, %v7262_v40 }
 0x397   : > { %v2770_v40 = vsel %vm1416_vm6, %v7011_v6, %v4559_v8 }
 0x398   : > { %v3581_v48 = vsel %vm3517_vm2, %v3426_v45, %v3549_v25  ;;  %3779 = vmatmul.msk.f32.gmra.mxu2 %vm1416_vm6, %v7091_v20  ;;  %v2803_v45 = vsel %vm1416_vm6, %v8069_v2, %v4570_v51  ;;  %v4575_v25 = vunpack.i.h.bf16 %v7394_v32 }
 0x399   : > { %3613 = vst.msk [vmem:[%s7561_s10 + $0x10] sm:$0xff] %vm1416_vm6, %v3581_v48  ;;  %v3092_v26 = vpop.f32.mrf.mxu3  ;;  %v3211_v19 = vpop.f32.mrf.mxu1  ;;  %v8070_v48 = vld [vmem:[#allocation33_spill] sm:$0xff] }
 0x39a   : > { %v3093_v42 = vadd.f32 %v3092_v26, %v2980_v12 }
 0x39b   : > { %v3428_v49 = vpop.f32.mrf.mxu2 }
 0x39c   : > { %v3429_v7 = vadd.f32 %v3428_v49, %v3316_v57  ;;  %3258 = vmatmul.f32.gmra.mxu1 %v2802_v59  ;;  %v3206_v33 = vadd.f32 %v3205_v3, %v3093_v42  ;;  %v8071_v49 = vld [vmem:[#allocation9_spill] sm:$0xff] }
 0x39d   : > { %v2804_v14 = vsel %vm1416_vm6, %v8071_v49, %v4575_v25  ;;  %v2995_v49 = vadd.f32 %v7527_v23, %v7319_v53 }
 0x39e   : > { %vm3518_vm9 = vcmp.ge.f32.partialorder %v3429_v7, 0.0  ;;  %v3550_v27 = vmul.f32 0.01, %v3429_v7  ;;  %3142 = vmatmul.f32.gmra.mxu3 %v2769_v54  ;;  %v3319_v3 = vadd.f32 %v7422_v9, %v3206_v33  ;;  %v7617_v9 = vpop.f32.mrf.mxu0  ;;  %v4580_v33 = vunpack.i.h.bf16 %v7627_v46 }
 0x3a0   : > { %v3582_v11 = vsel %vm3518_vm9, %v3429_v7, %v3550_v27  ;;  %3780 = vmatmul.msk.f32.gmra.mxu2 %vm1416_vm6, %v8068_v17  ;;  %v2771_v7 = vsel %vm1416_vm6, %v7091_v20, %v4564_v43  ;;  %v8074_v43 = vld [vmem:[#allocation27_spill] sm:$0xff] }
 0x3a1   : > { %3614 = vst.msk [vmem:[%s7561_s10 + $0x18] sm:$0xff] %vm1416_vm6, %v3582_v11  ;;  %v3095_v21 = vpop.f32.mrf.mxu3  ;;  %v3214_v52 = vpop.f32.mrf.mxu1 }
 0x3a2   : > { %v3096_v56 = vadd.f32 %v3095_v21, %v2983_v36  ;;  %v4569_v36 = vunpack.i.l.bf16 %v7379_v15 }
 0x3a3   : > { %v3431_v29 = vpop.f32.mrf.mxu2 }
 0x3a4   : > { %v3432_v22 = vadd.f32 %v3431_v29, %v3319_v3  ;;  %3261 = vmatmul.f32.gmra.mxu1 %v2803_v45  ;;  %v3209_v62 = vadd.f32 %v3208_v55, %v3096_v56  ;;  %v8072_v56 = vld [vmem:[#allocation20_spill] sm:$0xff]  ;;  %v2772_v29 = vsel %vm1416_vm6, %v8068_v17, %v4569_v36  ;;  %v4585_v45 = vunpack.i.h.bf16 %v7398_v34 }
 0x3a6   : > { %vm3519_vm13 = vcmp.ge.f32.partialorder %v3432_v22, 0.0  ;;  %v3551_v63 = vmul.f32 0.01, %v3432_v22  ;;  %3145 = vmatmul.f32.gmra.mxu3 %v2770_v40  ;;  %v3322_v42 = vadd.f32 %v7446_v39, %v3209_v62  ;;  %v2989_v39 = vadd.f32 %v7527_v23, %v7286_v31  ;;  %v7634_v27 = vpop.f32.mrf.mxu0 }
 0x3a7   : > { %v2805_v31 = vsel %vm1416_vm6, %v8072_v56, %v4580_v33  ;;  %v4574_v62 = vunpack.i.l.bf16 %v7394_v32  ;;  %v8076_v33 = vld [vmem:[#allocation29_spill] sm:$0xff]  ;;  %v4584_v56 = vunpack.i.l.bf16 %v7398_v34 }
 0x3a8   : > { %v3583_v12 = vsel %vm3519_vm13, %v3432_v22, %v3551_v63  ;;  %3781 = vmatmul.msk.f32.gmra.mxu2 %vm1416_vm6, %v8070_v48  ;;  %v2992_v22 = vadd.f32 %v7527_v23, %v7301_v50  ;;  %v2806_v50 = vsel %vm1416_vm6, %v8074_v43, %v4585_v45 }
 0x3a9   : > { %3615 = vst.msk [vmem:[%s7561_s10 + $0x20] sm:$0xff] %vm1416_vm6, %v3583_v12  ;;  %v3098_v6 = vpop.f32.mrf.mxu3  ;;  %v3217_v55 = vpop.f32.mrf.mxu1 }
 0x3aa   : > { %v3099_v26 = vadd.f32 %v3098_v6, %v2986_v28 }
 0x3ab   : > { %v3434_v57 = vpop.f32.mrf.mxu2 }
 0x3ac   : > { %v3435_v59 = vadd.f32 %v3434_v57, %v3322_v42  ;;  %3264 = vmatmul.f32.gmra.mxu1 %v2804_v14  ;;  %v3212_v37 = vadd.f32 %v3211_v19, %v3099_v26  ;;  %v2773_v26 = vsel %vm1416_vm6, %v8070_v48, %v4574_v62  ;;  %v4590_v57 = vunpack.i.h.bf16 %v7412_v38 }
 0x3ad   : > { %v4604_v62 = vunpack.i.l.bf16 %v7434_v24 }
 0x3ae   : > { %vm3520_vm14 = vcmp.ge.f32.partialorder %v3435_v59, 0.0  ;;  %v3552_v54 = vmul.f32 0.01, %v3435_v59  ;;  %3148 = vmatmul.f32.gmra.mxu3 %v2771_v7  ;;  %v3325_v8 = vadd.f32 %v7463_v16, %v3212_v37  ;;  %v8073_v16 = vld [vmem:[#allocation37_spill] sm:$0xff]  ;;  %v7654_v17 = vpop.f32.mrf.mxu0 }
 0x3b0   : > { %v3584_v51 = vsel %vm3520_vm14, %v3435_v59, %v3552_v54  ;;  %3782 = vmatmul.msk.f32.gmra.mxu2 %vm1416_vm6, %v7119_v5  ;;  %v4579_v59 = vunpack.i.l.bf16 %v7627_v46 }
 0x3b1   : > { %3616 = vst.msk [vmem:[%s7561_s10 + $0x28] sm:$0xff] %vm1416_vm6, %v3584_v51  ;;  %v3101_v20 = vpop.f32.mrf.mxu3  ;;  %v3220_v19 = vpop.f32.mrf.mxu1 }
 0x3b2   : > { %v3102_v11 = vadd.f32 %v3101_v20, %v2989_v39  ;;  %v2807_v39 = vsel %vm1416_vm6, %v8076_v33, %v4590_v57  ;;  %v7672_v51 = vpop.permute.xlu2 %4592  ;;  %v2774_v46 = vsel %vm1416_vm6, %v7119_v5, %v4579_v59  ;;  %v8081_v59 = vld [vmem:[#allocation6_spill] sm:$0xff] }
 0x3b3   : > { %v3437_v21 = vpop.f32.mrf.mxu2 }
 0x3b4   : > { %v3438_v3 = vadd.f32 %v3437_v21, %v3325_v8  ;;  %3267 = vmatmul.f32.gmra.mxu1 %v2805_v31  ;;  %v3215_v2 = vadd.f32 %v3214_v52, %v3102_v11  ;;  %v2998_v8 = vadd.f32 %v7527_v23, %v7333_v47  ;;  %v2775_v47 = vsel %vm1416_vm6, %v8073_v16, %v4584_v56 }
 0x3b6   : > { %vm3521_vm15 = vcmp.ge.f32.partialorder %v3438_v3, 0.0  ;;  %v3553_v15 = vmul.f32 0.01, %v3438_v3  ;;  %3151 = vmatmul.f32.gmra.mxu3 %v2772_v29  ;;  %v3328_v28 = vadd.f32 %v7478_v60, %v3215_v2  ;;  %v8075_v60 = vld [vmem:[#allocation35_spill] sm:$0xff]  ;;  %v7674_v53 = vpop.f32.mrf.mxu0  ;;  %v8077_v2 = vld [vmem:[#allocation32_spill] sm:$0xff] }
 0x3b8   : > { %v3585_v40 = vsel %vm3521_vm15, %v3438_v3, %v3553_v15  ;;  %3783 = vmatmul.msk.f32.gmra.mxu2 %vm1416_vm6, %v8073_v16 }
 0x3b9   : > { %3617 = vst.msk [vmem:[%s7561_s10 + $0x30] sm:$0xff] %vm1416_vm6, %v3585_v40  ;;  %v3104_v63 = vpop.f32.mrf.mxu3  ;;  %v3223_v25 = vpop.f32.mrf.mxu1 }
 0x3ba   : > { %v3105_v52 = vadd.f32 %v3104_v63, %v2992_v22  ;;  %v8078_v63 = vld [vmem:[#allocation5_spill] sm:$0xff] }
 0x3bb   : > { %v3440_v12 = vpop.f32.mrf.mxu2 }
 0x3bc   : > { %v3441_v6 = vadd.f32 %v3440_v12, %v3328_v28  ;;  %3270 = vmatmul.f32.gmra.mxu1 %v2806_v50  ;;  %v3218_v32 = vadd.f32 %v3217_v55, %v3105_v52  ;;  %v8079_v28 = vld [vmem:[#allocation38_spill] sm:$0xff]  ;;  %v4589_v12 = vunpack.i.l.bf16 %v7412_v38 }
 0x3be   : > { %vm3522_vm10 = vcmp.ge.f32.partialorder %v3441_v6, 0.0  ;;  %v3554_v42 = vmul.f32 0.01, %v3441_v6  ;;  %3154 = vmatmul.f32.gmra.mxu3 %v2773_v26  ;;  %v3331_v55 = vadd.f32 %v7580_v13, %v3218_v32  ;;  %v4595_v13 = vunpack.i.h.bf16 %v7672_v51  ;;  %v7691_v22 = vpop.f32.mrf.mxu0  ;;  %v8080_v26 = vld [vmem:[#allocation31_spill] sm:$0xff]  ;;  %v4608_v32 = vpop.permute.xlu2 %4607 }
 0x3bf   : > { %v2809_v24 = vsel %vm1416_vm6, %v8080_v26, %v4604_v62  ;;  %v2776_v57 = vsel %vm1416_vm6, %v8075_v60, %v4589_v12  ;;  %v8088_v12 = vld [vmem:[#allocation21_spill] sm:$0xff] }
 0x3c0   : > { %v3586_v14 = vsel %vm3522_vm10, %v3441_v6, %v3554_v42  ;;  %3784 = vmatmul.msk.f32.gmra.mxu2 %vm1416_vm6, %v8075_v60  ;;  %v2808_v15 = vsel %vm1416_vm6, %v8077_v2, %v4595_v13 }
 0x3c1   : > { %3618 = vst.msk [vmem:[%s7561_s10 + $0x38] sm:$0xff] %vm1416_vm6, %v3586_v14  ;;  %v3107_v7 = vpop.f32.mrf.mxu3  ;;  %v3226_v37 = vpop.f32.mrf.mxu1  ;;  %v4610_v14 = vunpack.i.h.bf16 %v4608_v32 }
 0x3c2   : > { %v3108_v48 = vadd.f32 %v3107_v7, %v2995_v49  ;;  %v3004_v7 = vadd.f32 %v7527_v23, %v8081_v59 }
 0x3c3   : > { %v3443_v54 = vpop.f32.mrf.mxu2 }
 0x3c4   : > { %v3444_v36 = vadd.f32 %v3443_v54, %v3331_v55  ;;  %3273 = vmatmul.f32.gmra.mxu1 %v2807_v39  ;;  %v3221_v20 = vadd.f32 %v3220_v19, %v3108_v48  ;;  %v8082_v55 = vld [vmem:[#allocation42_spill] sm:$0xff]  ;;  %v4594_v54 = vunpack.i.l.bf16 %v7672_v51 }
 0x3c6   : > { %vm3523_vm11 = vcmp.ge.f32.partialorder %v3444_v36, 0.0  ;;  %v3555_v11 = vmul.f32 0.01, %v3444_v36  ;;  %3157 = vmatmul.f32.gmra.mxu3 %v2774_v46  ;;  %v3334_v19 = vadd.f32 %v7599_v0, %v3221_v20  ;;  %v3001_v0 = vadd.f32 %v7527_v23, %v8078_v63  ;;  %v8083_v46 = vld [vmem:[#allocation36_spill] sm:$0xff] }
 0x3c7   : > { %v2810_v20 = vsel %vm1416_vm6, %v8083_v46, %v4610_v14  ;;  %v2777_v13 = vsel %vm1416_vm6, %v7171_v18, %v4594_v54 }
 0x3c8   : > { %v3587_v21 = vsel %vm3523_vm11, %v3444_v36, %v3555_v11  ;;  %3785 = vmatmul.msk.f32.gmra.mxu2 %vm1416_vm6, %v7171_v18 }
 0x3c9   : > { %3619 = vst.msk [vmem:[%s7561_s10 + $0x40] sm:$0xff] %vm1416_vm6, %v3587_v21  ;;  %v3110_v31 = vpop.f32.mrf.mxu3  ;;  %v3229_v3 = vpop.f32.mrf.mxu1  ;;  %v8084_v21 = vld [vmem:[#allocation14_spill] sm:$0xff] }
 0x3ca   : > { %v3111_v5 = vadd.f32 %v3110_v31, %v2998_v8  ;;  %v3007_v56 = vadd.f32 %v7527_v23, %v8084_v21  ;;  %v2679_v31 = vpop.permute.xlu0 %2678 }
 0x3cb   : > { %v3446_v29 = vpop.f32.mrf.mxu2 }
 0x3cc   : > { %v3447_v45 = vadd.f32 %v3446_v29, %v3334_v19  ;;  %3276 = vmatmul.f32.gmra.mxu1 %v2808_v15  ;;  %v3224_v34 = vadd.f32 %v3223_v25, %v3111_v5  ;;  %v8085_v19 = vld [vmem:[#allocation41_spill] sm:$0xff] }
 0x3ce   : > { %vm3524_vm12 = vcmp.ge.f32.partialorder %v3447_v45, 0.0  ;;  %v3556_v40 = vmul.f32 0.01, %v3447_v45  ;;  %3160 = vmatmul.f32.gmra.mxu3 %v2775_v47  ;;  %v3337_v25 = vadd.f32 %v7617_v9, %v3224_v34  ;;  %v7708_v9 = vpop.f32.mrf.mxu0  ;;  %v8087_v34 = vld [vmem:[#allocation40_spill] sm:$0xff] }
 0x3d0   : > { %v3588_v52 = vsel %vm3524_vm12, %v3447_v45, %v3556_v40  ;;  %3786 = vmatmul.msk.f32.gmra.mxu2 %vm1416_vm6, %v8079_v28  ;;  %v2811_v40 = vsel %vm1416_vm6, %v8087_v34, %v2679_v31  ;;  %v3022_v34 = vadd.f32 %v7527_v23, %v7471_v10 }
 0x3d1   : > { %3620 = vst.msk [vmem:[%s7561_s10 + $0x48] sm:$0xff] %vm1416_vm6, %v3588_v52  ;;  %v3113_v16 = vpop.f32.mrf.mxu3  ;;  %v3232_v43 = vpop.f32.mrf.mxu1 }
 0x3d2   : > { %v3114_v50 = vadd.f32 %v3113_v16, %v3001_v0  ;;  %v3010_v16 = vadd.f32 %v7527_v23, %v8088_v12 }
 0x3d3   : > { %v3449_v6 = vpop.f32.mrf.mxu2 }
 0x3d4   : > { %v3450_v42 = vadd.f32 %v3449_v6, %v3337_v25  ;;  %3279 = vmatmul.f32.gmra.mxu1 %v2809_v24  ;;  %v3227_v49 = vadd.f32 %v3226_v37, %v3114_v50  ;;  %v8089_v25 = vld [vmem:[#allocation39_spill] sm:$0xff] }
 0x3d6   : > { %vm3525_vm4 = vcmp.ge.f32.partialorder %v3450_v42, 0.0  ;;  %v3557_v38 = vmul.f32 0.01, %v3450_v42  ;;  %3163 = vmatmul.f32.gmra.mxu3 %v2776_v57  ;;  %v3340_v39 = vadd.f32 %v7634_v27, %v3227_v49  ;;  %v8086_v27 = vld [vmem:[#allocation7_spill] sm:$0xff]  ;;  %v7727_v45 = vpop.f32.mrf.mxu0 }
 0x3d7   : > { %v4600_v29 = vunpack.i.h.bf16 %v8086_v27 }
 0x3d8   : > { %v3589_v48 = vsel %vm3525_vm4, %v3450_v42, %v3557_v38  ;;  %3787 = vmatmul.msk.f32.gmra.mxu2 %vm1416_vm6, %v8082_v55 }
 0x3d9   : > { %3621 = vst.msk [vmem:[%s7561_s10 + $0x50] sm:$0xff] %vm1416_vm6, %v3589_v48  ;;  %v3116_v33 = vpop.f32.mrf.mxu3  ;;  %v3235_v60 = vpop.f32.mrf.mxu1  ;;  %v2778_v63 = vsel %vm1416_vm6, %v8079_v28, %v4600_v29 }
 0x3da   : > { %v3117_v37 = vadd.f32 %v3116_v33, %v3004_v7  ;;  %v8090_v7 = vld [vmem:[#allocation12_spill] sm:$0xff] }
 0x3db   : > { %v3452_v36 = vpop.f32.mrf.mxu2 }
 0x3dc   : > { %v3453_v11 = vadd.f32 %v3452_v36, %v3340_v39  ;;  %3282 = vmatmul.f32.gmra.mxu1 %v2810_v20  ;;  %v3230_v8 = vadd.f32 %v3229_v3, %v3117_v37 }
 0x3de   : > { %vm3526_vm5 = vcmp.ge.f32.partialorder %v3453_v11, 0.0  ;;  %v3558_v51 = vmul.f32 0.01, %v3453_v11  ;;  %3166 = vmatmul.f32.gmra.mxu3 %v2777_v13  ;;  %v3343_v3 = vadd.f32 %v7654_v17, %v3230_v8  ;;  %v4609_v17 = vunpack.i.l.bf16 %v4608_v32  ;;  %v3357_v57 = vpop.f32.mrf.mxu0 }
 0x3df   : > { %v3013_v32 = vadd.f32 %v7527_v23, %v8090_v7 }
 0x3e0   : > { %v3590_v5 = vsel %vm3526_vm5, %v3453_v11, %v3558_v51  ;;  %3788 = vmatmul.msk.f32.gmra.mxu2 %vm1416_vm6, %v8085_v19  ;;  %v2779_v38 = vsel %vm1416_vm6, %v8082_v55, %v4609_v17  ;;  %v3016_v11 = vadd.f32 %v7527_v23, %v7442_v61  ;;  %v3019_v61 = vadd.f32 %v7527_v23, %v7457_v4 }
 0x3e1   : > { %3622 = vst.msk [vmem:[%s7561_s10 + $0x58] sm:$0xff] %vm1416_vm6, %v3590_v5  ;;  %v3119_v2 = vpop.f32.mrf.mxu3  ;;  %v3238_v15 = vpop.f32.mrf.mxu1 }
 0x3e2   : > { %v3120_v18 = vadd.f32 %v3119_v2, %v3007_v56 }
 0x3e3   : > { %v3455_v47 = vpop.f32.mrf.mxu2 }
 0x3e4   : > { %v3456_v62 = vadd.f32 %v3455_v47, %v3343_v3  ;;  %3285 = vmatmul.f32.gmra.mxu1 %v2811_v40  ;;  %v3233_v0 = vadd.f32 %v3232_v43, %v3120_v18 }
 0x3e6   : > { %vm3527_vm3 = vcmp.ge.f32.partialorder %v3456_v62, 0.0  ;;  %v3559_v52 = vmul.f32 0.01, %v3456_v62  ;;  %3169 = vmatmul.f32.gmra.mxu3 %v2778_v63  ;;  %v3346_v42 = vadd.f32 %v7674_v53, %v3233_v0  ;;  %v3360_v36 = vpop.f32.mrf.mxu0 }
 0x3e8   : > { %v3591_v50 = vsel %vm3527_vm3, %v3456_v62, %v3559_v52  ;;  %3789 = vmatmul.msk.f32.gmra.mxu2 %vm1416_vm6, %v8089_v25  ;;  %v3025_v25 = vadd.f32 %v7527_v23, %v7486_v35 }
 0x3e9   : > { %3623 = vst.msk [vmem:[%s7561_s10 + $0x60] sm:$0xff] %vm1416_vm6, %v3591_v50  ;;  %v3122_v6 = vpop.f32.mrf.mxu3  ;;  %v3241_v26 = vpop.f32.mrf.mxu1 }
 0x3ea   : > { %v3123_v24 = vadd.f32 %v3122_v6, %v3010_v16 }
 0x3eb   : > { %v3458_v43 = vpop.f32.mrf.mxu2 }
 0x3ec   : > { %v3459_v49 = vadd.f32 %v3458_v43, %v3346_v42  ;;  %v3236_v14 = vadd.f32 %v3235_v60, %v3123_v24 }
 0x3ee   : > { %vm3528_vm7 = vcmp.ge.f32.partialorder %v3459_v49, 0.0  ;;  %v3560_v59 = vmul.f32 0.01, %v3459_v49  ;;  %3172 = vmatmul.f32.gmra.mxu3 %v2779_v38  ;;  %v3349_v37 = vadd.f32 %v7691_v22, %v3236_v14  ;;  %v3363_v19 = vpop.f32.mrf.mxu0  ;;  %v3028_v14 = vadd.f32 %v7527_v23, %v7497_v58 }
 0x3f0   : > { %v3592_v48 = vsel %vm3528_vm7, %v3459_v49, %v3560_v59  ;;  %3790 = vmatmul.msk.f32.gmra.mxu2 %vm1416_vm6, %v8079_v28 }
 0x3f1   : > { %3624 = vst.msk [vmem:[%s7561_s10 + $0x68] sm:$0xff] %vm1416_vm6, %v3592_v48  ;;  %v3125_v53 = vpop.f32.mrf.mxu3  ;;  %v3244_v54 = vpop.f32.mrf.mxu1 }
 0x3f2   : > { %v3126_v33 = vadd.f32 %v3125_v53, %v3013_v32 }
 0x3f3   : > { %v3461_v39 = vpop.f32.mrf.mxu2 }
 0x3f4   : > { %v3462_v60 = vadd.f32 %v3461_v39, %v3349_v37  ;;  %v3239_v46 = vadd.f32 %v3238_v15, %v3126_v33 }
 0x3f6   : > { %vm3529_vm8 = vcmp.ge.f32.partialorder %v3462_v60, 0.0  ;;  %v3561_v20 = vmul.f32 0.01, %v3462_v60  ;;  %v3352_v22 = vadd.f32 %v7708_v9, %v3239_v46  ;;  %v3366_v52 = vpop.f32.mrf.mxu0 }
 0x3f8   : > { %v3593_v13 = vsel %vm3529_vm8, %v3462_v60, %v3561_v20  ;;  %3791 = vmatmul.msk.f32.gmra.mxu2 %vm1416_vm6, %v8082_v55  ;;  %v3031_v60 = vadd.f32 %v7527_v23, %v7508_v30 }
 0x3f9   : > { %3625 = vst.msk [vmem:[%s7561_s10 + $0x70] sm:$0xff] %vm1416_vm6, %v3593_v13  ;;  %v3128_v28 = vpop.f32.mrf.mxu3  ;;  %v3247_v8 = vpop.f32.mrf.mxu1 }
 0x3fa   : > { %v3129_v51 = vadd.f32 %v3128_v28, %v3016_v11 }
 0x3fb   : > { %v3464_v21 = vpop.f32.mrf.mxu2 }
 0x3fc   : > { %v3465_v56 = vadd.f32 %v3464_v21, %v3352_v22  ;;  %v3242_v31 = vadd.f32 %v3241_v26, %v3129_v51  ;;  %v3034_v22 = vadd.f32 %v7527_v23, %v7520_v1 }
 0x3fe   : > { %vm3530_vm0 = vcmp.ge.f32.partialorder %v3465_v56, 0.0  ;;  %v3562_v5 = vmul.f32 0.01, %v3465_v56  ;;  %v3355_v15 = vadd.f32 %v7727_v45, %v3242_v31 }
 0x400   : > { %v3594_v27 = vsel %vm3530_vm0, %v3465_v56, %v3562_v5 }
 0x401   : > { %3626 = vst.msk [vmem:[%s7561_s10 + $0x78] sm:$0xff] %vm1416_vm6, %v3594_v27  ;;  %v3131_v55 = vpop.f32.mrf.mxu3  ;;  %v3250_v29 = vpop.f32.mrf.mxu1 }
 0x402   : > { %v3132_v2 = vadd.f32 %v3131_v55, %v3019_v61 }
 0x403   : > { %v3467_v18 = vpop.f32.mrf.mxu2 }
 0x404   : > { %v3468_v9 = vadd.f32 %v3467_v18, %v3355_v15  ;;  %v3245_v3 = vadd.f32 %v3244_v54, %v3132_v2  ;;  %v3037_v2 = vadd.f32 %v7527_v23, %v7536_v44 }
 0x406   : > { %vm3531_vm1 = vcmp.ge.f32.partialorder %v3468_v9, 0.0  ;;  %v3563_v47 = vmul.f32 0.01, %v3468_v9  ;;  %v3358_v0 = vadd.f32 %v3357_v57, %v3245_v3  ;;  %v3369_v57 = vpop.f32.mrf.mxu0 }
 0x408   : > { %v3595_v40 = vsel %vm3531_vm1, %v3468_v9, %v3563_v47 }
 0x409   : > { %3627 = vst.msk [vmem:[%s7561_s10 + $0x80] sm:$0xff] %vm1416_vm6, %v3595_v40  ;;  %v3134_v4 = vpop.f32.mrf.mxu3  ;;  %v3253_v62 = vpop.f32.mrf.mxu1 }
 0x40a   : > { %v3135_v63 = vadd.f32 %v3134_v4, %v3022_v34 }
 0x40b   : > { %v3470_v12 = vpop.f32.mrf.mxu2 }
 0x40c   : > { %v3471_v16 = vadd.f32 %v3470_v12, %v3358_v0  ;;  %v3248_v45 = vadd.f32 %v3247_v8, %v3135_v63 }
 0x40e   : > { %vm3532_vm2 = vcmp.ge.f32.partialorder %v3471_v16, 0.0  ;;  %v3564_v50 = vmul.f32 0.01, %v3471_v16  ;;  %v3361_v24 = vadd.f32 %v3360_v36, %v3248_v45  ;;  %v3372_v39 = vpop.f32.mrf.mxu0 }
 0x410   : > { %v3596_v17 = vsel %vm3532_vm2, %v3471_v16, %v3564_v50 }
 0x411   : > { %3628 = vst.msk [vmem:[%s7561_s10 + $0x88] sm:$0xff] %vm1416_vm6, %v3596_v17  ;;  %v3137_v10 = vpop.f32.mrf.mxu3  ;;  %v3256_v6 = vpop.f32.mrf.mxu1 }
 0x412   : > { %v3138_v26 = vadd.f32 %v3137_v10, %v3025_v25 }
 0x413   : > { %v3473_v42 = vpop.f32.mrf.mxu2 }
 0x414   : > { %v3474_v43 = vadd.f32 %v3473_v42, %v3361_v24  ;;  %v3251_v49 = vadd.f32 %v3250_v29, %v3138_v26 }
 0x416   : > { %vm3533_vm9 = vcmp.ge.f32.partialorder %v3474_v43, 0.0  ;;  %v3565_v38 = vmul.f32 0.01, %v3474_v43  ;;  %v3364_v32 = vadd.f32 %v3363_v19, %v3251_v49  ;;  %v3375_v56 = vpop.f32.mrf.mxu0 }
 0x418   : > { %v3597_v59 = vsel %vm3533_vm9, %v3474_v43, %v3565_v38 }
 0x419   : > { %3629 = vst.msk [vmem:[%s7561_s10 + $0x90] sm:$0xff] %vm1416_vm6, %v3597_v59  ;;  %v3140_v35 = vpop.f32.mrf.mxu3  ;;  %v3259_v48 = vpop.f32.mrf.mxu1 }
 0x41a   : > { %v3141_v7 = vadd.f32 %v3140_v35, %v3028_v14 }
 0x41b   : > { %v3476_v53 = vpop.f32.mrf.mxu2 }
 0x41c   : > { %v3477_v54 = vadd.f32 %v3476_v53, %v3364_v32  ;;  %v3254_v33 = vadd.f32 %v3253_v62, %v3141_v7  ;;  %v8091_v62 = vld [vmem:[#allocation18_spill] sm:$0xff]  ;;  %v3046_v32 = vadd.f32 %v7527_v23, %v7455_v41 }
 0x41d   : > { %v3040_v63 = vadd.f32 %v7527_v23, %v8091_v62 }
 0x41e   : > { %vm3534_vm13 = vcmp.ge.f32.partialorder %v3477_v54, 0.0  ;;  %v3566_v37 = vmul.f32 0.01, %v3477_v54  ;;  %v3367_v20 = vadd.f32 %v3366_v52, %v3254_v33  ;;  %v3378_v3 = vpop.f32.mrf.mxu0 }
 0x420   : > { %v3598_v36 = vsel %vm3534_vm13, %v3477_v54, %v3566_v37 }
 0x421   : > { %3630 = vst.msk [vmem:[%s7561_s10 + $0x98] sm:$0xff] %vm1416_vm6, %v3598_v36  ;;  %v3143_v58 = vpop.f32.mrf.mxu3  ;;  %v3262_v28 = vpop.f32.mrf.mxu1 }
 0x422   : > { %v3144_v46 = vadd.f32 %v3143_v58, %v3031_v60 }
 0x423   : > { %v3479_v11 = vpop.f32.mrf.mxu2 }
 0x424   : > { %v3480_v13 = vadd.f32 %v3479_v11, %v3367_v20  ;;  %v3257_v8 = vadd.f32 %v3256_v6, %v3144_v46  ;;  %v8092_v6 = vld [vmem:[#allocation22_spill] sm:$0xff]  ;;  %v8093_v46 = vld [vmem:[#allocation13_spill] sm:$0xff] }
 0x425   : > { %v3043_v26 = vadd.f32 %v7527_v23, %v8092_v6  ;;  %v3049_v20 = vadd.f32 %v7527_v23, %v8093_v46 }
 0x426   : > { %vm3535_vm14 = vcmp.ge.f32.partialorder %v3480_v13, 0.0  ;;  %v3567_v51 = vmul.f32 0.01, %v3480_v13  ;;  %v3370_v5 = vadd.f32 %v3369_v57, %v3257_v8  ;;  %v3381_v25 = vpop.f32.mrf.mxu0 }
 0x428   : > { %v3599_v21 = vsel %vm3535_vm14, %v3480_v13, %v3567_v51 }
 0x429   : > { %3631 = vst.msk [vmem:[%s7561_s10 + $0xa0] sm:$0xff] %vm1416_vm6, %v3599_v21  ;;  %v3146_v30 = vpop.f32.mrf.mxu3  ;;  %v3265_v29 = vpop.f32.mrf.mxu1 }
 0x42a   : > { %v3147_v31 = vadd.f32 %v3146_v30, %v3034_v22 }
 0x42b   : > { %v3482_v61 = vpop.f32.mrf.mxu2 }
 0x42c   : > { %v3483_v19 = vadd.f32 %v3482_v61, %v3370_v5  ;;  %v3260_v27 = vadd.f32 %v3259_v48, %v3147_v31  ;;  %v8094_v31 = vld [vmem:[#allocation17_spill] sm:$0xff] }
 0x42d   : > { %v3052_v5 = vadd.f32 %v7527_v23, %v8094_v31 }
 0x42e   : > { %vm3536_vm15 = vcmp.ge.f32.partialorder %v3483_v19, 0.0  ;;  %v3568_v55 = vmul.f32 0.01, %v3483_v19  ;;  %v3373_v9 = vadd.f32 %v3372_v39, %v3260_v27  ;;  %v3384_v7 = vpop.f32.mrf.mxu0 }
 0x430   : > { %v3600_v15 = vsel %vm3536_vm15, %v3483_v19, %v3568_v55 }
 0x431   : > { %3632 = vst.msk [vmem:[%s7561_s10 + $0xa8] sm:$0xff] %vm1416_vm6, %v3600_v15  ;;  %v3149_v1 = vpop.f32.mrf.mxu3  ;;  %v3268_v52 = vpop.f32.mrf.mxu1 }
 0x432   : > { %v3150_v18 = vadd.f32 %v3149_v1, %v3037_v2 }
 0x433   : > { %v3485_v47 = vpop.f32.mrf.mxu2 }
 0x434   : > { %v3486_v34 = vadd.f32 %v3485_v47, %v3373_v9  ;;  %v3263_v40 = vadd.f32 %v3262_v28, %v3150_v18  ;;  %v8095_v9 = vld [vmem:[#allocation10_spill] sm:$0xff] }
 0x436   : > { %vm3537_vm10 = vcmp.ge.f32.partialorder %v3486_v34, 0.0  ;;  %v3569_v4 = vmul.f32 0.01, %v3486_v34  ;;  %v3376_v16 = vadd.f32 %v3375_v56, %v3263_v40  ;;  %v3387_v13 = vpop.f32.mrf.mxu0 }
 0x438   : > { %v3601_v0 = vsel %vm3537_vm10, %v3486_v34, %v3569_v4 }
 0x439   : > { %3633 = vst.msk [vmem:[%s7561_s10 + $0xb0] sm:$0xff] %vm1416_vm6, %v3601_v0  ;;  %v3152_v44 = vpop.f32.mrf.mxu3  ;;  %v3271_v49 = vpop.f32.mrf.mxu1 }
 0x43a   : > { %v3153_v12 = vadd.f32 %v3152_v44, %v3040_v63 }
 0x43b   : > { %v3488_v45 = vpop.f32.mrf.mxu2 }
 0x43c   : > { %v3489_v50 = vadd.f32 %v3488_v45, %v3376_v16  ;;  %v3266_v17 = vadd.f32 %v3265_v29, %v3153_v12  ;;  %v8096_v16 = vld [vmem:[#allocation11_spill] sm:$0xff] }
 0x43d   : > { %v3058_v45 = vadd.f32 %v7527_v23, %v8096_v16 }
 0x43e   : > { %vm3538_vm11 = vcmp.ge.f32.partialorder %v3489_v50, 0.0  ;;  %v3570_v10 = vmul.f32 0.01, %v3489_v50  ;;  %v3379_v57 = vadd.f32 %v3378_v3, %v3266_v17  ;;  %v3390_v29 = vpop.f32.mrf.mxu0  ;;  %v3055_v3 = vadd.f32 %v7527_v23, %v8095_v9 }
 0x440   : > { %v3602_v24 = vsel %vm3538_vm11, %v3489_v50, %v3570_v10 }
 0x441   : > { %3634 = vst.msk [vmem:[%s7561_s10 + $0xb8] sm:$0xff] %vm1416_vm6, %v3602_v24  ;;  %v3155_v42 = vpop.f32.mrf.mxu3  ;;  %v3274_v60 = vpop.f32.mrf.mxu1 }
 0x442   : > { %v3156_v43 = vadd.f32 %v3155_v42, %v3043_v26 }
 0x443   : > { %v3491_v38 = vpop.f32.mrf.mxu2 }
 0x444   : > { %v3492_v14 = vadd.f32 %v3491_v38, %v3379_v57  ;;  %v3269_v59 = vadd.f32 %v3268_v52, %v3156_v43 }
 0x446   : > { %vm3539_vm12 = vcmp.ge.f32.partialorder %v3492_v14, 0.0  ;;  %v3571_v35 = vmul.f32 0.01, %v3492_v14  ;;  %v3382_v33 = vadd.f32 %v3381_v25, %v3269_v59  ;;  %v3393_v52 = vpop.f32.mrf.mxu0 }
 0x448   : > { %v3603_v48 = vsel %vm3539_vm12, %v3492_v14, %v3571_v35 }
 0x449   : > { %3635 = vst.msk [vmem:[%s7561_s10 + $0xc0] sm:$0xff] %vm1416_vm6, %v3603_v48  ;;  %v3158_v53 = vpop.f32.mrf.mxu3  ;;  %v3277_v30 = vpop.f32.mrf.mxu1 }
 0x44a   : > { %v3159_v54 = vadd.f32 %v3158_v53, %v3046_v32 }
 0x44b   : > { %v3494_v37 = vpop.f32.mrf.mxu2 }
 0x44c   : > { %v3495_v39 = vadd.f32 %v3494_v37, %v3382_v33  ;;  %v3272_v36 = vadd.f32 %v3271_v49, %v3159_v54  ;;  %v8097_v49 = vld [vmem:[#allocation15_spill] sm:$0xff] }
 0x44d   : > { %v3061_v38 = vadd.f32 %v7527_v23, %v8097_v49 }
 0x44e   : > { %vm3540_vm4 = vcmp.ge.f32.partialorder %v3495_v39, 0.0  ;;  %v3572_v58 = vmul.f32 0.01, %v3495_v39  ;;  %v3385_v8 = vadd.f32 %v3384_v7, %v3272_v36  ;;  %v3396_v57 = vpop.f32.mrf.mxu0 }
 0x450   : > { %v3604_v11 = vsel %vm3540_vm4, %v3495_v39, %v3572_v58 }
 0x451   : > { %3636 = vst.msk [vmem:[%s7561_s10 + $0xc8] sm:$0xff] %vm1416_vm6, %v3604_v11  ;;  %v3161_v41 = vpop.f32.mrf.mxu3  ;;  %v3280_v34 = vpop.f32.mrf.mxu1 }
 0x452   : > { %v3162_v28 = vadd.f32 %v3161_v41, %v3049_v20 }
 0x453   : > { %v3497_v51 = vpop.f32.mrf.mxu2 }
 0x454   : > { %v3498_v22 = vadd.f32 %v3497_v51, %v3385_v8  ;;  %v3275_v21 = vadd.f32 %v3274_v60, %v3162_v28 }
 0x456   : > { %vm3541_vm5 = vcmp.ge.f32.partialorder %v3498_v22, 0.0  ;;  %v3573_v56 = vmul.f32 0.01, %v3498_v22  ;;  %v3388_v55 = vadd.f32 %v3387_v13, %v3275_v21  ;;  %v3399_v23 = vpop.f32.mrf.mxu0 }
 0x458   : > { %v3605_v61 = vsel %vm3541_vm5, %v3498_v22, %v3573_v56 }
 0x459   : > { %3637 = vst.msk [vmem:[%s7561_s10 + $0xd0] sm:$0xff] %vm1416_vm6, %v3605_v61  ;;  %v3164_v19 = vpop.f32.mrf.mxu3  ;;  %v3283_v6 = vpop.f32.mrf.mxu1 }
 0x45a   : > { %v3165_v27 = vadd.f32 %v3164_v19, %v3052_v5 }
 0x45b   : > { %v3500_v2 = vpop.f32.mrf.mxu2 }
 0x45c   : > { %v3501_v15 = vadd.f32 %v3500_v2, %v3388_v55  ;;  %v3278_v1 = vadd.f32 %v3277_v30, %v3165_v27 }
 0x45e   : > { %vm3542_vm3 = vcmp.ge.f32.partialorder %v3501_v15, 0.0  ;;  %v3574_v18 = vmul.f32 0.01, %v3501_v15  ;;  %v3391_v62 = vadd.f32 %v3390_v29, %v3278_v1 }
 0x460   : > { %v3606_v47 = vsel %vm3542_vm3, %v3501_v15, %v3574_v18 }
 0x461   : > { %3638 = vst.msk [vmem:[%s7561_s10 + $0xd8] sm:$0xff] %vm1416_vm6, %v3606_v47  ;;  %v3167_v40 = vpop.f32.mrf.mxu3  ;;  %v3286_v53 = vpop.f32.mrf.mxu1 }
 0x462   : > { %v3168_v4 = vadd.f32 %v3167_v40, %v3055_v3 }
 0x463   : > { %v3503_v63 = vpop.f32.mrf.mxu2 }
 0x464   : > { %v3504_v0 = vadd.f32 %v3503_v63, %v3391_v62  ;;  %v3281_v44 = vadd.f32 %v3280_v34, %v3168_v4 }
 0x466   : > { %vm3543_vm7 = vcmp.ge.f32.partialorder %v3504_v0, 0.0  ;;  %v3575_v12 = vmul.f32 0.01, %v3504_v0  ;;  %v3394_v10 = vadd.f32 %v3393_v52, %v3281_v44 }
 0x468   : > { %v3607_v50 = vsel %vm3543_vm7, %v3504_v0, %v3575_v12 }
 0x469   : > { %3639 = vst.msk [vmem:[%s7561_s10 + $0xe0] sm:$0xff] %vm1416_vm6, %v3607_v50  ;;  %v3170_v25 = vpop.f32.mrf.mxu3 }
 0x46a   : > { %v3171_v17 = vadd.f32 %v3170_v25, %v3058_v45 }
 0x46b   : > { %v3506_v26 = vpop.f32.mrf.mxu2 }
 0x46c   : > { %v3507_v24 = vadd.f32 %v3506_v26, %v3394_v10  ;;  %v3284_v42 = vadd.f32 %v3283_v6, %v3171_v17 }
 0x46e   : > { %vm3544_vm8 = vcmp.ge.f32.partialorder %v3507_v24, 0.0  ;;  %v3576_v43 = vmul.f32 0.01, %v3507_v24  ;;  %v3397_v7 = vadd.f32 %v3396_v57, %v3284_v42 }
 0x470   : > { %v3608_v14 = vsel %vm3544_vm8, %v3507_v24, %v3576_v43 }
 0x471   : > { %3640 = vst.msk [vmem:[%s7561_s10 + $0xe8] sm:$0xff] %vm1416_vm6, %v3608_v14  ;;  %v3173_v59 = vpop.f32.mrf.mxu3 }
 0x472   : > { %v3174_v35 = vadd.f32 %v3173_v59, %v3061_v38 }
 0x473   : > { %v3509_v32 = vpop.f32.mrf.mxu2 }
 0x474   : > { %v3510_v48 = vadd.f32 %v3509_v32, %v3397_v7  ;;  %v3287_v54 = vadd.f32 %v3286_v53, %v3174_v35 }
 0x476   : > { %vm3545_vm0 = vcmp.ge.f32.partialorder %v3510_v48, 0.0  ;;  %v3577_v33 = vmul.f32 0.01, %v3510_v48  ;;  %v3400_v39 = vadd.f32 %v3399_v23, %v3287_v54 }
 0x478   : > { %v3609_v37 = vsel %vm3545_vm0, %v3510_v48, %v3577_v33 }
 0x479   : > { %3641 = vst.msk [vmem:[%s7561_s10 + $0xf0] sm:$0xff] %vm1416_vm6, %v3609_v37 }
 0x47b   : > { %v3512_v60 = vpop.f32.mrf.mxu2 }
 0x47c   : > { %v3513_v36 = vadd.f32 %v3512_v60, %v3400_v39 }
 0x47e   : > { %vm3546_vm1 = vcmp.ge.f32.partialorder %v3513_v36, 0.0  ;;  %v3578_v58 = vmul.f32 0.01, %v3513_v36 }
 0x480   : > { %v3610_v46 = vsel %vm3546_vm1, %v3513_v36, %v3578_v58 }
 0x481   : > { %3642 = vst.msk [vmem:[%s7561_s10 + $0xf8] sm:$0xff] %vm1416_vm6, %v3610_v46 }
 0x482   : > { %4641 = shalt.err (!%p4638_p3)
}
 0x483   : > { %s4685_s26 = smov 128   ;;  %s4686_s9 = smov 8  }
 0x484   : > { %3833 = dma.vmem_to_hbm [thread:$0]  (%p4755_p5), %s3657_s16, 4096, %s3659_s11, %s3644_s22, %s4685_s26, %s4685_s26, %s4686_s9  }
 0x485 PF: > { %p3839_p4 = scmp.ge.s32.totalorder %s4676_s21, 2  ;;  %s3673_s10 = sand.u32 1, %s4664_s18  }
 0x486   : > { %s3674_s12 = scalar_lea.sflag [#allocation3], %s3673_s10 }
 0x487   : > { %p3836_p7 = pnand %p3839_p4, %p4759_p6 }
 0x489   : > { %p3837_p8 = pneg %p3836_p7 }
 0x48b   : > { %4659 = dma.done.wait (%p3837_p8), %s3674_s12, 4096  }
 0x48c   : > { %4661 = vsyncadd (%p3837_p8), %s3674_s12, 4294963200  ;;  %p15_p9 = scmp.ge.s32.totalorder %s4742_s24, 4   ;;  %s8098_s18 = smov %s4668_s19 }
 0x48d   : > { %s8099_s19 = smov %s4672_s20  ;;  %s8100_s20 = smov %s4753_s27 }
 0x48e   : > { %s8101_s21 = smov %s4742_s24  ;;  %17 = sbr.rel (!%p15_p9) target bundleno = 3 (0x3), region = 75 }
 0x493   :  { %3680 = vsyncpa [#allocation3], 1 }
 0x494   :  { %3682 = vsyncpa [#allocation3 + $0x1], 1 }

</bundles_post_ra>
